<compile_context>
chip_gen: v5e
topology: v5e:2x2
jax: 0.10.0
libtpu: 0.0.40
codegen_flags: <defaults>
</compile_context>

<pallas_src>
import math

import jax
import jax.numpy as jnp
from jax.experimental import pallas as pl
from jax.experimental.pallas import tpu as pltpu


# ----------------------------------------------------------------------------
# ODConv forward (Pallas)
# ----------------------------------------------------------------------------

def odconv_forward(params, x_nchw, eps=1e-5):
    B, Cin, H, W = x_nchw.shape
    kernels = params["kernels"]                      # (kernel_num, Cout, Cin, K, K)
    Cout, K = kernels.shape[1], kernels.shape[-1]
    A = params["fc1_w"].shape[1]                     # attention channels
    # 'same' padding with a symmetric pad only matches lax SAME for odd K.
    assert K % 2 == 1, "ODConv 'same' path implemented for odd kernel sizes only"
    pad = K // 2
    T = K * K
    P = H * W
    Hp, Wp = H + 2 * pad, W + 2 * pad

    # --- glue: zero-pad spatially in channels-first layout and cast the MXU/DMA
    #     operand to bf16 (halves input HBM traffic; accumulation stays f32).
    xp = jnp.pad(x_nchw, ((0, 0), (0, 0), (pad, pad), (pad, pad)))
    xp = xp.astype(jnp.bfloat16)                                             # (B, Cin, Hp, Wp)

    # --- glue: aggregate candidate kernels, reorder to per-tap (T, Cout, Cin).
    agg = jnp.sum(kernels, axis=0)                                           # (Cout, Cin, K, K)
    w_taps = jnp.transpose(agg, (2, 3, 0, 1)).reshape(T, Cout, Cin)          # taps ordered (dy, dx)

    # --- global average pool in plain XLA (single cheap reduce; avoids a second
    #     whole-input read inside Pallas).
    pooled = jnp.mean(x_nchw, axis=(2, 3))                                   # (B, Cin) f32

    # ------------------ kernel 1: fused channel-attention MLP -------------------
    # NOTE: BatchNorm uses train-mode biased batch statistics (PyTorch default
    # training semantics). With B == 1 the variance is 0 and the output depends
    # entirely on eps -- run with B >= 2.
    def attention_kernel(p_ref, w1_ref, g_ref, b_ref, w2_ref, b2_ref, ca_ref):
        a = jnp.dot(p_ref[...], w1_ref[...],
                    preferred_element_type=jnp.float32)          # fc1 (1x1 conv, no bias)
        mu = jnp.mean(a, axis=0, keepdims=True)                  # BatchNorm2d, batch stats
        var = jnp.mean((a - mu) ** 2, axis=0, keepdims=True)     # biased variance
        a = (a - mu) * jax.lax.rsqrt(var + eps) * g_ref[...] + b_ref[...]
        a = jnp.maximum(a, 0.0)                                  # ReLU
        a = jnp.dot(a, w2_ref[...],
                    preferred_element_type=jnp.float32) + b2_ref[...]        # fc2 (1x1, bias)
        ca_ref[...] = 1.0 / (1.0 + jnp.exp(-a))                  # sigmoid -> (B, Cin)

    ca = pl.pallas_call(
        attention_kernel,
        out_shape=jax.ShapeDtypeStruct((B, Cin), jnp.float32),
    )(pooled,
      params["fc1_w"],
      params["bn_g"].reshape(1, A), params["bn_b"].reshape(1, A),
      params["fc2_w"], params["fc2_b"].reshape(1, Cin))
    ca3 = ca.reshape(B, 1, Cin)

    # ------ kernel 2: KxK 'same' conv with attention folded into the weights ------
    def conv_kernel(xp_ref, ca_ref, w_ref, o_ref):
        # Fold channel attention into the weights: conv(x*ca, w) == conv(x, w*ca_ci).
        ws = (w_ref[...] * ca_ref[0][None, :, :]).astype(jnp.bfloat16)   # (T, Cout, Cin)
        xb = xp_ref[0]                                                   # (Cin, Hp, Wp) bf16
        acc = jnp.zeros((Cout, P), jnp.float32)
        # K*K unrolled MXU dots; taps sliced straight from the padded block,
        # channels-first so the result is (Cout, P) with no transpose.
        for dy in range(K):
            for dx in range(K):
                tap = xb[:, dy:dy + H, dx:dx + W].reshape(Cin, P)        # (Cin, P) bf16
                acc = acc + jnp.dot(ws[dy * K + dx], tap,
                                    preferred_element_type=jnp.float32)
        o_ref[0] = acc                                                   # lane-dense (Cout, P) store

    out_bcp = pl.pallas_call(
        conv_kernel,
        out_shape=jax.ShapeDtypeStruct((B, Cout, P), jnp.float32),
        grid=(B,),
        in_specs=[
            pl.BlockSpec((1, Cin, Hp, Wp), lambda b: (b, 0, 0, 0)),
            pl.BlockSpec((1, 1, Cin), lambda b: (b, 0, 0)),
            pl.BlockSpec((T, Cout, Cin), lambda b: (0, 0, 0)),
        ],
        out_specs=pl.BlockSpec((1, Cout, P), lambda b: (b, 0, 0)),
        compiler_params=pltpu.CompilerParams(
            dimension_semantics=("parallel",),          # batch sharded across v7x's 2 TCs
            vmem_limit_bytes=48 * 1024 * 1024,          # explicit; re-derive per gen for big tiles
        ),
    )(xp, ca3, w_taps)

    # Free reshape to the PyTorch NCHW output layout.
    return out_bcp.reshape(B, Cout, H, W)


# ----------------------------------------------------------------------------
# Pure-JAX reference (same math, for validation)
# ----------------------------------------------------------------------------

def odconv_reference(params, x, eps=1e-5):
    pooled = jnp.mean(x, axis=(2, 3))                            # adaptive avg pool -> (B, Cin)
    a = pooled @ params["fc1_w"]
    mu = jnp.mean(a, axis=0, keepdims=True)
    var = jnp.mean((a - mu) ** 2, axis=0, keepdims=True)
    a = (a - mu) * jax.lax.rsqrt(var + eps) * params["bn_g"] + params["bn_b"]
    a = jnp.maximum(a, 0.0)
    ca = jax.nn.sigmoid(a @ params["fc2_w"] + params["fc2_b"])   # (B, Cin)
    xw = x * ca[:, :, None, None]
    w = jnp.sum(params["kernels"], axis=0)                       # (Cout, Cin, K, K)
    return jax.lax.conv_general_dilated(
        xw, w, window_strides=(1, 1), padding="SAME",
        dimension_numbers=("NCHW", "OIHW", "NCHW"))


# ----------------------------------------------------------------------------
# Deterministic synthetic parameters
# ----------------------------------------------------------------------------

def init_params(key, in_planes, out_planes, kernel_size, kernel_num=4, reduction=0.0625):
    att = max(int(in_planes * reduction), 16)                    # attention_channel
    ks = jax.random.split(key, 6)

    def nrm(k, shape, scale):
        return (scale * jax.random.normal(k, shape, jnp.float32)).astype(jnp.float32)

    return {
        "fc1_w": nrm(ks[0], (in_planes, att), 1.0 / math.sqrt(in_planes)),
        "bn_g": 1.0 + nrm(ks[1], (att,), 0.1),
        "bn_b": nrm(ks[2], (att,), 0.1),
        "fc2_w": nrm(ks[3], (att, in_planes), 1.0 / math.sqrt(att)),
        "fc2_b": nrm(ks[4], (in_planes,), 0.02),
        "kernels": nrm(ks[5], (kernel_num, out_planes, in_planes, kernel_size, kernel_size),
                       math.sqrt(2.0 / (out_planes * kernel_size * kernel_size))),
    }


# ----------------------------------------------------------------------------
# Main
# ----------------------------------------------------------------------------

if __name__ == "__main__":
    B, Cin, H, W = 2, 16, 16, 16
    Cout, K, kernel_num = 32, 3, 4

    key = jax.random.PRNGKey(0)
    kx, kp = jax.random.split(key)
    x = jax.random.normal(kx, (B, Cin, H, W), jnp.float32)       # NCHW, like PyTorch
    params = init_params(kp, Cin, Cout, K, kernel_num)

    out = jax.block_until_ready(jax.jit(odconv_forward)(params, x))
    ref = jax.block_until_ready(jax.jit(odconv_reference)(params, x))

    assert out.shape == (B, Cout, H, W), out.shape
    assert bool(jnp.all(jnp.isfinite(out)))
    max_err = float(jnp.max(jnp.abs(out - ref)))
    # Tolerance covers bf16 MXU operands (f32 accumulation) vs the f32/XLA
    # default-precision reference conv; observed error is O(1e-3).
    assert max_err < 5e-2, max_err
    print("KERNEL_OK")
</pallas_src>

<mosaic_0001>
module attributes {stable_mosaic.version = 11 : i64} {
  func.func @attention_kernel(%arg0: memref<2x16xf32, #tpu.memory_space<vmem>>, %arg1: memref<16x16xf32, #tpu.memory_space<vmem>>, %arg2: memref<1x16xf32, #tpu.memory_space<vmem>>, %arg3: memref<1x16xf32, #tpu.memory_space<vmem>>, %arg4: memref<16x16xf32, #tpu.memory_space<vmem>>, %arg5: memref<1x16xf32, #tpu.memory_space<vmem>>, %arg6: memref<2x16xf32, #tpu.memory_space<vmem>>) attributes {dimension_semantics = [], scalar_prefetch = 0 : i64, scratch_operands = 0 : i64, tpu.core_type = #tpu.core_type<tc>} {
    %c0 = arith.constant 0 : index
    %c0_0 = arith.constant 0 : index
    %0 = vector.load %arg0[%c0, %c0_0] : memref<2x16xf32, #tpu.memory_space<vmem>>, vector<2x16xf32>
    %c0_1 = arith.constant 0 : index
    %c0_2 = arith.constant 0 : index
    %1 = vector.load %arg1[%c0_1, %c0_2] : memref<16x16xf32, #tpu.memory_space<vmem>>, vector<16x16xf32>
    %cst = arith.constant dense<0.000000e+00> : vector<2x16xf32>
    %2 = tpu.matmul %0, %1, %cst {dimension_numbers = #tpu.dot_dimension_numbers<[1], [0], [0], [1], [0, 0, 1, 1], [], []>} : vector<2x16xf32>, vector<16x16xf32>, vector<2x16xf32> -> vector<2x16xf32>
    %cst_3 = arith.constant dense<0.000000e+00> : vector<16xf32>
    %3 = vector.multi_reduction <add>, %2, %cst_3 [0] : vector<2x16xf32> to vector<16xf32>
    %4 = vector.shape_cast %3 : vector<16xf32> to vector<1x16xf32>
    %cst_4 = arith.constant 2.000000e+00 : f32
    %5 = vector.broadcast %cst_4 : f32 to vector<1x16xf32>
    %6 = arith.divf %4, %5 : vector<1x16xf32>
    %7 = vector.broadcast %6 : vector<1x16xf32> to vector<2x16xf32>
    %8 = arith.subf %2, %7 : vector<2x16xf32>
    %9 = arith.mulf %8, %8 : vector<2x16xf32>
    %cst_5 = arith.constant dense<0.000000e+00> : vector<16xf32>
    %10 = vector.multi_reduction <add>, %9, %cst_5 [0] : vector<2x16xf32> to vector<16xf32>
    %11 = vector.shape_cast %10 : vector<16xf32> to vector<1x16xf32>
    %cst_6 = arith.constant 2.000000e+00 : f32
    %12 = vector.broadcast %cst_6 : f32 to vector<1x16xf32>
    %13 = arith.divf %11, %12 : vector<1x16xf32>
    %14 = vector.broadcast %6 : vector<1x16xf32> to vector<2x16xf32>
    %15 = arith.subf %2, %14 : vector<2x16xf32>
    %cst_7 = arith.constant 9.99999974E-6 : f32
    %16 = vector.broadcast %cst_7 : f32 to vector<1x16xf32>
    %17 = arith.addf %13, %16 : vector<1x16xf32>
    %18 = math.rsqrt %17 : vector<1x16xf32>
    %19 = vector.broadcast %18 : vector<1x16xf32> to vector<2x16xf32>
    %20 = arith.mulf %15, %19 : vector<2x16xf32>
    %c0_8 = arith.constant 0 : index
    %c0_9 = arith.constant 0 : index
    %21 = vector.load %arg2[%c0_8, %c0_9] : memref<1x16xf32, #tpu.memory_space<vmem>>, vector<1x16xf32>
    %22 = vector.broadcast %21 : vector<1x16xf32> to vector<2x16xf32>
    %23 = arith.mulf %20, %22 : vector<2x16xf32>
    %c0_10 = arith.constant 0 : index
    %c0_11 = arith.constant 0 : index
    %24 = vector.load %arg3[%c0_10, %c0_11] : memref<1x16xf32, #tpu.memory_space<vmem>>, vector<1x16xf32>
    %25 = vector.broadcast %24 : vector<1x16xf32> to vector<2x16xf32>
    %26 = arith.addf %23, %25 : vector<2x16xf32>
    %cst_12 = arith.constant 0.000000e+00 : f32
    %27 = vector.broadcast %cst_12 : f32 to vector<2x16xf32>
    %28 = arith.maximumf %26, %27 : vector<2x16xf32>
    %c0_13 = arith.constant 0 : index
    %c0_14 = arith.constant 0 : index
    %29 = vector.load %arg4[%c0_13, %c0_14] : memref<16x16xf32, #tpu.memory_space<vmem>>, vector<16x16xf32>
    %cst_15 = arith.constant dense<0.000000e+00> : vector<2x16xf32>
    %30 = tpu.matmul %28, %29, %cst_15 {dimension_numbers = #tpu.dot_dimension_numbers<[1], [0], [0], [1], [0, 0, 1, 1], [], []>} : vector<2x16xf32>, vector<16x16xf32>, vector<2x16xf32> -> vector<2x16xf32>
    %c0_16 = arith.constant 0 : index
    %c0_17 = arith.constant 0 : index
    %31 = vector.load %arg5[%c0_16, %c0_17] : memref<1x16xf32, #tpu.memory_space<vmem>>, vector<1x16xf32>
    %32 = vector.broadcast %31 : vector<1x16xf32> to vector<2x16xf32>
    %33 = arith.addf %30, %32 : vector<2x16xf32>
    %cst_18 = arith.constant 0.000000e+00 : f32
    %34 = vector.broadcast %cst_18 : f32 to vector<2x16xf32>
    %35 = arith.subf %34, %33 : vector<2x16xf32>
    %36 = math.exp %35 : vector<2x16xf32>
    %cst_19 = arith.constant 1.000000e+00 : f32
    %37 = vector.broadcast %cst_19 : f32 to vector<2x16xf32>
    %38 = arith.addf %37, %36 : vector<2x16xf32>
    %cst_20 = arith.constant 1.000000e+00 : f32
    %39 = vector.broadcast %cst_20 : f32 to vector<2x16xf32>
    %40 = arith.divf %39, %38 : vector<2x16xf32>
    %c0_21 = arith.constant 0 : index
    %c0_22 = arith.constant 0 : index
    %41 = vector.load %arg6[%c0_21, %c0_22] : memref<2x16xf32, #tpu.memory_space<vmem>>, vector<2x16xf32>
    tpu.vector_store %arg6[%c0_21, %c0_22], %40 {strides = array<i32>} : memref<2x16xf32, #tpu.memory_space<vmem>>, vector<2x16xf32>,
    return
  }
}

module attributes {stable_mosaic.version = 11 : i64} {
  func.func @conv_kernel(%arg0: i32, %arg1: memref<1x16x18x18xbf16, #tpu.memory_space<vmem>>, %arg2: memref<1x1x16xf32, #tpu.memory_space<vmem>>, %arg3: memref<9x32x16xf32, #tpu.memory_space<vmem>>, %arg4: memref<1x32x256xf32, #tpu.memory_space<vmem>>) attributes {dimension_semantics = [#tpu.dimension_semantics<parallel>], iteration_bounds = array<i64: 2>, scalar_prefetch = 0 : i64, scratch_operands = 0 : i64, tpu.core_type = #tpu.core_type<tc>, window_params = [{transform_indices = @transform_0, window_bounds = array<i64: 1, 16, 18, 18>}, {transform_indices = @transform_1, window_bounds = array<i64: 1, 1, 16>}, {pipeline_mode = #tpu.pipeline_mode<synchronous>, transform_indices = @transform_2, window_bounds = array<i64: 9, 32, 16>}, {transform_indices = @transform_3, window_bounds = array<i64: 1, 32, 256>}]} {
    %c0 = arith.constant 0 : index
    %c0_0 = arith.constant 0 : index
    %c0_1 = arith.constant 0 : index
    %0 = vector.load %arg3[%c0, %c0_0, %c0_1] : memref<9x32x16xf32, #tpu.memory_space<vmem>>, vector<9x32x16xf32>
    %c0_2 = arith.constant 0 : index
    %c0_3 = arith.constant 0 : index
    %c0_4 = arith.constant 0 : index
    %1 = vector.load %arg2[%c0_2, %c0_3, %c0_4] : memref<1x1x16xf32, #tpu.memory_space<vmem>>, vector<1x1x16xf32>
    %2 = vector.shape_cast %1 : vector<1x1x16xf32> to vector<1x16xf32>
    %3 = vector.shape_cast %2 : vector<1x16xf32> to vector<1x1x16xf32>
    %4 = vector.broadcast %3 : vector<1x1x16xf32> to vector<9x32x16xf32>
    %5 = arith.mulf %0, %4 : vector<9x32x16xf32>
    %6 = arith.truncf %5 : vector<9x32x16xf32> to vector<9x32x16xbf16>
    %c0_5 = arith.constant 0 : index
    %c0_6 = arith.constant 0 : index
    %c0_7 = arith.constant 0 : index
    %c0_8 = arith.constant 0 : index
    %7 = vector.load %arg1[%c0_5, %c0_6, %c0_7, %c0_8] : memref<1x16x18x18xbf16, #tpu.memory_space<vmem>>, vector<1x16x18x18xbf16>
    %8 = vector.shape_cast %7 : vector<1x16x18x18xbf16> to vector<16x18x18xbf16>
    %cst = arith.constant 0.000000e+00 : f32
    %9 = vector.broadcast %cst : f32 to vector<32x256xf32>
    %10 = vector.extract_strided_slice %8 {offsets = [0, 0, 0], sizes = [16, 16, 16], strides = [1, 1, 1]} : vector<16x18x18xbf16> to vector<16x16x16xbf16>
    %11 = vector.shape_cast %10 : vector<16x16x16xbf16> to vector<16x256xbf16>
    %12 = vector.extract_strided_slice %6 {offsets = [0, 0, 0], sizes = [1, 32, 16], strides = [1, 1, 1]} : vector<9x32x16xbf16> to vector<1x32x16xbf16>
    %13 = vector.shape_cast %12 : vector<1x32x16xbf16> to vector<32x16xbf16>
    %cst_9 = arith.constant dense<0.000000e+00> : vector<32x256xf32>
    %14 = tpu.matmul %13, %11, %cst_9 {dimension_numbers = #tpu.dot_dimension_numbers<[1], [0], [0], [1], [0, 0, 1, 1], [], []>} : vector<32x16xbf16>, vector<16x256xbf16>, vector<32x256xf32> -> vector<32x256xf32>
    %15 = arith.addf %9, %14 : vector<32x256xf32>
    %16 = vector.extract_strided_slice %8 {offsets = [0, 0, 1], sizes = [16, 16, 16], strides = [1, 1, 1]} : vector<16x18x18xbf16> to vector<16x16x16xbf16>
    %17 = vector.shape_cast %16 : vector<16x16x16xbf16> to vector<16x256xbf16>
    %18 = vector.extract_strided_slice %6 {offsets = [1, 0, 0], sizes = [1, 32, 16], strides = [1, 1, 1]} : vector<9x32x16xbf16> to vector<1x32x16xbf16>
    %19 = vector.shape_cast %18 : vector<1x32x16xbf16> to vector<32x16xbf16>
    %cst_10 = arith.constant dense<0.000000e+00> : vector<32x256xf32>
    %20 = tpu.matmul %19, %17, %cst_10 {dimension_numbers = #tpu.dot_dimension_numbers<[1], [0], [0], [1], [0, 0, 1, 1], [], []>} : vector<32x16xbf16>, vector<16x256xbf16>, vector<32x256xf32> -> vector<32x256xf32>
    %21 = arith.addf %15, %20 : vector<32x256xf32>
    %22 = vector.extract_strided_slice %8 {offsets = [0, 0, 2], sizes = [16, 16, 16], strides = [1, 1, 1]} : vector<16x18x18xbf16> to vector<16x16x16xbf16>
    %23 = vector.shape_cast %22 : vector<16x16x16xbf16> to vector<16x256xbf16>
    %24 = vector.extract_strided_slice %6 {offsets = [2, 0, 0], sizes = [1, 32, 16], strides = [1, 1, 1]} : vector<9x32x16xbf16> to vector<1x32x16xbf16>
    %25 = vector.shape_cast %24 : vector<1x32x16xbf16> to vector<32x16xbf16>
    %cst_11 = arith.constant dense<0.000000e+00> : vector<32x256xf32>
    %26 = tpu.matmul %25, %23, %cst_11 {dimension_numbers = #tpu.dot_dimension_numbers<[1], [0], [0], [1], [0, 0, 1, 1], [], []>} : vector<32x16xbf16>, vector<16x256xbf16>, vector<32x256xf32> -> vector<32x256xf32>
    %27 = arith.addf %21, %26 : vector<32x256xf32>
    %28 = vector.extract_strided_slice %8 {offsets = [0, 1, 0], sizes = [16, 16, 16], strides = [1, 1, 1]} : vector<16x18x18xbf16> to vector<16x16x16xbf16>
    %29 = vector.shape_cast %28 : vector<16x16x16xbf16> to vector<16x256xbf16>
    %30 = vector.extract_strided_slice %6 {offsets = [3, 0, 0], sizes = [1, 32, 16], strides = [1, 1, 1]} : vector<9x32x16xbf16> to vector<1x32x16xbf16>
    %31 = vector.shape_cast %30 : vector<1x32x16xbf16> to vector<32x16xbf16>
    %cst_12 = arith.constant dense<0.000000e+00> : vector<32x256xf32>
    %32 = tpu.matmul %31, %29, %cst_12 {dimension_numbers = #tpu.dot_dimension_numbers<[1], [0], [0], [1], [0, 0, 1, 1], [], []>} : vector<32x16xbf16>, vector<16x256xbf16>, vector<32x256xf32> -> vector<32x256xf32>
    %33 = arith.addf %27, %32 : vector<32x256xf32>
    %34 = vector.extract_strided_slice %8 {offsets = [0, 1, 1], sizes = [16, 16, 16], strides = [1, 1, 1]} : vector<16x18x18xbf16> to vector<16x16x16xbf16>
    %35 = vector.shape_cast %34 : vector<16x16x16xbf16> to vector<16x256xbf16>
    %36 = vector.extract_strided_slice %6 {offsets = [4, 0, 0], sizes = [1, 32, 16], strides = [1, 1, 1]} : vector<9x32x16xbf16> to vector<1x32x16xbf16>
    %37 = vector.shape_cast %36 : vector<1x32x16xbf16> to vector<32x16xbf16>
    %cst_13 = arith.constant dense<0.000000e+00> : vector<32x256xf32>
    %38 = tpu.matmul %37, %35, %cst_13 {dimension_numbers = #tpu.dot_dimension_numbers<[1], [0], [0], [1], [0, 0, 1, 1], [], []>} : vector<32x16xbf16>, vector<16x256xbf16>, vector<32x256xf32> -> vector<32x256xf32>
    %39 = arith.addf %33, %38 : vector<32x256xf32>
    %40 = vector.extract_strided_slice %8 {offsets = [0, 1, 2], sizes = [16, 16, 16], strides = [1, 1, 1]} : vector<16x18x18xbf16> to vector<16x16x16xbf16>
    %41 = vector.shape_cast %40 : vector<16x16x16xbf16> to vector<16x256xbf16>
    %42 = vector.extract_strided_slice %6 {offsets = [5, 0, 0], sizes = [1, 32, 16], strides = [1, 1, 1]} : vector<9x32x16xbf16> to vector<1x32x16xbf16>
    %43 = vector.shape_cast %42 : vector<1x32x16xbf16> to vector<32x16xbf16>
    %cst_14 = arith.constant dense<0.000000e+00> : vector<32x256xf32>
    %44 = tpu.matmul %43, %41, %cst_14 {dimension_numbers = #tpu.dot_dimension_numbers<[1], [0], [0], [1], [0, 0, 1, 1], [], []>} : vector<32x16xbf16>, vector<16x256xbf16>, vector<32x256xf32> -> vector<32x256xf32>
    %45 = arith.addf %39, %44 : vector<32x256xf32>
    %46 = vector.extract_strided_slice %8 {offsets = [0, 2, 0], sizes = [16, 16, 16], strides = [1, 1, 1]} : vector<16x18x18xbf16> to vector<16x16x16xbf16>
    %47 = vector.shape_cast %46 : vector<16x16x16xbf16> to vector<16x256xbf16>
    %48 = vector.extract_strided_slice %6 {offsets = [6, 0, 0], sizes = [1, 32, 16], strides = [1, 1, 1]} : vector<9x32x16xbf16> to vector<1x32x16xbf16>
    %49 = vector.shape_cast %48 : vector<1x32x16xbf16> to vector<32x16xbf16>
    %cst_15 = arith.constant dense<0.000000e+00> : vector<32x256xf32>
    %50 = tpu.matmul %49, %47, %cst_15 {dimension_numbers = #tpu.dot_dimension_numbers<[1], [0], [0], [1], [0, 0, 1, 1], [], []>} : vector<32x16xbf16>, vector<16x256xbf16>, vector<32x256xf32> -> vector<32x256xf32>
    %51 = arith.addf %45, %50 : vector<32x256xf32>
    %52 = vector.extract_strided_slice %8 {offsets = [0, 2, 1], sizes = [16, 16, 16], strides = [1, 1, 1]} : vector<16x18x18xbf16> to vector<16x16x16xbf16>
    %53 = vector.shape_cast %52 : vector<16x16x16xbf16> to vector<16x256xbf16>
    %54 = vector.extract_strided_slice %6 {offsets = [7, 0, 0], sizes = [1, 32, 16], strides = [1, 1, 1]} : vector<9x32x16xbf16> to vector<1x32x16xbf16>
    %55 = vector.shape_cast %54 : vector<1x32x16xbf16> to vector<32x16xbf16>
    %cst_16 = arith.constant dense<0.000000e+00> : vector<32x256xf32>
    %56 = tpu.matmul %55, %53, %cst_16 {dimension_numbers = #tpu.dot_dimension_numbers<[1], [0], [0], [1], [0, 0, 1, 1], [], []>} : vector<32x16xbf16>, vector<16x256xbf16>, vector<32x256xf32> -> vector<32x256xf32>
    %57 = arith.addf %51, %56 : vector<32x256xf32>
    %58 = vector.extract_strided_slice %8 {offsets = [0, 2, 2], sizes = [16, 16, 16], strides = [1, 1, 1]} : vector<16x18x18xbf16> to vector<16x16x16xbf16>
    %59 = vector.shape_cast %58 : vector<16x16x16xbf16> to vector<16x256xbf16>
    %60 = vector.extract_strided_slice %6 {offsets = [8, 0, 0], sizes = [1, 32, 16], strides = [1, 1, 1]} : vector<9x32x16xbf16> to vector<1x32x16xbf16>
    %61 = vector.shape_cast %60 : vector<1x32x16xbf16> to vector<32x16xbf16>
    %cst_17 = arith.constant dense<0.000000e+00> : vector<32x256xf32>
    %62 = tpu.matmul %61, %59, %cst_17 {dimension_numbers = #tpu.dot_dimension_numbers<[1], [0], [0], [1], [0, 0, 1, 1], [], []>} : vector<32x16xbf16>, vector<16x256xbf16>, vector<32x256xf32> -> vector<32x256xf32>
    %63 = arith.addf %57, %62 : vector<32x256xf32>
    %c0_18 = arith.constant 0 : index
    %c0_19 = arith.constant 0 : index
    %c0_20 = arith.constant 0 : index
    %64 = vector.load %arg4[%c0_18, %c0_19, %c0_20] : memref<1x32x256xf32, #tpu.memory_space<vmem>>, vector<1x32x256xf32>
    %65 = vector.shape_cast %64 : vector<1x32x256xf32> to vector<32x256xf32>
    %66 = vector.shape_cast %63 : vector<32x256xf32> to vector<1x32x256xf32>
    tpu.vector_store %arg4[%c0_18, %c0_19, %c0_20], %66 {strides = array<i32>} : memref<1x32x256xf32, #tpu.memory_space<vmem>>, vector<1x32x256xf32>,
    return
  }
  func.func @transform_0(%arg0: i32) -> (i32, i32, i32, i32) {
    %c0_i32 = arith.constant 0 : i32
    %c0_i32_0 = arith.constant 0 : i32
    %c0_i32_1 = arith.constant 0 : i32
    %c0_i32_2 = arith.constant 0 : i32
    return %arg0, %c0_i32, %c0_i32_0, %c0_i32_1 : i32, i32, i32, i32
  }
  func.func @transform_1(%arg0: i32) -> (i32, i32, i32) {
    %c0_i32 = arith.constant 0 : i32
    %c0_i32_0 = arith.constant 0 : i32
    %c0_i32_1 = arith.constant 0 : i32
    return %arg0, %c0_i32, %c0_i32_0 : i32, i32, i32
  }
  func.func @transform_2(%arg0: i32) -> (i32, i32, i32) {
    %c0_i32 = arith.constant 0 : i32
    %c0_i32_0 = arith.constant 0 : i32
    %c0_i32_1 = arith.constant 0 : i32
    %c0_i32_2 = arith.constant 0 : i32
    return %c0_i32, %c0_i32_0, %c0_i32_1 : i32, i32, i32
  }
  func.func @transform_3(%arg0: i32) -> (i32, i32, i32) {
    %c0_i32 = arith.constant 0 : i32
    %c0_i32_0 = arith.constant 0 : i32
    %c0_i32_1 = arith.constant 0 : i32
    return %arg0, %c0_i32, %c0_i32_0 : i32, i32, i32
  }
}

</mosaic_0001>

<bundles_post_ra>
// kernel: odconv_forward.2
= control target key start
LH: loop header
LB: loop body
LE: loop exit
PB: predicated region body
PF: predicated region fallthrough
CT: control target
= control target key end

     0   :  { %vm26_vm0 = vcmask 130048   ;;  %v166_v3 = vmov 2.0   ;;  %vm50_vm1 = vcmask 123904   ;;  %s234_s1 = inlined_call_operand.vmem [shape: f32[16,16], index: 1, kind: input, shape index: {}]   ;;  %s235_s0 = inlined_call_operand.vmem [shape: f32[2,16], index: 0, kind: input, shape index: {}]   ;;  %s236_s2 = inlined_call_operand.vmem [shape: f32[1,16], index: 2, kind: input, shape index: {}]   ;;  %s237_s3 = inlined_call_operand.vmem [shape: f32[1,16], index: 3, kind: input, shape index: {}]   ;;  %s238_s5 = inlined_call_operand.vmem [shape: f32[1,16], index: 5, kind: input, shape index: {}]   ;;  %s239_s4 = inlined_call_operand.vmem [shape: f32[16,16], index: 4, kind: input, shape index: {}]   ;;  %s240_s6 = inlined_call_operand.vmem [shape: f32[2,16], index: 6, kind: output, shape index: {}]  }
   0x1   :  { %v25_v0 = vld [vmem:[%s234_s1 + $0x8] sm:$0xff]  ;;  %v24_v1 = vld [vmem:[%s234_s1] sm:$0xff]  ;;  %158 = vrcp.f32 %v166_v3 }
   0x2   :  { %44 = vmatpush.msra.mxu0 %v25_v0  ;;  %v23_v2 = vld [vmem:[%s235_s0] sm:$0x3]  ;;  %v100_v25 = vld [vmem:[%s239_s4 + $0x8] sm:$0xff] }
   0x3   :  { %v99_v26 = vld [vmem:[%s239_s4] sm:$0xff]  ;;  %122 = vmatpush.msra.mxu1 %v100_v25 }
   0x4   :  { %45 = vmatpush.msra.mxu0 %v24_v1  ;;  %v155_v38 = vld [vmem:[%s236_s2] ss:$0 sm:$0xff] }
   0x5   :  { %152 = vmatmul.msk.f32.vlgmr.msra.gmra.mxu0 %vm26_vm0, %v23_v2  ;;  %123 = vmatpush.msra.mxu1 %v99_v26  ;;  %v156_v41 = vld [vmem:[%s237_s3] ss:$0 sm:$0xff] }
   0x6   :  { %v157_v45 = vld [vmem:[%s238_s5] ss:$0 sm:$0xff] }
   0x7   :  { %v159_v4 = vpop.eup %158 }
   0x8   :  { %v59_v5 = vmul.f32 2.0, %v159_v4  ;;  %vm63_vm2 = vweird.f32 %v159_v4 }
   0xa   :  { %v60_v6 = vsub.f32 1.0, %v59_v5 }
   0xc   :  { %v61_v10 = vmul.f32 %v159_v4, %v60_v6 }
   0xe   :  { %v62_v13 = vadd.f32 %v159_v4, %v61_v10 }
  0x10   :  { %v64_v16 = vsel %vm63_vm2, %v159_v4, %v62_v13 }
  0x82   :  { %v47_v7 = vpop.f32.mrf.mxu0 }
  0x83   :  { %v51_v8 = vsel %vm50_vm1, %v47_v7, 0.0 }
  0x84   :  { %v52_v9 = vrot.slane %v51_v8, 4 }
  0x86   :  { %v53_v11 = vadd.f32 %v52_v9, %v51_v8 }
  0x88   :  { %v54_v12 = vrot.slane %v53_v11, 2 }
  0x8a   :  { %v55_v14 = vadd.f32 %v54_v12, %v53_v11 }
  0x8c   :  { %v56_v15 = vrot.slane %v55_v14, 1 }
  0x8e   :  { %v57_v17 = vadd.f32 %v56_v15, %v55_v14 }
  0x90   :  { %v65_v18 = vmul.f32 %v64_v16, %v57_v17 }
  0x92   :  { %v66_v19 = vsub.f32 %v47_v7, %v65_v18 }
  0x94   :  { %v67_v20 = vmul.f32 %v66_v19, %v66_v19 }
  0x96   :  { %v68_v21 = vsel %vm50_vm1, %v67_v20, 0.0 }
  0x97   :  { %v69_v22 = vrot.slane %v68_v21, 4 }
  0x99   :  { %v70_v23 = vadd.f32 %v69_v22, %v68_v21 }
  0x9b   :  { %v71_v24 = vrot.slane %v70_v23, 2 }
  0x9d   :  { %v72_v27 = vadd.f32 %v71_v24, %v70_v23 }
  0x9f   :  { %v73_v28 = vrot.slane %v72_v27, 1 }
  0xa1   :  { %v74_v29 = vadd.f32 %v73_v28, %v72_v27 }
  0xa3   :  { %v75_v30 = vmul.f32 %v74_v29, %v64_v16 }
  0xa5   :  { %v76_v31 = vadd.f32 1e-05, %v75_v30 }
  0xa7   :  { %160 = vrsqrt.f32 %v76_v31  ;;  %vm83_vm4 = vweird.f32 %v76_v31 }
  0xad   :  { %v161_v32 = vpop.eup %160 }
  0xae   :  { %v78_v33 = vmul.f32 %v161_v32, %v76_v31  ;;  %vm84_vm3 = vweird.f32 %v161_v32 }
  0xaf   :  { %vm85_vm5 = vmor %vm83_vm4, %vm84_vm3 }
  0xb0   :  { %v79_v34 = vmul.f32 %v161_v32, %v78_v33 }
  0xb2   :  { %v80_v35 = vmul.f32 0.5, %v79_v34 }
  0xb4   :  { %v81_v36 = vsub.f32 1.5, %v80_v35 }
  0xb6   :  { %v82_v37 = vmul.f32 %v161_v32, %v81_v36 }
  0xb8   :  { %v86_v39 = vsel %vm85_vm5, %v161_v32, %v82_v37 }
  0xb9   :  { %v87_v40 = vmul.f32 %v86_v39, %v66_v19 }
  0xbb   :  { %v92_v42 = vmul.f32 %v155_v38, %v87_v40 }
  0xbd   :  { %v97_v43 = vadd.f32 %v156_v41, %v92_v42 }
  0xbf   :  { %v98_v44 = vmax.f32 %v97_v43, 0.0 }
  0xc1   :  { %153 = vmatmul.msk.f32.vlgmr.msra.gmra.mxu1 %vm26_vm0, %v98_v44 }
 0x13e   :  { %v125_v46 = vpop.f32.mrf.mxu1 }
 0x13f   :  { %v126_v47 = vadd.f32 %v157_v45, %v125_v46 }
 0x141   :  { %v128_v48 = vsub.f32 0.0, %v126_v47 }
 0x143   :  { %v129_v49 = vmul.f32 1.442695, %v128_v48 }
 0x145   :  { %162 = vpow2.f32 %v129_v49 }
 0x14b   :  { %v163_v50 = vpop.eup %162 }
 0x14c   :  { %v131_v51 = vadd.f32 1.0, %v163_v50 }
 0x14e   :  { %164 = vrcp.f32 %v131_v51  ;;  %v143_v55 = vand.u32 2147483648, %v131_v51  ;;  %v141_v57 = vand.u32 2147483647, %v131_v51  ;;  %vm137_vm7 = vweird.f32 %v131_v51 }
 0x150   :  { %v144_v59 = vor.u32 1.1754944e-38, %v143_v55  ;;  %vm142_vm9 = vcmp.eq.f32.partialorder %v141_v57, 8.507059e+37 }
 0x154   :  { %v165_v52 = vpop.eup %164 }
 0x155   :  { %v133_v53 = vmul.f32 %v165_v52, %v131_v51  ;;  %vm138_vm6 = vweird.f32 %v165_v52 }
 0x156   :  { %vm139_vm8 = vmor %vm137_vm7, %vm138_vm6 }
 0x157   :  { %v134_v54 = vsub.f32 1.0, %v133_v53 }
 0x159   :  { %v135_v56 = vmul.f32 %v165_v52, %v134_v54 }
 0x15b   :  { %v136_v58 = vadd.f32 %v165_v52, %v135_v56 }
 0x15d   :  { %v140_v60 = vsel %vm139_vm8, %v165_v52, %v136_v58 }
 0x15e   :  { %v145_v61 = vsel %vm142_vm9, %v144_v59, %v140_v60 }
 0x15f   :  { %147 = vst.msk [vmem:[%s240_s6] sm:$0x3] %vm50_vm1, %v145_v61 }

// kernel: odconv_forward.3
= control target key start
LH: loop header
LB: loop body
LE: loop exit
PB: predicated region body
PF: predicated region fallthrough
CT: control target
= control target key end

     0   :  { %s6233_s12 = smov 0   ;;  %s9948_s0 = inlined_call_operand.vmem [shape: bf16[2,16,18,18], index: 0, kind: input, shape index: {}]   ;;  %s9949_s1 = inlined_call_operand.vmem [shape: f32[2,1,16], index: 1, kind: input, shape index: {}]   ;;  %s9950_s2 = inlined_call_operand.vmem [shape: f32[9,32,16], index: 2, kind: input, shape index: {}]   ;;  %s9951_s3 = inlined_call_operand.vmem [shape: f32[2,32,256], index: 3, kind: output, shape index: {}]  }
   0x1 LB: > { %s6010_s13 = sadd.s32 4294967295, %s6200_s12   ;;  %p6014_p0 = scmp.ge.s32.totalorder %s6200_s12, 1  ;;  %s6200_s12 = sphi %s6233_s12, %s13_s12  }
   0x2   : > { %p145_p1 = scmp.lt.s32.totalorder %s6200_s12, 3 }
   0x4   : > { %p146_p2 = pnand %p6014_p0, %p145_p1 }
   0x6   : > { %149 = sbr.rel (%p146_p2) target bundleno = 1858 (0x742), region = 32 }
   0xb   : > { %p172_p3 = scmp.lt.s32.totalorder %s6010_s13, 1  ;;  %v6202_v0 = vmov 1983009808   ;;  %v6203_v2 = vmov 1934713408   ;;  %vm347_vm0 = vcmask 1047556  }
   0xc   : > { %v350_v1 = vunpack.c.l.s4 %v6202_v0  ;;  %v364_v3 = vunpack.c.l.s4 %v6203_v2  ;;  %s6204_s21 = smov 64   ;;  %s6205_s22 = smov 80   ;;  %vm743_vm1 = vcmask 130048   ;;  %vm747_vm2 = vcmask 261120  }
   0xd   : > { %s10332_s13 = smov (!%p172_p3, %s6010_s13), 1  ;;  %s6206_s23 = smov 16   ;;  %vm750_vm3 = vcmask 392192   ;;  %vm753_vm4 = vcmask 523264   ;;  %vm756_vm5 = vcmask 654336   ;;  %vm759_vm6 = vcmask 785408  }
   0xe   : > { %s6075_s14 = smul.u32 192, %s10332_s13  ;;  %s6248_s17 = scalar_lea.vmem %s9949_s1, %s10332_s13  ;;  %v6297_v18 = vunpack.c.0.s8 %v350_v1  ;;  %v6299_v19 = vunpack.c.0.s8 %v364_v3  ;;  %vm762_vm7 = vcmask 916480   ;;  %vm2032_vm8 = vsmask.f32 3328 }
   0xf   : > { %s6207_s24 = smov 32   ;;  %s6208_s25 = smov 96   ;;  %vm2033_vm9 = vsmask.f32 7440  ;;  %vm4129_vm11 = vcmask 1042432   ;;  %vm4130_vm12 = vcmask 1046532  }
  0x10   : > { %s6253_s20 = scalar_lea.vmem %s9948_s0, %s6075_s14  ;;  %10089 = vst [vmem:[#allocation5_spill] sm:$0xff] %v6297_v18  ;;  %s6209_s26 = smov 112   ;;  %vm7356_vm10 = vmor %vm2032_vm8, %vm2033_vm9 }
  0x11   : > { %v6256_v4 = vld [vmem:[%s6253_s20 + $0x30] sm:$0xf]  ;;  %v6259_v5 = vld [vmem:[%s6253_s20] sm:$0xf]  ;;  %v6262_v6 = vld [vmem:[%s6253_s20 + $0x3c] sm:$0xf] }
  0x12   : > { %v6265_v7 = vld [vmem:[%s6253_s20 + $0x48] sm:$0xf]  ;;  %v6268_v8 = vld [vmem:[%s6253_s20 + $0x54] sm:$0xf]  ;;  %v6271_v9 = vld [vmem:[%s6253_s20 + $0xc] sm:$0xf] }
  0x13   : > { %v6274_v10 = vld [vmem:[%s6253_s20 + $0x18] sm:$0xf]  ;;  %v6277_v11 = vld [vmem:[%s6253_s20 + $0x24] sm:$0xf]  ;;  %v6280_v12 = vld [vmem:[%s6253_s20 + $0x60] sm:$0xf] }
  0x14   : > { %v6283_v13 = vld [vmem:[%s6253_s20 + $0x6c] sm:$0xf]  ;;  %v6286_v14 = vld [vmem:[%s6253_s20 + $0x78] sm:$0xf]  ;;  %v6289_v15 = vld [vmem:[%s6253_s20 + $0x90] sm:$0xf] }
  0x15   : > { %10086 = vst [vmem:[#allocation2_spill] sm:$0xff] %v6289_v15  ;;  %v6292_v16 = vld [vmem:[%s6253_s20 + $0x9c] sm:$0xf]  ;;  %v6295_v17 = vld [vmem:[%s6253_s20 + $0xa8] sm:$0xf]  ;;  %v346_v21 = vrot.slane %v6256_v4, 4  ;;  %vm8511_vm13 = vmor %vm4129_vm11, %vm4130_vm12 }
  0x16   : > { %10087 = vst [vmem:[#allocation3_spill] sm:$0xff] %v6292_v16  ;;  %v6302_v20 = vld [vmem:[%s6253_s20 + $0xb4] sm:$0xf]  ;;  %v353_v22 = vrot.slane %v6265_v7, 4  ;;  %v375_v23 = vrot.slane %v6262_v6, 4  ;;  %v381_v24 = vrot.slane %v6268_v8, 4 }
  0x17   : > { %10088 = vst [vmem:[#allocation4_spill] sm:$0xff] %v6295_v17  ;;  %v6309_v25 = vld [vmem:[%s6253_s20 + $0x84] sm:$0xf]  ;;  %v403_v26 = vrot.slane %v6289_v15, 4  ;;  %v409_v27 = vrot.slane %v6295_v17, 4  ;;  %v431_v28 = vrot.slane %v6292_v16, 4  ;;  %v348_v30 = vsel %vm347_vm0, %v346_v21, %v6259_v5 }
  0x18   : > { %10090 = vst [vmem:[#allocation6_spill] sm:$0xff] %v6302_v20  ;;  %v437_v29 = vrot.slane %v6302_v20, 4  ;;  %v354_v31 = vsel %vm347_vm0, %v353_v22, %v6274_v10  ;;  %v376_v32 = vsel %vm347_vm0, %v375_v23, %v6271_v9  ;;  %v382_v33 = vsel %vm347_vm0, %v381_v24, %v6277_v11  ;;  %v6371_v23 = vld [vmem:[%s6253_s20 + $0x34] sm:$0xf]  ;;  %v6374_v24 = vld [vmem:[%s6253_s20 + $0x40] sm:$0xf] }
  0x19   : > { %10091 = vst [vmem:[#allocation7_spill] sm:$0xff] %v6309_v25  ;;  %v352_v34 = vperm.slane %v348_v30, %v6297_v18  ;;  %v358_v35 = vperm.slane %v354_v31, %v6297_v18  ;;  %v380_v36 = vperm.slane %v376_v32, %v6297_v18  ;;  %v386_v37 = vperm.slane %v382_v33, %v6297_v18  ;;  %v6380_v30 = vld [vmem:[%s6253_s20 + $0x4c] sm:$0xf]  ;;  %s6210_s27 = smov 48   ;;  %s6211_s28 = smov 127  }
  0x1a   : > { %v404_v38 = vsel %vm347_vm0, %v403_v26, %v6280_v12  ;;  %v410_v39 = vsel %vm347_vm0, %v409_v27, %v6286_v14  ;;  %v432_v40 = vsel %vm347_vm0, %v431_v28, %v6283_v13  ;;  %v438_v41 = vsel %vm347_vm0, %v437_v29, %v6309_v25  ;;  %s6212_s29 = smov 126   ;;  %s6072_s11 = sshll.u32 %s10332_s13, 6 }
  0x1b   : > { %v361_v42 = vrot.slane %v352_v34, 4  ;;  %v389_v43 = vrot.slane %v380_v36, 4  ;;  %v408_v44 = vperm.slane %v404_v38, %v6297_v18  ;;  %v414_v45 = vperm.slane %v410_v39, %v6297_v18 }
  0x1c   : > { %v436_v46 = vperm.slane %v432_v40, %v6297_v18  ;;  %v442_v47 = vperm.slane %v438_v41, %v6297_v18  ;;  %v359_v48 = vrot.slane %v358_v35, 4  ;;  %v387_v49 = vrot.slane %v386_v37, 4  ;;  %v6395_v40 = vld [vmem:[%s6253_s20 + $0x10] sm:$0xf]  ;;  %v6398_v41 = vld [vmem:[%s6253_s20 + $0x1c] sm:$0xf] }
  0x1d   : > { %v362_v50 = vsel %vm347_vm0, %v358_v35, %v361_v42  ;;  %v390_v51 = vsel %vm347_vm0, %v386_v37, %v389_v43  ;;  %v417_v52 = vrot.slane %v408_v44, 4  ;;  %v415_v53 = vrot.slane %v414_v45, 4  ;;  %v6388_v35 = vld [vmem:[%s6253_s20 + $0x4] sm:$0xf]  ;;  %v6401_v43 = vld [vmem:[%s6253_s20 + $0x58] sm:$0xf] }
  0x1e   : > { %v6342_v54 = vperm.slane %v362_v50, %v6299_v19  ;;  %v6345_v55 = vperm.slane %v390_v51, %v6299_v19  ;;  %v445_v56 = vrot.slane %v436_v46, 4  ;;  %v360_v57 = vsel %vm347_vm0, %v359_v48, %v352_v34  ;;  %v6408_v51 = vld [vmem:[%s6253_s20 + $0x94] sm:$0xf] }
  0x1f   : > { %v418_v58 = vsel %vm347_vm0, %v414_v45, %v417_v52  ;;  %v6350_v59 = vperm.slane %v360_v57, %v6299_v19  ;;  %v388_v60 = vsel %vm347_vm0, %v387_v49, %v380_v36  ;;  %v416_v61 = vsel %vm347_vm0, %v415_v53, %v408_v44  ;;  %10096 = vst [vmem:[#allocation12_spill] sm:$0xff] %v6408_v51  ;;  %v6411_v52 = vld [vmem:[%s6253_s20 + $0xac] sm:$0xf] }
  0x20   : > { %v6355_v62 = vperm.slane %v418_v58, %v6299_v19  ;;  %v446_v63 = vsel %vm347_vm0, %v442_v47, %v445_v56  ;;  %v585_v0 = vpack.i.b16 %v6345_v55, %v6342_v54  ;;  %v6361_v1 = vperm.slane %v388_v60, %v6299_v19  ;;  %10097 = vst [vmem:[#allocation13_spill] sm:$0xff] %v6411_v52  ;;  %v6414_v56 = vld [vmem:[%s6253_s20 + $0xa0] sm:$0xf] }
  0x21   : > { %10092 = vst [vmem:[#allocation8_spill] sm:$0xff] %v6350_v59  ;;  %v6364_v2 = vperm.slane %v446_v63, %v6299_v19  ;;  %v6367_v3 = vperm.slane %v416_v61, %v6299_v19  ;;  %v443_v21 = vrot.slane %v442_v47, 4  ;;  %v574_v22 = vshrl.u32 %v6350_v59, 16 }
  0x22   : > { %10093 = vst [vmem:[#allocation9_spill] sm:$0xff] %v6361_v1  ;;  %v685_v26 = vunpack.c.l.b16 %v585_v0  ;;  %v575_v27 = vshrl.u32 %v6361_v1, 16  ;;  %v586_v28 = vshrl.u32 %v6342_v54, 16  ;;  %v587_v29 = vshrl.u32 %v6345_v55, 16  ;;  %v6423_v0 = vld [vmem:[%s6253_s20 + $0x28] sm:$0xf] }
  0x23   : > { %10094 = vst [vmem:[#allocation10_spill] sm:$0xff] %v6367_v3  ;;  %v633_v31 = vpack.i.b16 %v6364_v2, %v6355_v62  ;;  %v444_v32 = vsel %vm347_vm0, %v443_v21, %v436_v46  ;;  %v622_v33 = vshrl.u32 %v6367_v3, 16  ;;  %v634_v34 = vshrl.u32 %v6355_v62, 16  ;;  %v6426_v21 = vld [vmem:[%s6253_s20 + $0x64] sm:$0xf] }
  0x24   : > { %v6391_v36 = vperm.slane %v444_v32, %v6299_v19  ;;  %v576_v37 = vpack.i.b16 %v575_v27, %v574_v22  ;;  %v588_v38 = vpack.i.b16 %v587_v29, %v586_v28  ;;  %v635_v39 = vshrl.u32 %v6364_v2, 16  ;;  %10098 = vst [vmem:[#allocation14_spill] sm:$0xff] %v6414_v56  ;;  %v6429_v22 = vld [vmem:[%s6253_s20 + $0x7c] sm:$0xf] }
  0x25   : > { %v686_v42 = vunpack.c.l.b16 %v633_v31  ;;  %v459_v44 = vrot.slane %v6371_v23, 4  ;;  %v465_v45 = vrot.slane %v6380_v30, 4  ;;  %v487_v46 = vrot.slane %v6374_v24, 4 }
  0x26   : > { %10095 = vst [vmem:[#allocation11_spill] sm:$0xff] %v6391_v36  ;;  %v623_v47 = vshrl.u32 %v6391_v36, 16  ;;  %v670_v48 = vunpack.c.l.b16 %v576_v37  ;;  %v636_v49 = vpack.i.b16 %v635_v39, %v634_v34  ;;  %v690_v50 = vunpack.c.l.b16 %v588_v38  ;;  %v6443_v37 = vld [vmem:[%s6253_s20 + $0x70] sm:$0xf]  ;;  %v6446_v38 = vld [vmem:[%s6253_s20 + $0xb8] sm:$0xf] }
  0x27   : > { %v687_v53 = vpack.c.b16 %v686_v42, %v685_v26  ;;  %v460_v57 = vsel %vm347_vm0, %v459_v44, %v6388_v35  ;;  %v466_v58 = vsel %vm347_vm0, %v465_v45, %v6398_v41  ;;  %v488_v60 = vsel %vm347_vm0, %v487_v46, %v6395_v40  ;;  %10099 = vst [vmem:[#allocation15_spill] sm:$0xff] %v6446_v38 }
  0x28   : > { %v624_v61 = vpack.i.b16 %v623_v47, %v622_v33  ;;  %v691_v63 = vunpack.c.l.b16 %v636_v49  ;;  %v6432_v26 = vperm.slane %v460_v57, %v6297_v18  ;;  %v6435_v27 = vperm.slane %v466_v58, %v6297_v18 }
  0x29   : > { %688 = vrot.lane.b32.xlu1 %v687_v53, %s6204_s21  ;;  %v492_v28 = vperm.slane %v488_v60, %v6297_v18  ;;  %v493_v29 = vrot.slane %v6401_v43, 4  ;;  %v515_v31 = vrot.slane %v6408_v51, 4  ;;  %v521_v32 = vrot.slane %v6411_v52, 4 }
  0x2a   : > { %v671_v33 = vunpack.c.l.b16 %v624_v61  ;;  %v692_v34 = vpack.c.b16 %v691_v63, %v690_v50  ;;  %v473_v39 = vrot.slane %v6432_v26, 4  ;;  %v543_v42 = vrot.slane %v6414_v56, 4  ;;  %v6458_v50 = vld [vmem:[%s6253_s20 + $0x88] sm:$0xf] }
  0x2b   : > { %v494_v44 = vsel %vm347_vm0, %v493_v29, %v6423_v0  ;;  %v501_v45 = vrot.slane %v492_v28, 4  ;;  %v516_v46 = vsel %vm347_vm0, %v515_v31, %v6426_v21  ;;  %v522_v47 = vsel %vm347_vm0, %v521_v32, %v6429_v22 }
  0x2c   : > { %v672_v49 = vpack.c.b16 %v671_v33, %v670_v48  ;;  %693 = vrot.lane.b32.xlu2 %v692_v34, %s6205_s22  ;;  %v474_v53 = vsel %vm347_vm0, %v6435_v27, %v473_v39  ;;  %v498_v57 = vperm.slane %v494_v44, %v6297_v18  ;;  %v520_v58 = vperm.slane %v516_v46, %v6297_v18 }
  0x2d   : > { %v6465_v60 = vperm.slane %v474_v53, %v6299_v19  ;;  %v526_v61 = vperm.slane %v522_v47, %v6297_v18  ;;  %v544_v48 = vsel %vm347_vm0, %v543_v42, %v6443_v37  ;;  %v549_v63 = vrot.slane %v6446_v38, 4 }
  0x2e   : > { %673 = vrot.lane.b32.xlu0 %v672_v49, %s6206_s23  ;;  %v502_v29 = vsel %vm347_vm0, %v498_v57, %v501_v45  ;;  %v529_v31 = vrot.slane %v520_v58, 4  ;;  %v548_v32 = vperm.slane %v544_v48, %v6297_v18  ;;  %v371_v33 = vrot.slane %v6350_v59, 4 }
  0x2f   : > { %v6476_v34 = vperm.slane %v502_v29, %v6299_v19  ;;  %v550_v39 = vsel %vm347_vm0, %v549_v63, %v6458_v50  ;;  %v399_v42 = vrot.slane %v6361_v1, 4  ;;  %v427_v44 = vrot.slane %v6367_v3, 4 }
  0x30   : > { %v530_v46 = vsel %vm347_vm0, %v526_v61, %v529_v31  ;;  %v554_v47 = vperm.slane %v550_v39, %v6297_v18  ;;  %v557_v45 = vrot.slane %v548_v32, 4  ;;  %v6485_v49 = vsel %vm347_vm0, 0, %v371_v33 }
  0x31   : > { %v6488_v53 = vperm.slane %v530_v46, %v6299_v19  ;;  %v609_v48 = vpack.i.b16 %v6476_v34, %v6465_v60  ;;  %v6493_v63 = vsel %vm347_vm0, 0, %v399_v42  ;;  %v6496_v29 = vsel %vm347_vm0, 0, %v427_v44 }
  0x32   : > { %v558_v31 = vsel %vm347_vm0, %v554_v47, %v557_v45  ;;  %v455_v39 = vrot.slane %v6391_v36, 4  ;;  %v579_v33 = vpack.i.b16 %v6493_v63, %v6485_v49  ;;  %v610_v1 = vshrl.u32 %v6465_v60, 16 }
  0x33   : > { %v6504_v46 = vperm.slane %v558_v31, %v6299_v19  ;;  %v723_v59 = vunpack.c.l.b16 %v609_v48  ;;  %v611_v3 = vshrl.u32 %v6476_v34, 16  ;;  %v658_v42 = vshrl.u32 %v6488_v53, 16 }
  0x34   : > { %v6509_v44 = vsel %vm347_vm0, 0, %v455_v39  ;;  %v675_v18 = vunpack.c.l.b16 %v579_v33  ;;  %v471_v45 = vrot.slane %v6435_v27, 4  ;;  %v499_v36 = vrot.slane %v498_v57, 4 }
  0x35   : > { %v657_v38 = vpack.i.b16 %v6504_v46, %v6488_v53  ;;  %v627_v17 = vpack.i.b16 %v6509_v44, %v6496_v29  ;;  %v612_v31 = vpack.i.b16 %v611_v3, %v610_v1  ;;  %v659_v48 = vshrl.u32 %v6504_v46, 16 }
  0x36   : > { %v472_v20 = vsel %vm347_vm0, %v471_v45, %v6432_v26  ;;  %v500_v52 = vsel %vm347_vm0, %v499_v36, %v492_v28  ;;  %v527_v39 = vrot.slane %v526_v61, 4  ;;  %v555_v51 = vrot.slane %v554_v47, 4 }
  0x37   : > { %v724_v33 = vunpack.c.l.b16 %v657_v38  ;;  %v676_v56 = vunpack.c.l.b16 %v627_v17  ;;  %v660_v27 = vpack.i.b16 %v659_v48, %v658_v42  ;;  %v728_v57 = vunpack.c.l.b16 %v612_v31 }
  0x38   : > { %v6521_v16 = vperm.slane %v472_v20, %v6299_v19  ;;  %v6524_v25 = vperm.slane %v500_v52, %v6299_v19  ;;  %v528_v1 = vsel %vm347_vm0, %v527_v39, %v520_v58  ;;  %v556_v3 = vsel %vm347_vm0, %v555_v51, %v548_v32 }
  0x39   : > { %v725_v15 = vpack.c.b16 %v724_v33, %v723_v59  ;;  %v677_v26 = vpack.c.b16 %v676_v56, %v675_v18  ;;  %v729_v45 = vunpack.c.l.b16 %v660_v27  ;;  %v6529_v36 = vperm.slane %v528_v1, %v6299_v19 }
  0x3a   : > { %v6532_v17 = vperm.slane %v556_v3, %v6299_v19  ;;  %v598_v28 = vshrl.u32 %v6521_v16, 16  ;;  %v599_v20 = vshrl.u32 %v6524_v25, 16  ;;  %v373_v52 = vrot.slane %v6342_v54, 4 }
  0x3b   : > { %726 = vrot.lane.b32.xlu1 %v725_v15, %s6204_s21  ;;  %678 = vrot.lane.b32.xlu0 %v677_v26, %s6207_s24  ;;  %v730_v59 = vpack.c.b16 %v729_v45, %v728_v57  ;;  %v646_v18 = vshrl.u32 %v6529_v36, 16  ;;  %v401_v51 = vrot.slane %v6345_v55, 4  ;;  %v429_v56 = vrot.slane %v6355_v62, 4 }
  0x3c   : > { %v600_v38 = vpack.i.b16 %v599_v20, %v598_v28  ;;  %v647_v58 = vshrl.u32 %v6532_v17, 16  ;;  %v374_v61 = vsel %vm347_vm0, 0, %v373_v52  ;;  %v457_v32 = vrot.slane %v6364_v2, 4 }
  0x3d   : > { %731 = vrot.lane.b32.xlu2 %v730_v59, %s6205_s22  ;;  %v402_v15 = vsel %vm347_vm0, 0, %v401_v51  ;;  %v430_v54 = vsel %vm347_vm0, 0, %v429_v56  ;;  %v592_v47 = vshrl.u32 %v374_v61, 16  ;;  %v580_v42 = vshrl.u32 %v6485_v49, 16 }
  0x3e   : > { %v648_v31 = vpack.i.b16 %v647_v58, %v646_v18  ;;  %v708_v55 = vunpack.c.l.b16 %v600_v38  ;;  %v458_v62 = vsel %vm347_vm0, 0, %v457_v32  ;;  %v593_v48 = vshrl.u32 %v402_v15, 16 }
  0x3f   : > { %v640_v39 = vshrl.u32 %v430_v54, 16  ;;  %v641_v33 = vshrl.u32 %v458_v62, 16  ;;  %v591_v27 = vpack.i.b16 %v402_v15, %v374_v61  ;;  %v639_v57 = vpack.i.b16 %v458_v62, %v430_v54 }
  0x40   : > { %v709_v1 = vunpack.c.l.b16 %v648_v31  ;;  %v594_v2 = vpack.i.b16 %v593_v48, %v592_v47  ;;  %v581_v3 = vshrl.u32 %v6493_v63, 16  ;;  %v628_v26 = vshrl.u32 %v6496_v29, 16 }
  0x41   : > { %v642_v45 = vpack.i.b16 %v641_v33, %v640_v39  ;;  %v695_v28 = vunpack.c.l.b16 %v591_v27  ;;  %v696_v20 = vunpack.c.l.b16 %v639_v57  ;;  %v629_v49 = vshrl.u32 %v6509_v44, 16 }
  0x42   : > { %v710_v52 = vpack.c.b16 %v709_v1, %v708_v55  ;;  %v700_v59 = vunpack.c.l.b16 %v594_v2  ;;  %v582_v18 = vpack.i.b16 %v581_v3, %v580_v42  ;;  %v483_v51 = vrot.slane %v6521_v16, 4 }
  0x43   : > { %v701_v56 = vunpack.c.l.b16 %v642_v45  ;;  %v697_v38 = vpack.c.b16 %v696_v20, %v695_v28  ;;  %v630_v58 = vpack.i.b16 %v629_v49, %v628_v26  ;;  %v511_v61 = vrot.slane %v6524_v25, 4 }
  0x44   : > { %711 = vrot.lane.b32.xlu1 %v710_v52, %s6206_s23  ;;  %v680_v63 = vunpack.c.l.b16 %v582_v18  ;;  %v484_v29 = vsel %vm347_vm0, 0, %v483_v51  ;;  %v539_v32 = vrot.slane %v6529_v36, 4  ;;  %v567_v15 = vrot.slane %v6532_v17, 4 }
  0x45   : > { %v702_v44 = vpack.c.b16 %v701_v56, %v700_v59  ;;  %698 = vrot.lane.b32.xlu2 %v697_v38, %s6208_s25  ;;  %v681_v54 = vunpack.c.l.b16 %v630_v58  ;;  %v512_v47 = vsel %vm347_vm0, 0, %v511_v61  ;;  %v604_v42 = vshrl.u32 %v484_v29, 16 }
  0x46   : > { %v540_v31 = vsel %vm347_vm0, 0, %v539_v32  ;;  %v568_v55 = vsel %vm347_vm0, 0, %v567_v15  ;;  %v605_v62 = vshrl.u32 %v512_v47, 16  ;;  %v603_v48 = vpack.i.b16 %v512_v47, %v484_v29 }
  0x47   : > { %703 = vrot.lane.b32.xlu0 %v702_v44, %s6209_s26  ;;  %v682_v39 = vpack.c.b16 %v681_v54, %v680_v63  ;;  %v652_v33 = vshrl.u32 %v540_v31, 16  ;;  %v653_v27 = vshrl.u32 %v568_v55, 16  ;;  %v651_v57 = vpack.i.b16 %v568_v55, %v540_v31 }
  0x48   : > { %v606_v1 = vpack.i.b16 %v605_v62, %v604_v42  ;;  %v713_v2 = vunpack.c.l.b16 %v603_v48  ;;  %v485_v3 = vrot.slane %v6465_v60, 4  ;;  %v513_v26 = vrot.slane %v6476_v34, 4 }
  0x49   : > { %v654_v45 = vpack.i.b16 %v653_v27, %v652_v33  ;;  %v714_v28 = vunpack.c.l.b16 %v651_v57  ;;  %v541_v20 = vrot.slane %v6488_v53, 4  ;;  %v569_v49 = vrot.slane %v6504_v46, 4 }
  0x4a   : > { %v718_v52 = vunpack.c.l.b16 %v606_v1  ;;  %v486_v59 = vsel %vm347_vm0, 0, %v485_v3  ;;  %v514_v18 = vsel %vm347_vm0, 0, %v513_v26 }
  0x4b   : > { %v719_v51 = vunpack.c.l.b16 %v654_v45  ;;  %v715_v56 = vpack.c.b16 %v714_v28, %v713_v2  ;;  %v542_v38 = vsel %vm347_vm0, 0, %v541_v20  ;;  %v570_v58 = vsel %vm347_vm0, 0, %v569_v49 }
  0x4c   : > { %683 = vrot.lane.b32.xlu1 %v682_v39, %s6210_s27  ;;  %v616_v60 = vshrl.u32 %v486_v59, 16  ;;  %v617_v34 = vshrl.u32 %v514_v18, 16  ;;  %v664_v61 = vshrl.u32 %v542_v38, 16  ;;  %v665_v53 = vshrl.u32 %v570_v58, 16 }
  0x4d   : > { %v720_v63 = vpack.c.b16 %v719_v51, %v718_v52  ;;  %716 = vrot.lane.b32.xlu2 %v715_v56, %s6207_s24  ;;  %v615_v46 = vpack.i.b16 %v514_v18, %v486_v59  ;;  %v663_v29 = vpack.i.b16 %v570_v58, %v542_v38 }
  0x4e   : > { %v618_v32 = vpack.i.b16 %v617_v34, %v616_v60  ;;  %v666_v15 = vpack.i.b16 %v665_v53, %v664_v61 }
  0x4f   : > { %721 = vrot.lane.b32.xlu0 %v720_v63, %s6210_s27  ;;  %v733_v44 = vunpack.c.l.b16 %v615_v46  ;;  %v734_v54 = vunpack.c.l.b16 %v663_v29 }
  0x50   : > { %v738_v47 = vunpack.c.l.b16 %v618_v32  ;;  %v739_v42 = vunpack.c.l.b16 %v666_v15  ;;  %v10110_v32 = vld [vmem:[#allocation5_spill] sm:$0xff] }
  0x51   : > { %v735_v55 = vpack.c.b16 %v734_v54, %v733_v44 }
  0x52   : > { %v740_v31 = vpack.c.b16 %v739_v42, %v738_v47 }
  0x54   : > { %741 = vrot.lane.b32.xlu1 %v740_v31, %s6209_s26 }
  0x55   : > { %814 = vrot.lane.b32.xlu2 %v6259_v5, %s6211_s28  ;;  %v10100_v5 = vld [vmem:[#allocation2_spill] sm:$0xff] }
  0x57   : > { %736 = vrot.lane.b32.xlu0 %v735_v55, %s6208_s25 }
  0x5c   : > { %818 = vrot.lane.b32.xlu1 %v6271_v9, %s6211_s28  ;;  %v10103_v9 = vld [vmem:[#allocation14_spill] sm:$0xff] }
  0x5d   : > { %820 = vrot.lane.b32.xlu2 %v6395_v40, %s6211_s28  ;;  %v10108_v40 = vld [vmem:[#allocation15_spill] sm:$0xff] }
  0x5f   : > { %816 = vrot.lane.b32.xlu0 %v6388_v35, %s6211_s28 }
  0x64   : > { %824 = vrot.lane.b32.xlu1 %v6398_v41, %s6211_s28 }
  0x65   : > { %826 = vrot.lane.b32.xlu2 %v6277_v11, %s6211_s28 }
  0x67   : > { %822 = vrot.lane.b32.xlu0 %v6274_v10, %s6211_s28  ;;  %v10104_v10 = vld [vmem:[#allocation12_spill] sm:$0xff] }
  0x6c   : > { %830 = vrot.lane.b32.xlu1 %v6256_v4, %s6211_s28 }
  0x6d   : > { %832 = vrot.lane.b32.xlu2 %v6371_v23, %s6211_s28  ;;  %v10106_v23 = vld [vmem:[#allocation6_spill] sm:$0xff] }
  0x6f   : > { %828 = vrot.lane.b32.xlu0 %v6423_v0, %s6211_s28 }
  0x74   : > { %836 = vrot.lane.b32.xlu1 %v6374_v24, %s6211_s28  ;;  %v10107_v24 = vld [vmem:[#allocation4_spill] sm:$0xff] }
  0x75   : > { %838 = vrot.lane.b32.xlu2 %v6265_v7, %s6211_s28 }
  0x77   : > { %834 = vrot.lane.b32.xlu0 %v6262_v6, %s6211_s28  ;;  %v10101_v6 = vld [vmem:[#allocation7_spill] sm:$0xff] }
  0x7c   : > { %842 = vrot.lane.b32.xlu1 %v6268_v8, %s6211_s28  ;;  %v10102_v8 = vld [vmem:[#allocation3_spill] sm:$0xff] }
  0x7d   : > { %844 = vrot.lane.b32.xlu2 %v6401_v43, %s6211_s28 }
  0x7f   : > { %840 = vrot.lane.b32.xlu0 %v6380_v30, %s6211_s28 }
  0x84   : > { %848 = vrot.lane.b32.xlu1 %v6426_v21, %s6211_s28 }
  0x85   : > { %850 = vrot.lane.b32.xlu2 %v6283_v13, %s6211_s28  ;;  %v10105_v13 = vld [vmem:[#allocation13_spill] sm:$0xff] }
  0x86   : > { %v6619_v4 = vpop.permute.xlu2 %693 }
  0x87   : > { %846 = vrot.lane.b32.xlu0 %v6280_v12, %s6211_s28 }
  0x8c   : > { %854 = vrot.lane.b32.xlu1 %v6286_v14, %s6211_s28 }
  0x8d   : > { %856 = vrot.lane.b32.xlu2 %v6429_v22, %s6211_s28 }
  0x8f   : > { %852 = vrot.lane.b32.xlu0 %v6443_v37, %s6211_s28 }
  0x94   : > { %860 = vrot.lane.b32.xlu1 %v6458_v50, %s6211_s28 }
  0x95   : > { %862 = vrot.lane.b32.xlu2 %v10100_v5, %s6211_s28 }
  0x97   : > { %858 = vrot.lane.b32.xlu0 %v10101_v6, %s6211_s28  ;;  %v6629_v7 = vpop.permute.xlu2 %731 }
  0x9b   : > { %v6639_v12 = vpop.permute.xlu1 %688 }
  0x9c   : > { %866 = vrot.lane.b32.xlu1 %v10102_v8, %s6211_s28 }
  0x9d   : > { %868 = vrot.lane.b32.xlu2 %v10103_v9, %s6211_s28 }
  0x9f   : > { %864 = vrot.lane.b32.xlu0 %v10104_v10, %s6211_s28  ;;  %v6637_v11 = vpop.permute.xlu2 %698 }
  0xa0   : > { %v6643_v14 = vpop.permute.xlu0 %673 }
  0xa4   : > { %872 = vrot.lane.b32.xlu1 %v10105_v13, %s6211_s28 }
  0xa5   : > { %874 = vrot.lane.b32.xlu2 %v10106_v23, %s6211_s28 }
  0xa7   : > { %870 = vrot.lane.b32.xlu0 %v10107_v24, %s6211_s28  ;;  %v6649_v30 = vpop.permute.xlu2 %716 }
  0xad   : > { %v6651_v35 = vpop.permute.xlu1 %726  ;;  %v6655_v41 = vpop.permute.xlu0 %678 }
  0xaf   : > { %876 = vrot.lane.b32.xlu0 %v10108_v40, %s6211_s28  ;;  %v815_v43 = vpop.permute.xlu2 %814 }
  0xb6   : > { %v6657_v0 = vpop.permute.xlu1 %711 }
  0xb7   : > { %v821_v21 = vpop.permute.xlu2 %820 }
  0xb9   : > { %v6659_v22 = vpop.permute.xlu0 %703 }
  0xbe   : > { %v6661_v37 = vpop.permute.xlu1 %683 }
  0xbf   : > { %v827_v50 = vpop.permute.xlu2 %826 }
  0xc1   : > { %v6663_v62 = vpop.permute.xlu0 %721 }
  0xc6   : > { %v6665_v48 = vpop.permute.xlu1 %741 }
  0xc7   : > { %10109 = vst [vmem:[#allocation2_spill] sm:$0xff] %v6665_v48  ;;  %v833_v39 = vpop.permute.xlu2 %832 }
  0xc8   : > { %v1022_v34 = vrot.slane %v833_v39, 4 }
  0xc9   : > { %v6667_v33 = vpop.permute.xlu0 %736 }
  0xce   : > { %v819_v27 = vpop.permute.xlu1 %818 }
  0xcf   : > { %v839_v57 = vpop.permute.xlu2 %838 }
  0xd0   : > { %v916_v38 = vrot.slane %v839_v57, 4 }
  0xd1   : > { %v817_v1 = vpop.permute.xlu0 %816 }
  0xd2   : > { %v1023_v42 = vsel %vm347_vm0, %v1022_v34, %v817_v1 }
  0xd3   : > { %v1027_v24 = vperm.slane %v1023_v42, %v10110_v32 }
  0xd6   : > { %v825_v2 = vpop.permute.xlu1 %824 }
  0xd7   : > { %v845_v26 = vpop.permute.xlu2 %844 }
  0xd8   : > { %v1056_v56 = vrot.slane %v845_v26, 4 }
  0xd9   : > { %v823_v3 = vpop.permute.xlu0 %822 }
  0xda   : > { %v917_v54 = vsel %vm347_vm0, %v916_v38, %v823_v3 }
  0xdb   : > { %v921_v10 = vperm.slane %v917_v54, %v10110_v32 }
  0xdd   : > { %v922_v1 = vrot.slane %v921_v10, 4 }
  0xde   : > { %v831_v45 = vpop.permute.xlu1 %830 }
  0xdf   : > { %v6669_v20 = vpop.permute.xlu2 %850  ;;  %v910_v63 = vrot.slane %v831_v45, 4 }
  0xe1   : > { %v829_v28 = vpop.permute.xlu0 %828  ;;  %v911_v5 = vsel %vm347_vm0, %v910_v63, %v815_v43 }
  0xe2   : > { %v1057_v29 = vsel %vm347_vm0, %v1056_v56, %v829_v28 }
  0xe3   : > { %v1061_v6 = vperm.slane %v1057_v29, %v10110_v32 }
  0xe5   : > { %v1062_v43 = vrot.slane %v1061_v6, 4 }
  0xe6   : > { %v837_v49 = vpop.permute.xlu1 %836 }
  0xe7   : > { %v6671_v59 = vpop.permute.xlu2 %856  ;;  %v1050_v61 = vrot.slane %v837_v49, 4 }
  0xe9   : > { %v835_v52 = vpop.permute.xlu0 %834  ;;  %v1051_v31 = vsel %vm347_vm0, %v1050_v61, %v821_v21  ;;  %v915_v21 = vperm.slane %v911_v5, %v10110_v32 }
  0xea   : > { %v938_v46 = vrot.slane %v835_v52, 4  ;;  %v1055_v40 = vperm.slane %v1051_v31, %v10110_v32 }
  0xeb   : > { %v923_v3 = vsel %vm347_vm0, %v922_v1, %v915_v21  ;;  %v1036_v1 = vrot.slane %v1027_v24, 4 }
  0xec   : > { %v939_v8 = vsel %vm347_vm0, %v938_v46, %v819_v27  ;;  %v6710_v52 = vperm.slane %v923_v3, %v6299_v19 }
  0xed   : > { %v943_v39 = vperm.slane %v939_v8, %v10110_v32 }
  0xee   : > { %v843_v18 = vpop.permute.xlu1 %842  ;;  %v934_v5 = vrot.slane %v6710_v52, 4  ;;  %v1137_v3 = vshrl.u32 %v6710_v52, 16 }
  0xef   : > { %v944_v51 = vrot.slane %v843_v18, 4  ;;  %v863_v23 = vpop.permute.xlu2 %862 }
  0xf1   : > { %v945_v58 = vsel %vm347_vm0, %v944_v51, %v827_v50  ;;  %v841_v60 = vpop.permute.xlu0 %840 }
  0xf2   : > { %v1028_v53 = vrot.slane %v841_v60, 4  ;;  %v949_v15 = vperm.slane %v945_v58, %v10110_v32  ;;  %v924_v58 = vrot.slane %v915_v21, 4  ;;  %v966_v21 = vrot.slane %v863_v23, 4 }
  0xf4   : > { %v1029_v44 = vsel %vm347_vm0, %v1028_v53, %v825_v2  ;;  %v950_v13 = vrot.slane %v949_v15, 4  ;;  %v1063_v2 = vsel %vm347_vm0, %v1062_v43, %v1055_v40  ;;  %v925_v34 = vsel %vm347_vm0, %v921_v10, %v924_v58 }
  0xf5   : > { %v6679_v47 = vperm.slane %v1029_v44, %v10110_v32  ;;  %v6707_v49 = vperm.slane %v1063_v2, %v6299_v19  ;;  %v952_v53 = vrot.slane %v943_v39, 4  ;;  %v933_v63 = vperm.slane %v925_v34, %v6299_v19 }
  0xf6   : > { %v6683_v55 = vpop.permute.xlu1 %848  ;;  %v951_v27 = vsel %vm347_vm0, %v950_v13, %v943_v39 }
  0xf7   : > { %v1034_v9 = vrot.slane %v6679_v47, 4  ;;  %v6704_v28 = vperm.slane %v951_v27, %v6299_v19  ;;  %v6714_v51 = vpop.permute.xlu2 %868  ;;  %v953_v29 = vsel %vm347_vm0, %v949_v15, %v952_v53  ;;  %v936_v31 = vrot.slane %v933_v63, 4 }
  0xf8   : > { %v961_v8 = vperm.slane %v953_v29, %v6299_v19 }
  0xf9   : > { %v847_v50 = vpop.permute.xlu0 %846  ;;  %v1035_v57 = vsel %vm347_vm0, %v1034_v9, %v1027_v24  ;;  %v1064_v9 = vrot.slane %v1055_v40, 4  ;;  %v937_v15 = vsel %vm347_vm0, 0, %v936_v31  ;;  %v1149_v40 = vshrl.u32 %v933_v63, 16 }
  0xfa   : > { %v6701_v45 = vperm.slane %v1035_v57, %v6299_v19  ;;  %v6733_v57 = vsel %vm347_vm0, 0, %v934_v5  ;;  %v964_v2 = vrot.slane %v961_v8, 4  ;;  %v1150_v58 = vshrl.u32 %v961_v8, 16 }
  0xfb   : > { %v1065_v23 = vsel %vm347_vm0, %v1061_v6, %v1064_v9  ;;  %v967_v34 = vsel %vm347_vm0, %v966_v21, %v847_v50  ;;  %v1037_v24 = vsel %vm347_vm0, %v6679_v47, %v1036_v1  ;;  %v1138_v6 = vshrl.u32 %v6704_v28, 16 }
  0xfc   : > { %v965_v5 = vsel %vm347_vm0, 0, %v964_v2  ;;  %v6748_v50 = vperm.slane %v1065_v23, %v6299_v19  ;;  %v971_v9 = vperm.slane %v967_v34, %v10110_v32  ;;  %v1151_v47 = vpack.i.b16 %v1150_v58, %v1149_v40 }
  0xfd   : > { %v6766_v58 = vpack.i.b16 %v1138_v6, %v1137_v3 }
  0xfe   : > { %v6698_v26 = vpop.permute.xlu1 %854 }
  0xff   : > { %v875_v46 = vpop.permute.xlu2 %874 }
 0x100   : > { %v1000_v54 = vrot.slane %v875_v46, 4  ;;  %v1155_v46 = vshrl.u32 %v937_v15, 16 }
 0x101   : > { %v6712_v18 = vpop.permute.xlu0 %852 }
 0x106   : > { %v6720_v60 = vpop.permute.xlu1 %860 }
 0x109   : > { %v859_v61 = vpop.permute.xlu0 %858 }
 0x10a   : > { %v1001_v43 = vsel %vm347_vm0, %v1000_v54, %v859_v61  ;;  %v1148_v54 = vpack.i.b16 %v961_v8, %v933_v63  ;;  %v1106_v8 = vrot.slane %v6714_v51, 4  ;;  %v980_v51 = vrot.slane %v971_v9, 4 }
 0x10b   : > { %v1005_v61 = vperm.slane %v1001_v43, %v10110_v32 }
 0x10c   : > { %v1248_v34 = vunpack.c.l.b16 %v1148_v54 }
 0x10e   : > { %v867_v44 = vpop.permute.xlu1 %866 }
 0x10f   : > { %v994_v42 = vrot.slane %v867_v44, 4 }
 0x111   : > { %v995_v13 = vsel %vm347_vm0, %v994_v42, %v6669_v20  ;;  %v865_v10 = vpop.permute.xlu0 %864  ;;  %v1074_v20 = vrot.slane %v6707_v49, 4  ;;  %v1162_v42 = vshrl.u32 %v6707_v49, 16 }
 0x112   : > { %v999_v39 = vperm.slane %v995_v13, %v10110_v32  ;;  %v1078_v43 = vrot.slane %v865_v10, 4 }
 0x113   : > { %v6754_v63 = vsel %vm347_vm0, 0, %v1074_v20  ;;  %v1156_v20 = vshrl.u32 %v965_v5, 16 }
 0x114   : > { %v1008_v27 = vrot.slane %v999_v39, 4 }
 0x116   : > { %v873_v53 = vpop.permute.xlu1 %872  ;;  %v1009_v31 = vsel %vm347_vm0, %v1005_v61, %v1008_v27  ;;  %v6758_v27 = vperm.slane %v1037_v24, %v6299_v19  ;;  %v1161_v24 = vshrl.u32 %v6701_v45, 16 }
 0x117   : > { %v1084_v44 = vrot.slane %v873_v53, 4  ;;  %v1017_v23 = vperm.slane %v1009_v31, %v6299_v19  ;;  %v1154_v53 = vpack.i.b16 %v965_v5, %v937_v15  ;;  %v1079_v31 = vsel %vm347_vm0, %v1078_v43, %v6683_v55 }
 0x118   : > { %v1046_v15 = vrot.slane %v6701_v45, 4  ;;  %v6785_v55 = vperm.slane %v1079_v31, %v10110_v32 }
 0x119   : > { %v1085_v13 = vsel %vm347_vm0, %v1084_v44, %v6671_v59  ;;  %v871_v21 = vpop.permute.xlu0 %870  ;;  %v1006_v59 = vrot.slane %v1005_v61, 4  ;;  %v1253_v44 = vunpack.c.l.b16 %v1151_v47  ;;  %v962_v61 = vrot.slane %v6704_v28, 4 }
 0x11a   : > { %v972_v1 = vrot.slane %v871_v21, 4  ;;  %v6761_v2 = vperm.slane %v1085_v13, %v10110_v32  ;;  %v1020_v5 = vrot.slane %v1017_v23, 4  ;;  %v1258_v21 = vunpack.c.l.b16 %v1154_v53 }
 0x11b   : > { %v1007_v13 = vsel %vm347_vm0, %v1006_v59, %v999_v39  ;;  %v1233_v47 = vunpack.c.l.b16 %v6766_v58  ;;  %v1107_v53 = vsel %vm347_vm0, %v1106_v8, %v6712_v18 }
 0x11c   : > { %v973_v40 = vsel %vm347_vm0, %v972_v1, %v6698_v26  ;;  %v1090_v26 = vrot.slane %v6761_v2, 4  ;;  %v6779_v1 = vpack.i.b16 %v1156_v20, %v1155_v46  ;;  %v6782_v39 = vperm.slane %v1007_v13, %v6299_v19 }
 0x11d   : > { %v977_v10 = vperm.slane %v973_v40, %v10110_v32  ;;  %v1198_v40 = vshrl.u32 %v1017_v23, 16  ;;  %v1021_v58 = vsel %vm347_vm0, 0, %v1020_v5 }
 0x11e   : > { %v1091_v46 = vsel %vm347_vm0, %v1090_v26, %v6785_v55  ;;  %v1186_v8 = vshrl.u32 %v6782_v39, 16 }
 0x11f   : > { %v978_v3 = vrot.slane %v977_v10, 4  ;;  %v981_v54 = vsel %vm347_vm0, %v977_v10, %v980_v51  ;;  %v1097_v5 = vperm.slane %v1091_v46, %v6299_v19 }
 0x120   : > { %v989_v6 = vperm.slane %v981_v54, %v6299_v19 }
 0x121   : > { %v979_v43 = vsel %vm347_vm0, %v978_v3, %v971_v9  ;;  %v877_v59 = vpop.permute.xlu0 %876 }
 0x122   : > { %v1112_v29 = vrot.slane %v877_v59, 4  ;;  %v1196_v51 = vpack.i.b16 %v1017_v23, %v989_v6  ;;  %v1197_v10 = vshrl.u32 %v989_v6, 16  ;;  %v992_v38 = vrot.slane %v989_v6, 4 }
 0x123   : > { %v6794_v20 = vperm.slane %v979_v43, %v6299_v19  ;;  %v6804_v43 = vsel %vm347_vm0, 0, %v1046_v15 }
 0x124   : > { %v1113_v9 = vsel %vm347_vm0, %v1112_v29, %v6720_v60  ;;  %v1249_v13 = vunpack.c.l.b16 %v1196_v51  ;;  %v1199_v31 = vpack.i.b16 %v1198_v40, %v1197_v10  ;;  %v993_v23 = vsel %vm347_vm0, 0, %v992_v38 }
 0x125   : > { %v1117_v3 = vperm.slane %v1113_v9, %v10110_v32  ;;  %v1202_v54 = vpack.i.b16 %v1021_v58, %v993_v23  ;;  %v1185_v18 = vshrl.u32 %v6794_v20, 16  ;;  %v1111_v60 = vperm.slane %v1107_v53, %v10110_v32 }
 0x126   : > { %v1250_v26 = vpack.c.b16 %v1249_v13, %v1248_v34  ;;  %v1254_v6 = vunpack.c.l.b16 %v1199_v31  ;;  %v1163_v51 = vpack.i.b16 %v1162_v42, %v1161_v24  ;;  %v6811_v10 = vsel %vm347_vm0, 0, %v962_v61 }
 0x127   : > { %v1118_v29 = vrot.slane %v1117_v3, 4  ;;  %v1259_v59 = vunpack.c.l.b16 %v1202_v54  ;;  %v1187_v40 = vpack.i.b16 %v1186_v8, %v1185_v18  ;;  %v990_v34 = vrot.slane %v6794_v20, 4 }
 0x128   : > { %1251 = vrot.lane.b32.xlu1 %v1250_v26, %s6204_s21  ;;  %v1255_v38 = vpack.c.b16 %v1254_v6, %v1253_v44  ;;  %v1203_v9 = vshrl.u32 %v993_v23, 16  ;;  %v1018_v53 = vrot.slane %v6782_v39, 4  ;;  %v1102_v44 = vrot.slane %v1097_v5, 4 }
 0x129   : > { %v1119_v46 = vsel %vm347_vm0, %v1118_v29, %v1111_v60  ;;  %v1260_v15 = vpack.c.b16 %v1259_v59, %v1258_v21  ;;  %v1234_v13 = vunpack.c.l.b16 %v1187_v40  ;;  %v1166_v42 = vpack.i.b16 %v6754_v63, %v6804_v43 }
 0x12a   : > { %1256 = vrot.lane.b32.xlu2 %v1255_v38, %s6205_s22  ;;  %v1125_v31 = vperm.slane %v1119_v46, %v6299_v19  ;;  %v1204_v24 = vshrl.u32 %v1021_v58, 16  ;;  %v1263_v61 = vunpack.c.l.b16 %v6779_v1  ;;  %v1142_v21 = vpack.i.b16 %v6811_v10, %v6733_v57 }
 0x12b   : > { %1261 = vrot.lane.b32.xlu0 %v1260_v15, %s6208_s25  ;;  %v1144_v23 = vshrl.u32 %v6811_v10, 16  ;;  %v1209_v54 = vshrl.u32 %v1097_v5, 16  ;;  %v991_v26 = vsel %vm347_vm0, 0, %v990_v34  ;;  %v1120_v6 = vrot.slane %v1111_v60, 4 }
 0x12c   : > { %v1210_v18 = vshrl.u32 %v1125_v31, 16  ;;  %v1130_v8 = vrot.slane %v1125_v31, 4  ;;  %v1271_v29 = vunpack.c.l.b16 %v1163_v51  ;;  %v1205_v59 = vpack.i.b16 %v1204_v24, %v1203_v9 }
 0x12d   : > { %v1019_v40 = vsel %vm347_vm0, 0, %v1018_v53  ;;  %v1235_v38 = vpack.c.b16 %v1234_v13, %v1233_v47  ;;  %v1103_v58 = vsel %vm347_vm0, 0, %v1102_v44  ;;  %v1092_v15 = vrot.slane %v6785_v55, 4 }
 0x12e   : > { %v1211_v46 = vpack.i.b16 %v1210_v18, %v1209_v54  ;;  %v1131_v1 = vsel %vm347_vm0, 0, %v1130_v8  ;;  %v1191_v10 = vshrl.u32 %v991_v26, 16  ;;  %v1167_v32 = vshrl.u32 %v6804_v43, 16 }
 0x12f   : > { %v1214_v56 = vpack.i.b16 %v1131_v1, %v1103_v58  ;;  %v1121_v48 = vsel %vm347_vm0, %v1117_v3, %v1120_v6  ;;  %v1276_v51 = vunpack.c.l.b16 %v1166_v42  ;;  %v1192_v34 = vshrl.u32 %v1019_v40, 16 }
 0x130   : > { %1236 = vrot.lane.b32.xlu1 %v1235_v38, %s6206_s23  ;;  %v1272_v60 = vunpack.c.l.b16 %v1211_v46  ;;  %v1093_v47 = vsel %vm347_vm0, %v6761_v2, %v1092_v15  ;;  %v1264_v53 = vunpack.c.l.b16 %v1205_v59  ;;  %v1190_v13 = vpack.i.b16 %v1019_v40, %v991_v26  ;;  %v7035_v59 = vld [vmem:[%s6253_s20 + $0xb4] sm:$0xf] }
 0x131   : > { %v1277_v9 = vunpack.c.l.b16 %v1214_v56  ;;  %v1216_v24 = vshrl.u32 %v1131_v1, 16  ;;  %v1208_v55 = vpack.i.b16 %v1125_v31, %v1097_v5  ;;  %v1184_v54 = vpack.i.b16 %v6782_v39, %v6794_v20 }
 0x132   : > { %v1273_v44 = vpack.c.b16 %v1272_v60, %v1271_v29  ;;  %v1193_v18 = vpack.i.b16 %v1192_v34, %v1191_v10  ;;  %v1129_v3 = vperm.slane %v1121_v48, %v6299_v19  ;;  %v10111_v42 = vpack.i.b16 %v6707_v49, %v6701_v45 }
 0x133   : > { %v1278_v43 = vpack.c.b16 %v1277_v9, %v1276_v51  ;;  %v1215_v56 = vshrl.u32 %v1103_v58, 16  ;;  %v6844_v2 = vunpack.c.l.b16 %v1208_v55  ;;  %v10112_v5 = vpack.i.b16 %v6704_v28, %v6710_v52 }
 0x134   : > { %v6841_v8 = vunpack.c.l.b16 %v10111_v42  ;;  %1274 = vrot.lane.b32.xlu2 %v1273_v44, %s6206_s23  ;;  %v6851_v39 = vunpack.c.l.b16 %v1184_v54  ;;  %v1239_v48 = vunpack.c.l.b16 %v1190_v13  ;;  %v10113_v20 = vshrl.u32 %v6733_v57, 16 }
 0x135   : > { %v6849_v31 = vunpack.c.l.b16 %v10112_v5  ;;  %1279 = vrot.lane.b32.xlu0 %v1278_v43, %s6207_s24  ;;  %v1168_v49 = vshrl.u32 %v6754_v63, 16  ;;  %v1101_v26 = vperm.slane %v1093_v47, %v6299_v19  ;;  %v1265_v6 = vpack.c.b16 %v1264_v53, %v1263_v61 }
 0x136   : > { %v1145_v45 = vpack.i.b16 %v1144_v23, %v10113_v20  ;;  %v1217_v29 = vpack.i.b16 %v1216_v24, %v1215_v56  ;;  %v1244_v52 = vunpack.c.l.b16 %v1193_v18  ;;  %v1222_v40 = vshrl.u32 %v1129_v3, 16 }
 0x137   : > { %v1132_v38 = vrot.slane %v1129_v3, 4  ;;  %v1238_v46 = vunpack.c.l.b16 %v1142_v21  ;;  %v1169_v57 = vpack.i.b16 %v1168_v49, %v1167_v32  ;;  %v1173_v23 = vshrl.u32 %v6758_v27, 16 }
 0x138   : > { %1266 = vrot.lane.b32.xlu1 %v1265_v6, %s6209_s26  ;;  %v1243_v63 = vunpack.c.l.b16 %v1145_v45  ;;  %v1221_v58 = vshrl.u32 %v1101_v26, 16  ;;  %v1048_v61 = vrot.slane %v6758_v27, 4  ;;  %v1104_v1 = vrot.slane %v1101_v26, 4 }
 0x139   : > { %v1240_v15 = vpack.c.b16 %v1239_v48, %v1238_v46  ;;  %v1282_v10 = vunpack.c.l.b16 %v1217_v29  ;;  %v1220_v60 = vpack.i.b16 %v1129_v3, %v1101_v26  ;;  %v1174_v51 = vshrl.u32 %v6748_v50, 16 }
 0x13a   : > { %v1245_v34 = vpack.c.b16 %v1244_v52, %v1243_v63  ;;  %v1223_v47 = vpack.i.b16 %v1222_v40, %v1221_v58  ;;  %v1076_v9 = vrot.slane %v6748_v50, 4  ;;  %v1133_v53 = vsel %vm347_vm0, 0, %v1132_v38  ;;  %v6886_v63 = vld [vmem:[%s6253_s20 + $0x4] sm:$0xf]  ;;  %v6891_v58 = vld [vmem:[%s6253_s20 + $0xc] sm:$0xf] }
 0x13b   : > { %v1281_v32 = vunpack.c.l.b16 %v1169_v57  ;;  %v1172_v21 = vpack.i.b16 %v6748_v50, %v6758_v27  ;;  %v1175_v13 = vpack.i.b16 %v1174_v51, %v1173_v23  ;;  %v1049_v44 = vsel %vm347_vm0, 0, %v1048_v61  ;;  %v6881_v23 = vld [vmem:[%s6253_s20] sm:$0xf]  ;;  %v6896_v61 = vld [vmem:[%s6253_s20 + $0x10] sm:$0xf] }
 0x13c   : > { %1241 = vrot.lane.b32.xlu2 %v1240_v15, %s6207_s24  ;;  %v1105_v24 = vsel %vm347_vm0, 0, %v1104_v1  ;;  %v1287_v54 = vunpack.c.l.b16 %v1220_v60  ;;  %v1228_v18 = vshrl.u32 %v1133_v53, 16  ;;  %v1292_v3 = vunpack.c.l.b16 %v1223_v47  ;;  %v6901_v1 = vld [vmem:[%s6253_s20 + $0x18] sm:$0xf]  ;;  %v6906_v15 = vld [vmem:[%s6253_s20 + $0x1c] sm:$0xf] }
 0x13d   : > { %1246 = vrot.lane.b32.xlu0 %v1245_v34, %s6210_s27  ;;  %v1283_v55 = vpack.c.b16 %v1282_v10, %v1281_v32  ;;  %v1226_v43 = vpack.i.b16 %v1133_v53, %v1105_v24  ;;  %v1077_v42 = vsel %vm347_vm0, 0, %v1076_v9  ;;  %v1286_v56 = vunpack.c.l.b16 %v1172_v21  ;;  %v6911_v10 = vld [vmem:[%s6253_s20 + $0x24] sm:$0xf]  ;;  %v6916_v60 = vld [vmem:[%s6253_s20 + $0x28] sm:$0xf] }
 0x13e   : > { %v1178_v5 = vpack.i.b16 %v1077_v42, %v1049_v44  ;;  %v1179_v48 = vshrl.u32 %v1049_v44, 16  ;;  %v1227_v50 = vshrl.u32 %v1105_v24, 16  ;;  %v1291_v27 = vunpack.c.l.b16 %v1175_v13  ;;  %v6921_v51 = vld [vmem:[%s6253_s20 + $0x30] sm:$0xf]  ;;  %v6926_v34 = vld [vmem:[%s6253_s20 + $0x34] sm:$0xf] }
 0x13f   : > { %v1288_v20 = vpack.c.b16 %v1287_v54, %v1286_v56  ;;  %v1297_v45 = vunpack.c.l.b16 %v1226_v43  ;;  %v1180_v49 = vshrl.u32 %v1077_v42, 16  ;;  %v6931_v47 = vld [vmem:[%s6253_s20 + $0x3c] sm:$0xf]  ;;  %v6936_v9 = vld [vmem:[%s6253_s20 + $0x40] sm:$0xf] }
 0x140   : > { %1284 = vrot.lane.b32.xlu1 %v1283_v55, %s6210_s27  ;;  %v1229_v26 = vpack.i.b16 %v1228_v18, %v1227_v50  ;;  %v1293_v6 = vpack.c.b16 %v1292_v3, %v1291_v27  ;;  %v1296_v29 = vunpack.c.l.b16 %v1178_v5  ;;  %v6941_v53 = vld [vmem:[%s6253_s20 + $0x48] sm:$0xf]  ;;  %v6946_v32 = vld [vmem:[%s6253_s20 + $0x4c] sm:$0xf]  ;;  %v6951_v21 = vld [vmem:[%s6253_s20 + $0x54] sm:$0xf] }
 0x141   : > { %v1181_v52 = vpack.i.b16 %v1180_v49, %v1179_v48  ;;  %v6956_v13 = vld [vmem:[%s6253_s20 + $0x58] sm:$0xf]  ;;  %v6961_v44 = vld [vmem:[%s6253_s20 + $0x60] sm:$0xf]  ;;  %v6966_v24 = vld [vmem:[%s6253_s20 + $0x64] sm:$0xf] }
 0x142   : > { %v1298_v40 = vpack.c.b16 %v1297_v45, %v1296_v29  ;;  %v1302_v38 = vunpack.c.l.b16 %v1229_v26  ;;  %v6971_v55 = vld [vmem:[%s6253_s20 + $0x6c] sm:$0xf]  ;;  %v6976_v54 = vld [vmem:[%s6253_s20 + $0x70] sm:$0xf]  ;;  %v6981_v43 = vld [vmem:[%s6253_s20 + $0x78] sm:$0xf] }
 0x143   : > { %v1301_v46 = vunpack.c.l.b16 %v1181_v52  ;;  %10114 = vst [vmem:[#allocation7_spill] sm:$0xff] %v6976_v54  ;;  %v6986_v18 = vld [vmem:[%s6253_s20 + $0x7c] sm:$0xf]  ;;  %v6991_v42 = vld [vmem:[%s6253_s20 + $0x84] sm:$0xf]  ;;  %v10125_v29 = vld [vmem:[#allocation11_spill] sm:$0xff] }
 0x144   : > { %1289 = vrot.lane.b32.xlu2 %v1288_v20, %s6204_s21  ;;  %10115 = vst [vmem:[#allocation3_spill] sm:$0xff] %v6981_v43  ;;  %v6996_v56 = vld [vmem:[%s6253_s20 + $0x88] sm:$0xf]  ;;  %v7001_v5 = vld [vmem:[%s6253_s20 + $0x90] sm:$0xf] }
 0x145   : > { %1294 = vrot.lane.b32.xlu0 %v1293_v6, %s6205_s22  ;;  %v1303_v57 = vpack.c.b16 %v1302_v38, %v1301_v46  ;;  %10116 = vst [vmem:[#allocation14_spill] sm:$0xff] %v6986_v18  ;;  %v7006_v50 = vld [vmem:[%s6253_s20 + $0x94] sm:$0xf]  ;;  %v7011_v27 = vld [vmem:[%s6253_s20 + $0x9c] sm:$0xf]  ;;  %v10124_v6 = vld [vmem:[#allocation10_spill] sm:$0xff] }
 0x146   : > { %10117 = vst [vmem:[#allocation12_spill] sm:$0xff] %v6991_v42  ;;  %v7016_v20 = vld [vmem:[%s6253_s20 + $0xa0] sm:$0xf]  ;;  %v7021_v49 = vld [vmem:[%s6253_s20 + $0xa8] sm:$0xf]  ;;  %v621_v52 = vpack.i.b16 %v10125_v29, %v10124_v6  ;;  %v10127_v38 = vld [vmem:[#allocation9_spill] sm:$0xff]  ;;  %v597_v6 = vpack.i.b16 %v6524_v25, %v6521_v16  ;;  %v645_v29 = vpack.i.b16 %v6532_v17, %v6529_v36  ;;  %v10131_v17 = vpack.c.b16 %v6851_v39, %v6849_v31 }
 0x147   : > { %10118 = vst [vmem:[#allocation13_spill] sm:$0xff] %v6996_v56 }
 0x148   : > { %1299 = vrot.lane.b32.xlu1 %v1298_v40, %s6208_s25  ;;  %10119 = vst [vmem:[#allocation6_spill] sm:$0xff] %v7001_v5  ;;  %v10126_v40 = vld [vmem:[#allocation8_spill] sm:$0xff] }
 0x149   : > { %10120 = vst [vmem:[#allocation4_spill] sm:$0xff] %v7006_v50  ;;  %v573_v46 = vpack.i.b16 %v10127_v38, %v10126_v40 }
 0x14a   : > { %10121 = vst [vmem:[#allocation15_spill] sm:$0xff] %v7011_v27 }
 0x14b   : > { %10122 = vst [vmem:[#allocation16_spill] sm:$0xff] %v7016_v20 }
 0x14c   : > { %1304 = vrot.lane.b32.xlu2 %v1303_v57, %s6209_s26  ;;  %10123 = vst [vmem:[#allocation17_spill] sm:$0xff] %v7021_v49  ;;  %v7030_v57 = vld [vmem:[%s6253_s20 + $0xac] sm:$0xf] }
 0x14d   : > { %1446 = vrot.lane.b32.xlu0 %v6881_v23, %s6212_s29  ;;  %10128 = vst [vmem:[#allocation10_spill] sm:$0xff] %v7030_v57 }
 0x14e   : > { %10129 = vst [vmem:[#allocation11_spill] sm:$0xff] %v7035_v59 }
 0x150   : > { %1448 = vrot.lane.b32.xlu1 %v6886_v63, %s6212_s29 }
 0x154   : > { %1450 = vrot.lane.b32.xlu2 %v6891_v58, %s6212_s29 }
 0x155   : > { %1452 = vrot.lane.b32.xlu0 %v6896_v61, %s6212_s29 }
 0x158   : > { %1454 = vrot.lane.b32.xlu1 %v6901_v1, %s6212_s29 }
 0x15c   : > { %1456 = vrot.lane.b32.xlu2 %v6906_v15, %s6212_s29 }
 0x15d   : > { %1458 = vrot.lane.b32.xlu0 %v6911_v10, %s6212_s29 }
 0x160   : > { %1460 = vrot.lane.b32.xlu1 %v6916_v60, %s6212_s29 }
 0x164   : > { %1462 = vrot.lane.b32.xlu2 %v6921_v51, %s6212_s29 }
 0x165   : > { %1464 = vrot.lane.b32.xlu0 %v6926_v34, %s6212_s29 }
 0x168   : > { %1466 = vrot.lane.b32.xlu1 %v6931_v47, %s6212_s29 }
 0x16c   : > { %1468 = vrot.lane.b32.xlu2 %v6936_v9, %s6212_s29 }
 0x16d   : > { %1470 = vrot.lane.b32.xlu0 %v6941_v53, %s6212_s29 }
 0x170   : > { %1472 = vrot.lane.b32.xlu1 %v6946_v32, %s6212_s29 }
 0x174   : > { %1474 = vrot.lane.b32.xlu2 %v6951_v21, %s6212_s29 }
 0x175   : > { %1476 = vrot.lane.b32.xlu0 %v6956_v13, %s6212_s29 }
 0x178   : > { %1478 = vrot.lane.b32.xlu1 %v6961_v44, %s6212_s29 }
 0x17c   : > { %1480 = vrot.lane.b32.xlu2 %v6966_v24, %s6212_s29 }
 0x17d   : > { %1482 = vrot.lane.b32.xlu0 %v6971_v55, %s6212_s29 }
 0x180   : > { %1484 = vrot.lane.b32.xlu1 %v6976_v54, %s6212_s29 }
 0x184   : > { %1486 = vrot.lane.b32.xlu2 %v6981_v43, %s6212_s29  ;;  %v1257_v3 = vpop.permute.xlu2 %1256 }
 0x185   : > { %1488 = vrot.lane.b32.xlu0 %v6986_v18, %s6212_s29 }
 0x188   : > { %1490 = vrot.lane.b32.xlu1 %v6991_v42, %s6212_s29 }
 0x18c   : > { %1492 = vrot.lane.b32.xlu2 %v6996_v56, %s6212_s29 }
 0x18d   : > { %1494 = vrot.lane.b32.xlu0 %v7001_v5, %s6212_s29 }
 0x18e   : > { %v1275_v48 = vpop.permute.xlu2 %1274 }
 0x190   : > { %1496 = vrot.lane.b32.xlu1 %v7006_v50, %s6212_s29  ;;  %v7040_v50 = vld [vmem:[%s6253_s20 + $0xb8] sm:$0xf] }
 0x191   : > { %10130 = vst [vmem:[#allocation8_spill] sm:$0xff] %v7040_v50 }
 0x194   : > { %1498 = vrot.lane.b32.xlu2 %v7011_v27, %s6212_s29 }
 0x195   : > { %1500 = vrot.lane.b32.xlu0 %v7016_v20, %s6212_s29  ;;  %v668_v20 = vunpack.c.l.b16 %v621_v52 }
 0x196   : > { %v1242_v45 = vpop.permute.xlu2 %1241 }
 0x198   : > { %1502 = vrot.lane.b32.xlu1 %v7021_v49, %s6212_s29  ;;  %v667_v49 = vunpack.c.l.b16 %v573_v46 }
 0x19a   : > { %v1252_v26 = vpop.permute.xlu1 %1251  ;;  %v669_v38 = vpack.c.b16 %v668_v20, %v667_v49 }
 0x19c   : > { %1504 = vrot.lane.b32.xlu2 %v7030_v57, %s6212_s29  ;;  %v706_v57 = vunpack.c.l.b16 %v645_v29  ;;  %v746_v46 = vsel %vm743_vm1, %v669_v38, %v6643_v14  ;;  %v10133_v38 = vld [vmem:[#allocation2_spill] sm:$0xff] }
 0x19d   : > { %1506 = vrot.lane.b32.xlu0 %v7035_v59, %s6212_s29  ;;  %v1262_v27 = vpop.permute.xlu0 %1261  ;;  %v705_v59 = vunpack.c.l.b16 %v597_v6 }
 0x19e   : > { %v1290_v28 = vpop.permute.xlu2 %1289 }
 0x19f   : > { %v707_v56 = vpack.c.b16 %v706_v57, %v705_v59 }
 0x1a0   : > { %1508 = vrot.lane.b32.xlu1 %v7040_v50, %s6212_s29  ;;  %v749_v50 = vsel %vm747_vm2, %v746_v46, %v6655_v41 }
 0x1a1   : > { %v752_v16 = vsel %vm750_vm3, %v749_v50, %v6661_v37  ;;  %v768_v14 = vsel %vm743_vm1, %v707_v56, %v6657_v0 }
 0x1a2   : > { %v1237_v40 = vpop.permute.xlu1 %1236  ;;  %v755_v36 = vsel %vm753_vm4, %v752_v16, %v6639_v12  ;;  %v770_v12 = vsel %vm747_vm2, %v768_v14, %v6649_v30 }
 0x1a3   : > { %v1308_v20 = vsel %vm743_vm1, %v10131_v17, %v1237_v40  ;;  %v758_v37 = vsel %vm756_vm5, %v755_v36, %v6619_v4  ;;  %v772_v56 = vsel %vm750_vm3, %v770_v12, %v6663_v62  ;;  %v10132_v4 = vpack.c.b16 %v6844_v2, %v6841_v8 }
 0x1a4   : > { %v1310_v41 = vsel %vm747_vm2, %v1308_v20, %v1242_v45  ;;  %v761_v0 = vsel %vm759_vm6, %v758_v37, %v6637_v11  ;;  %v774_v11 = vsel %vm753_vm4, %v772_v56, %v6651_v35 }
 0x1a5   : > { %v1324_v30 = vsel %vm743_vm1, %v10132_v4, %v1275_v48  ;;  %v776_v8 = vsel %vm756_vm5, %v774_v11, %v6629_v7 }
 0x1a6   : > { %v1305_v52 = vpop.permute.xlu2 %1304 }
 0x1a7   : > { %v1280_v5 = vpop.permute.xlu0 %1279 }
 0x1aa   : > { %v1267_v25 = vpop.permute.xlu1 %1266 }
 0x1ae   : > { %v1451_v49 = vpop.permute.xlu2 %1450 }
 0x1af   : > { %v1247_v59 = vpop.permute.xlu0 %1246 }
 0x1b0   : > { %v1312_v50 = vsel %vm750_vm3, %v1310_v41, %v1247_v59 }
 0x1b1   : > { %v1314_v31 = vsel %vm753_vm4, %v1312_v50, %v1252_v26  ;;  %v1326_v26 = vsel %vm747_vm2, %v1324_v30, %v1280_v5  ;;  %v778_v5 = vsel %vm759_vm6, %v776_v8, %v6667_v33 }
 0x1b2   : > { %v1285_v39 = vpop.permute.xlu1 %1284  ;;  %v1316_v57 = vsel %vm756_vm5, %v1314_v31, %v1257_v3  ;;  %v764_v3 = vsel %vm762_vm7, %v761_v0, %v6659_v22  ;;  %v780_v46 = vsel %vm762_vm7, %v778_v5, %v10133_v38 }
 0x1b3   : > { %v1318_v45 = vsel %vm759_vm6, %v1316_v57, %v1262_v27  ;;  %v1328_v62 = vsel %vm750_vm3, %v1326_v26, %v1285_v39 }
 0x1b4   : > { %v1320_v6 = vsel %vm762_vm7, %v1318_v45, %v1267_v25  ;;  %v1330_v2 = vsel %vm753_vm4, %v1328_v62, %v1290_v28 }
 0x1b5   : > { %1361 = vmatpush.bf16.msra.mxu0 %v1320_v6  ;;  %6073 = vmatpush.bf16.msra.mxu2 %v1320_v6  ;;  %v10134_v6 = vld [vmem:[#allocation5_spill] sm:$0xff] }
 0x1b6   : > { %v1457_v27 = vpop.permute.xlu2 %1456 }
 0x1b7   : > { %v1295_v29 = vpop.permute.xlu0 %1294 }
 0x1b8   : > { %v1332_v48 = vsel %vm756_vm5, %v1330_v2, %v1295_v29 }
 0x1b9   : > { %1415 = vmatpush.bf16.msrb.mxu2 %v764_v3 }
 0x1ba   : > { %v1300_v40 = vpop.permute.xlu1 %1299 }
 0x1bb   : > { %v1334_v22 = vsel %vm759_vm6, %v1332_v48, %v1300_v40 }
 0x1bc   : > { %v1336_v35 = vsel %vm762_vm7, %v1334_v22, %v1305_v52 }
 0x1bd   : > { %1380 = vmatpush.bf16.msra.mxu1 %v1336_v35  ;;  %6074 = vmatpush.bf16.msra.mxu3 %v1336_v35 }
 0x1be   : > { %v1463_v16 = vpop.permute.xlu2 %1462 }
 0x1bf   : > { %v1447_v7 = vpop.permute.xlu0 %1446  ;;  %v1542_v39 = vrot.slane %v1463_v16, 4 }
 0x1c1   : > { %1434 = vmatpush.bf16.msrb.mxu3 %v780_v46  ;;  %v1543_v4 = vsel %vm347_vm0, %v1542_v39, %v1447_v7 }
 0x1c2   : > { %v1449_v25 = vpop.permute.xlu1 %1448  ;;  %v1547_v29 = vperm.slane %v1543_v4, %v10134_v6 }
 0x1c4   : > { %v1556_v22 = vrot.slane %v1547_v29, 4 }
 0x1c6   : > { %v1469_v28 = vpop.permute.xlu2 %1468 }
 0x1c7   : > { %v1453_v36 = vpop.permute.xlu0 %1452  ;;  %v1682_v46 = vrot.slane %v1469_v28, 4 }
 0x1ca   : > { %v1455_v17 = vpop.permute.xlu1 %1454 }
 0x1ce   : > { %v1475_v33 = vpop.permute.xlu2 %1474 }
 0x1cf   : > { %v1459_v20 = vpop.permute.xlu0 %1458  ;;  %v1576_v50 = vrot.slane %v1475_v33, 4 }
 0x1d1   : > { %v1577_v45 = vsel %vm347_vm0, %v1576_v50, %v1459_v20 }
 0x1d2   : > { %v1461_v14 = vpop.permute.xlu1 %1460  ;;  %v1581_v11 = vperm.slane %v1577_v45, %v10134_v6 }
 0x1d4   : > { %v1582_v48 = vrot.slane %v1581_v11, 4 }
 0x1d6   : > { %v7096_v41 = vpop.permute.xlu2 %1480 }
 0x1d7   : > { %v1465_v59 = vpop.permute.xlu0 %1464 }
 0x1d8   : > { %v1654_v16 = vrot.slane %v1465_v59, 4  ;;  %v1683_v59 = vsel %vm347_vm0, %v1682_v46, %v1453_v36 }
 0x1da   : > { %v1467_v37 = vpop.permute.xlu1 %1466 }
 0x1db   : > { %v1570_v57 = vrot.slane %v1467_v37, 4 }
 0x1dd   : > { %v1571_v30 = vsel %vm347_vm0, %v1570_v57, %v1451_v49  ;;  %v1655_v57 = vsel %vm347_vm0, %v1654_v16, %v1449_v25 }
 0x1de   : > { %v7098_v52 = vpop.permute.xlu2 %1486  ;;  %v1575_v8 = vperm.slane %v1571_v30, %v10134_v6  ;;  %v1659_v30 = vperm.slane %v1655_v57, %v10134_v6 }
 0x1df   : > { %v1471_v12 = vpop.permute.xlu0 %1470 }
 0x1e0   : > { %v1548_v31 = vrot.slane %v1471_v12, 4  ;;  %v1584_v35 = vrot.slane %v1575_v8, 4  ;;  %v1583_v49 = vsel %vm347_vm0, %v1582_v48, %v1575_v8 }
 0x1e1   : > { %v7117_v12 = vperm.slane %v1583_v49, %v6299_v19 }
 0x1e2   : > { %v1473_v0 = vpop.permute.xlu1 %1472  ;;  %v1549_v56 = vsel %vm347_vm0, %v1548_v31, %v1455_v17  ;;  %v1585_v50 = vsel %vm347_vm0, %v1581_v11, %v1584_v35 }
 0x1e3   : > { %v1553_v26 = vperm.slane %v1549_v56, %v10134_v6  ;;  %v1660_v38 = vrot.slane %v1473_v0, 4  ;;  %10135 = vst [vmem:[#allocation9_spill] sm:$0xff] %v7117_v12  ;;  %v1593_v56 = vperm.slane %v1585_v50, %v6299_v19  ;;  %v1594_v4 = vrot.slane %v7117_v12, 4 }
 0x1e4   : > { %v1770_v16 = vshrl.u32 %v7117_v12, 16 }
 0x1e5   : > { %v1554_v2 = vrot.slane %v1553_v26, 4  ;;  %v1557_v17 = vsel %vm347_vm0, %v1553_v26, %v1556_v22  ;;  %v1661_v31 = vsel %vm347_vm0, %v1660_v38, %v1457_v27  ;;  %v1687_v27 = vperm.slane %v1683_v59, %v10134_v6 }
 0x1e6   : > { %v7105_v3 = vpop.permute.xlu2 %1492  ;;  %v1565_v28 = vperm.slane %v1557_v17, %v6299_v19  ;;  %v1665_v45 = vperm.slane %v1661_v31, %v10134_v6  ;;  %v1596_v25 = vrot.slane %v1593_v56, 4  ;;  %v1782_v50 = vshrl.u32 %v1593_v56, 16 }
 0x1e7   : > { %v1477_v62 = vpop.permute.xlu0 %1476  ;;  %v1555_v7 = vsel %vm347_vm0, %v1554_v2, %v1547_v29  ;;  %v1595_v2 = vsel %vm347_vm0, 0, %v1594_v4  ;;  %v1696_v48 = vrot.slane %v1687_v27, 4 }
 0x1e8   : > { %v1688_v40 = vrot.slane %v1477_v62, 4  ;;  %v7122_v39 = vperm.slane %v1555_v7, %v6299_v19  ;;  %v1568_v11 = vrot.slane %v1565_v28, 4  ;;  %v1666_v29 = vrot.slane %v1665_v45, 4 }
 0x1e9   : > { %v1781_v7 = vshrl.u32 %v1565_v28, 16  ;;  %v1597_v31 = vsel %vm347_vm0, 0, %v1596_v25 }
 0x1ea   : > { %v7110_v5 = vpop.permute.xlu1 %1478  ;;  %v1689_v20 = vsel %vm347_vm0, %v1688_v40, %v1461_v14  ;;  %10136 = vst [vmem:[#allocation2_spill] sm:$0xff] %v7122_v39  ;;  %v1566_v26 = vrot.slane %v7122_v39, 4  ;;  %v1668_v40 = vrot.slane %v1659_v30, 4  ;;  %v1569_v35 = vsel %vm347_vm0, 0, %v1568_v11 }
 0x1eb   : > { %v1693_v0 = vperm.slane %v1689_v20, %v10134_v6  ;;  %v1769_v46 = vshrl.u32 %v7122_v39, 16  ;;  %v1776_v20 = vshrl.u32 %v1595_v2, 16  ;;  %v1667_v59 = vsel %vm347_vm0, %v1666_v29, %v1659_v30 }
 0x1ec   : > { %v1567_v22 = vsel %vm347_vm0, 0, %v1566_v26  ;;  %v1787_v26 = vshrl.u32 %v1569_v35, 16  ;;  %v1786_v43 = vpack.i.b16 %v1597_v31, %v1569_v35  ;;  %v1788_v54 = vshrl.u32 %v1597_v31, 16 }
 0x1ed   : > { %v1694_v36 = vrot.slane %v1693_v0, 4  ;;  %v1697_v57 = vsel %vm347_vm0, %v1693_v0, %v1696_v48  ;;  %v1775_v4 = vshrl.u32 %v1567_v22, 16  ;;  %v7151_v18 = vpack.i.b16 %v1770_v16, %v1769_v46 }
 0x1ee   : > { %v1499_v33 = vpop.permute.xlu2 %1498  ;;  %v7157_v0 = vperm.slane %v1667_v59, %v6299_v19  ;;  %v1705_v29 = vperm.slane %v1697_v57, %v6299_v19 }
 0x1ef   : > { %v1483_v37 = vpop.permute.xlu0 %1482  ;;  %v1695_v49 = vsel %vm347_vm0, %v1694_v36, %v1687_v27  ;;  %v1669_v27 = vsel %vm347_vm0, %v1665_v45, %v1668_v40  ;;  %v1626_v11 = vrot.slane %v1499_v33, 4  ;;  %v1780_v36 = vpack.i.b16 %v1593_v56, %v1565_v28 }
 0x1f0   : > { %v7149_v42 = vperm.slane %v1695_v49, %v6299_v19  ;;  %10138 = vst [vmem:[#allocation19_spill] sm:$0xff] %v7157_v0  ;;  %v1774_v45 = vpack.i.b16 %v1595_v2, %v1567_v22  ;;  %v7160_v33 = vpack.i.b16 %v1776_v20, %v1775_v4  ;;  %v7162_v28 = vpack.i.b16 %v1788_v54, %v1787_v26 }
 0x1f1   : > { %v1627_v56 = vsel %vm347_vm0, %v1626_v11, %v1483_v37  ;;  %v7165_v48 = vunpack.c.l.b16 %v1780_v36  ;;  %v1677_v35 = vperm.slane %v1669_v27, %v6299_v19  ;;  %v7172_v2 = vunpack.c.l.b16 %v1786_v43 }
 0x1f2   : > { %v7128_v14 = vpop.permute.xlu1 %1484  ;;  %10137 = vst [vmem:[#allocation18_spill] sm:$0xff] %v7149_v42  ;;  %v1706_v40 = vrot.slane %v7149_v42, 4  ;;  %v1708_v37 = vrot.slane %v1705_v29, 4  ;;  %v7178_v20 = vunpack.c.l.b16 %v1774_v45  ;;  %v1793_v43 = vshrl.u32 %v7157_v0, 16 }
 0x1f3   : > { %v1680_v4 = vrot.slane %v1677_v35, 4  ;;  %v1794_v11 = vshrl.u32 %v7149_v42, 16  ;;  %v1804_v36 = vpack.i.b16 %v1705_v29, %v1677_v35 }
 0x1f4   : > { %v1707_v57 = vsel %vm347_vm0, 0, %v1706_v40 }
 0x1f5   : > { %v1800_v40 = vshrl.u32 %v1707_v57, 16  ;;  %v1681_v16 = vsel %vm347_vm0, 0, %v1680_v4 }
 0x1f6   : > { %v1505_v8 = vpop.permute.xlu2 %1504  ;;  %v1811_v4 = vshrl.u32 %v1681_v16, 16 }
 0x1f7   : > { %v1489_v62 = vpop.permute.xlu0 %1488  ;;  %v1716_v17 = vrot.slane %v1505_v8, 4  ;;  %v7153_v8 = vpack.i.b16 %v1782_v50, %v1781_v7  ;;  %v1678_v7 = vrot.slane %v7157_v0, 4  ;;  %v1805_v50 = vshrl.u32 %v1677_v35, 16 }
 0x1f9   : > { %v1717_v25 = vsel %vm347_vm0, %v1716_v17, %v1489_v62  ;;  %v7176_v17 = vperm.slane %v1627_v56, %v10134_v6  ;;  %v1679_v45 = vsel %vm347_vm0, 0, %v1678_v7  ;;  %v1806_v56 = vshrl.u32 %v1705_v29, 16 }
 0x1fa   : > { %v7140_v38 = vpop.permute.xlu1 %1490  ;;  %v1721_v62 = vperm.slane %v1717_v25, %v10134_v6  ;;  %v1799_v7 = vshrl.u32 %v1679_v45, 16 }
 0x1fb   : > { %v1640_v31 = vrot.slane %v7176_v17, 4  ;;  %v7202_v35 = vpack.i.b16 %v1806_v56, %v1805_v50 }
 0x1fc   : > { %v1722_v26 = vrot.slane %v1721_v62, 4  ;;  %v7204_v0 = vpack.i.b16 %v1800_v40, %v1799_v7 }
 0x1ff   : > { %v1495_v30 = vpop.permute.xlu0 %1494 }
 0x200   : > { %v1598_v22 = vrot.slane %v1495_v30, 4 }
 0x202   : > { %v1497_v49 = vpop.permute.xlu1 %1496  ;;  %v1599_v25 = vsel %vm347_vm0, %v1598_v22, %v7110_v5 }
 0x203   : > { %v1710_v54 = vrot.slane %v1497_v49, 4  ;;  %v1603_v5 = vperm.slane %v1599_v25, %v10134_v6 }
 0x205   : > { %v1711_v59 = vsel %vm347_vm0, %v1710_v54, %v7096_v41  ;;  %v1709_v41 = vsel %vm347_vm0, 0, %v1708_v37 }
 0x206   : > { %v1715_v27 = vperm.slane %v1711_v59, %v10134_v6  ;;  %v1812_v37 = vshrl.u32 %v1709_v41, 16 }
 0x207   : > { %v1501_v30 = vpop.permute.xlu0 %1500 }
 0x208   : > { %v1723_v49 = vsel %vm347_vm0, %v1722_v26, %v1715_v27  ;;  %v1724_v54 = vrot.slane %v1715_v27, 4  ;;  %v1738_v46 = vrot.slane %v1501_v30, 4  ;;  %v7200_v26 = vpack.i.b16 %v1794_v11, %v1793_v43 }
 0x209   : > { %v7195_v59 = vperm.slane %v1723_v49, %v6299_v19  ;;  %v1798_v27 = vpack.i.b16 %v1707_v57, %v1679_v45  ;;  %v7209_v30 = vunpack.c.l.b16 %v1804_v36  ;;  %v1810_v11 = vpack.i.b16 %v1709_v41, %v1681_v16 }
 0x20a   : > { %v1503_v22 = vpop.permute.xlu1 %1502  ;;  %v1725_v29 = vsel %vm347_vm0, %v1721_v62, %v1724_v54  ;;  %v1739_v25 = vsel %vm347_vm0, %v1738_v46, %v7128_v14  ;;  %v1612_v57 = vrot.slane %v1603_v5, 4  ;;  %v7218_v56 = vpack.i.b16 %v1812_v37, %v1811_v4 }
 0x20b   : > { %10139 = vst [vmem:[#allocation20_spill] sm:$0xff] %v7195_v59  ;;  %v1604_v42 = vrot.slane %v1503_v22, 4  ;;  %v7207_v49 = vperm.slane %v1725_v29, %v6299_v19  ;;  %v1734_v43 = vrot.slane %v7195_v59, 4  ;;  %v7221_v40 = vunpack.c.l.b16 %v1798_v27 }
 0x20c   : > { %v7233_v37 = vunpack.c.l.b16 %v1810_v11  ;;  %v1841_v11 = vshrl.u32 %v7195_v59, 16 }
 0x20d   : > { %v1605_v62 = vsel %vm347_vm0, %v1604_v42, %v7098_v52  ;;  %v1736_v45 = vrot.slane %v7207_v49, 4  ;;  %v1743_v52 = vperm.slane %v1739_v25, %v10134_v6  ;;  %v7230_v7 = vsel %vm347_vm0, 0, %v1734_v43 }
 0x20e   : > { %v1609_v50 = vperm.slane %v1605_v62, %v10134_v6 }
 0x20f   : > { %v1507_v54 = vpop.permute.xlu0 %1506  ;;  %v7239_v25 = vsel %vm347_vm0, 0, %v1736_v45 }
 0x210   : > { %v1610_v46 = vrot.slane %v1609_v50, 4  ;;  %v1613_v16 = vsel %vm347_vm0, %v1609_v50, %v1612_v57  ;;  %v1632_v41 = vrot.slane %v1507_v54, 4 }
 0x211   : > { %v1621_v22 = vperm.slane %v1613_v16, %v6299_v19  ;;  %v1752_v16 = vrot.slane %v1743_v52, 4 }
 0x212   : > { %v1611_v27 = vsel %vm347_vm0, %v1610_v46, %v1603_v5  ;;  %v1633_v4 = vsel %vm347_vm0, %v1632_v41, %v7140_v38  ;;  %v1509_v62 = vpop.permute.xlu1 %1508 }
 0x213   : > { %v1637_v50 = vperm.slane %v1633_v4, %v10134_v6  ;;  %v1744_v54 = vrot.slane %v1509_v62, 4  ;;  %v7244_v43 = vperm.slane %v1611_v27, %v6299_v19  ;;  %v1624_v42 = vrot.slane %v1621_v22, 4 }
 0x214   : > { %v1829_v5 = vshrl.u32 %v1621_v22, 16 }
 0x215   : > { %10140 = vst [vmem:[#allocation21_spill] sm:$0xff] %v7244_v43  ;;  %v1638_v46 = vrot.slane %v1637_v50, 4  ;;  %v1641_v45 = vsel %vm347_vm0, %v1637_v50, %v1640_v31  ;;  %v1745_v41 = vsel %vm347_vm0, %v1744_v54, %v7105_v3  ;;  %v1622_v27 = vrot.slane %v7244_v43, 4 }
 0x216   : > { %v1749_v62 = vperm.slane %v1745_v41, %v10134_v6  ;;  %v1649_v57 = vperm.slane %v1641_v45, %v6299_v19  ;;  %v1625_v14 = vsel %vm347_vm0, 0, %v1624_v42  ;;  %v1817_v38 = vshrl.u32 %v7244_v43, 16 }
 0x217   : > { %v1639_v29 = vsel %vm347_vm0, %v1638_v46, %v7176_v17  ;;  %v1835_v31 = vshrl.u32 %v1625_v14, 16  ;;  %v1623_v41 = vsel %vm347_vm0, 0, %v1622_v27 }
 0x218   : > { %v1750_v50 = vrot.slane %v1749_v62, 4  ;;  %v1753_v3 = vsel %vm347_vm0, %v1749_v62, %v1752_v16  ;;  %v7262_v54 = vperm.slane %v1639_v29, %v6299_v19  ;;  %v1823_v4 = vshrl.u32 %v1623_v41, 16 }
 0x219   : > { %v1828_v36 = vpack.i.b16 %v1649_v57, %v1621_v22  ;;  %v1830_v45 = vshrl.u32 %v1649_v57, 16  ;;  %v1652_v59 = vrot.slane %v1649_v57, 4  ;;  %v1761_v39 = vperm.slane %v1753_v3, %v6299_v19 }
 0x21a   : > { %10141 = vst [vmem:[#allocation22_spill] sm:$0xff] %v7262_v54  ;;  %v1751_v42 = vsel %vm347_vm0, %v1750_v50, %v1743_v52  ;;  %v1818_v17 = vshrl.u32 %v7262_v54, 16  ;;  %v1650_v46 = vrot.slane %v7262_v54, 4 }
 0x21b   : > { %v7269_v12 = vunpack.c.l.b16 %v1828_v36  ;;  %v1831_v16 = vpack.i.b16 %v1830_v45, %v1829_v5  ;;  %v1653_v29 = vsel %vm347_vm0, 0, %v1652_v59  ;;  %v7273_v62 = vperm.slane %v1751_v42, %v6299_v19 }
 0x21c   : > { %v1819_v27 = vpack.i.b16 %v1818_v17, %v1817_v38  ;;  %v1651_v22 = vsel %vm347_vm0, 0, %v1650_v46  ;;  %v1834_v57 = vpack.i.b16 %v1653_v29, %v1625_v14  ;;  %v1836_v43 = vshrl.u32 %v1653_v29, 16 }
 0x21d   : > { %v1822_v52 = vpack.i.b16 %v1651_v22, %v1623_v41  ;;  %v1824_v50 = vshrl.u32 %v1651_v22, 16  ;;  %v1882_v54 = vpack.c.b16 %v7269_v12, %v7165_v48  ;;  %v1886_v6 = vunpack.c.l.b16 %v1831_v16 }
 0x21e   : > { %v1866_v3 = vunpack.c.l.b16 %v1819_v27  ;;  %v7278_v36 = vunpack.c.l.b16 %v1834_v57  ;;  %v1837_v5 = vpack.i.b16 %v1836_v43, %v1835_v31  ;;  %v1842_v59 = vshrl.u32 %v7273_v62, 16 }
 0x21f   : > { %v1871_v45 = vunpack.c.l.b16 %v1822_v52  ;;  %v1825_v42 = vpack.i.b16 %v1824_v50, %v1823_v4  ;;  %v10142_v38 = vunpack.c.l.b16 %v7153_v8  ;;  %v1762_v14 = vrot.slane %v7273_v62, 4 }
 0x220   : > { %v10143_v41 = vunpack.c.l.b16 %v7151_v18  ;;  %v1892_v12 = vpack.c.b16 %v7278_v36, %v7172_v2  ;;  %v1896_v48 = vunpack.c.l.b16 %v1837_v5  ;;  %v1843_v16 = vpack.i.b16 %v1842_v59, %v1841_v11 }
 0x221   : > { %v1887_v17 = vpack.c.b16 %v1886_v6, %v10142_v38  ;;  %v1872_v29 = vpack.c.b16 %v1871_v45, %v7178_v20  ;;  %v1876_v43 = vunpack.c.l.b16 %v1825_v42  ;;  %v1763_v31 = vsel %vm347_vm0, 0, %v1762_v14 }
 0x222   : > { %v1867_v46 = vpack.c.b16 %v1866_v3, %v10143_v41  ;;  %v1852_v4 = vpack.i.b16 %v1761_v39, %v7207_v49  ;;  %v10144_v6 = vunpack.c.l.b16 %v7162_v28  ;;  %v1904_v18 = vunpack.c.l.b16 %v1843_v16 }
 0x223   : > { %v1846_v27 = vpack.i.b16 %v1763_v31, %v7230_v7  ;;  %v1848_v22 = vshrl.u32 %v1763_v31, 16  ;;  %1873 = vrot.lane.b32.xlu0 %v1872_v29, %s6207_s24  ;;  %v10145_v2 = vunpack.c.l.b16 %v7160_v33  ;;  %v1854_v57 = vshrl.u32 %v1761_v39, 16 }
 0x224   : > { %1868 = vrot.lane.b32.xlu2 %v1867_v46, %s6206_s23  ;;  %v7294_v8 = vpack.c.b16 %v1896_v48, %v10144_v6  ;;  %v7300_v11 = vunpack.c.l.b16 %v1852_v4  ;;  %v1764_v52 = vrot.slane %v1761_v39, 4  ;;  %v10146_v50 = vunpack.c.l.b16 %v7200_v26 }
 0x225   : > { %v1877_v20 = vpack.c.b16 %v1876_v43, %v10145_v2  ;;  %v7306_v28 = vunpack.c.l.b16 %v1846_v27  ;;  %v10147_v36 = vshrl.u32 %v7230_v7, 16  ;;  %v10148_v59 = vshrl.u32 %v7207_v49, 16 }
 0x226   : > { %v7304_v3 = vpack.c.b16 %v1904_v18, %v10146_v50  ;;  %v1920_v33 = vpack.c.b16 %v7300_v11, %v7209_v30  ;;  %v1765_v39 = vsel %vm347_vm0, 0, %v1764_v52  ;;  %v2036_v41 = vshrl.u32 %v6881_v23, 16 }
 0x227   : > { %v1849_v5 = vpack.i.b16 %v1848_v22, %v10147_v36  ;;  %1878 = vrot.lane.b32.xlu1 %v1877_v20, %s6210_s27  ;;  %v1855_v45 = vpack.i.b16 %v1854_v57, %v10148_v59  ;;  %v1910_v26 = vpack.c.b16 %v7306_v28, %v7221_v40  ;;  %v1858_v38 = vpack.i.b16 %v1765_v39, %v7239_v25 }
 0x228   : > { %v1860_v7 = vshrl.u32 %v1765_v39, 16  ;;  %v2039_v46 = vshll.u32 %v6881_v23, 16  ;;  %v2045_v48 = vshll.u32 %v6886_v63, 16  ;;  %v10149_v49 = vunpack.c.l.b16 %v7204_v0 }
 0x229   : > { %v1914_v42 = vunpack.c.l.b16 %v1849_v5  ;;  %v1924_v14 = vunpack.c.l.b16 %v1855_v45  ;;  %v7326_v29 = vunpack.c.l.b16 %v1858_v38  ;;  %v10150_v43 = vshrl.u32 %v7239_v25, 16 }
 0x22a   : > { %v2060_v4 = vshrl.u32 %v6891_v58, 16  ;;  %v10151_v6 = vunpack.c.l.b16 %v7202_v35  ;;  %v2038_v27 = vrot.slane %v2036_v41, 4  ;;  %v2041_v22 = vrot.slane %v2039_v46, 5 }
 0x22b   : > { %v7324_v16 = vpack.c.b16 %v1914_v42, %v10149_v49  ;;  %v1861_v31 = vpack.i.b16 %v1860_v7, %v10150_v43  ;;  %v7335_v23 = vrot.slane %v2045_v48, 5  ;;  %v1930_v63 = vpack.c.b16 %v7326_v29, %v7233_v37  ;;  %1888 = vrot.lane.b32.xlu0 %v1887_v17, %s6205_s22 }
 0x22c   : > { %v7333_v18 = vpack.c.b16 %v1924_v14, %v10151_v6  ;;  %1883 = vrot.lane.b32.xlu2 %v1882_v54, %s6204_s21  ;;  %v2062_v2 = vrot.slane %v2060_v4, 4  ;;  %v2063_v25 = vshll.u32 %v6891_v58, 16  ;;  %v2042_v20 = vor.u32 %v2041_v22, %v2038_v27 }
 0x22d   : > { %v1934_v0 = vunpack.c.l.b16 %v1861_v31  ;;  %v2069_v35 = vshll.u32 %v6896_v61, 16  ;;  %v2084_v57 = vshrl.u32 %v6901_v1, 16  ;;  %v2087_v52 = vshll.u32 %v6901_v1, 16 }
 0x22e   : > { %v10152_v50 = vunpack.c.l.b16 %v7218_v56  ;;  %v2065_v54 = vrot.slane %v2063_v25, 5  ;;  %v2093_v5 = vshll.u32 %v6906_v15, 16  ;;  %v2108_v59 = vshrl.u32 %v6911_v10, 16 }
 0x22f   : > { %1893 = vrot.lane.b32.xlu1 %v1892_v12, %s6208_s25  ;;  %v2043_v58 = vrot.slane %v2042_v20, 4  ;;  %v7352_v17 = vrot.slane %v2069_v35, 5  ;;  %v2086_v45 = vrot.slane %v2084_v57, 4  ;;  %v2089_v61 = vrot.slane %v2087_v52, 5 }
 0x230   : > { %v7347_v36 = vpack.c.b16 %v1934_v0, %v10152_v50  ;;  %v2066_v56 = vor.u32 %v2065_v54, %v2062_v2  ;;  %v7360_v39 = vrot.slane %v2093_v5, 5  ;;  %v2110_v42 = vrot.slane %v2108_v59, 4 }
 0x231   : > { %v2111_v15 = vshll.u32 %v6911_v10, 16  ;;  %v7366_v12 = vsel %vm7356_vm10, %v2043_v58, %v7335_v23  ;;  %v2090_v38 = vor.u32 %v2089_v61, %v2086_v45  ;;  %v2117_v7 = vshll.u32 %v6916_v60, 16 }
 0x232   : > { %v2132_v14 = vshrl.u32 %v6921_v51, 16  ;;  %v2067_v41 = vrot.slane %v2066_v56, 4  ;;  %v2135_v48 = vshll.u32 %v6921_v51, 16  ;;  %v2141_v49 = vshll.u32 %v6926_v34, 16 }
 0x233   : > { %v2113_v46 = vrot.slane %v2111_v15, 5  ;;  %v2091_v43 = vrot.slane %v2090_v38, 4  ;;  %v7372_v31 = vrot.slane %v2117_v7, 5  ;;  %v2156_v4 = vshrl.u32 %v6931_v47, 16  ;;  %1906 = vrot.lane.b32.xlu0 %v7304_v3, %s6206_s23 }
 0x234   : > { %v2134_v10 = vrot.slane %v2132_v14, 4  ;;  %1898 = vrot.lane.b32.xlu2 %v7294_v8, %s6209_s26  ;;  %v7380_v60 = vsel %vm7356_vm10, %v2067_v41, %v7352_v17  ;;  %v2137_v27 = vrot.slane %v2135_v48, 5  ;;  %v7382_v22 = vrot.slane %v2141_v49, 5  ;;  %v10155_v49 = vld [vmem:[#allocation7_spill] sm:$0xff] }
 0x235   : > { %v2114_v6 = vor.u32 %v2113_v46, %v2110_v42  ;;  %v7389_v51 = vsel %vm7356_vm10, %v2091_v43, %v7360_v39  ;;  %v2158_v34 = vrot.slane %v2156_v4, 4  ;;  %v2159_v8 = vshll.u32 %v6931_v47, 16  ;;  %v10156_v43 = vld [vmem:[#allocation3_spill] sm:$0xff] }
 0x236   : > { %v2165_v0 = vshll.u32 %v6936_v9, 16  ;;  %v2138_v25 = vor.u32 %v2137_v27, %v2134_v10  ;;  %v2180_v20 = vshrl.u32 %v6941_v53, 16  ;;  %v2183_v35 = vshll.u32 %v6941_v53, 16 }
 0x237   : > { %v2115_v2 = vrot.slane %v2114_v6, 4  ;;  %1911 = vrot.lane.b32.xlu1 %v1910_v26, %s6207_s24  ;;  %v2161_v3 = vrot.slane %v2159_v8, 5  ;;  %v2189_v52 = vshll.u32 %v6946_v32, 16  ;;  %v2204_v47 = vshrl.u32 %v6951_v21, 16 }
 0x238   : > { %v7399_v57 = vrot.slane %v2165_v0, 5  ;;  %v2139_v50 = vrot.slane %v2138_v25, 4  ;;  %v2182_v54 = vrot.slane %v2180_v20, 4  ;;  %v2185_v53 = vrot.slane %v2183_v35, 5  ;;  %v10158_v0 = vld [vmem:[#allocation12_spill] sm:$0xff] }
 0x239   : > { %v7406_v9 = vsel %vm7356_vm10, %v2115_v2, %v7372_v31  ;;  %v2162_v5 = vor.u32 %v2161_v3, %v2158_v34  ;;  %v7408_v59 = vrot.slane %v2189_v52, 5  ;;  %v2206_v40 = vrot.slane %v2204_v47, 4  ;;  %v10157_v34 = vld [vmem:[#allocation14_spill] sm:$0xff] }
 0x23a   : > { %v2207_v28 = vshll.u32 %v6951_v21, 16  ;;  %v7414_v32 = vsel %vm7356_vm10, %v2139_v50, %v7382_v22  ;;  %v2186_v26 = vor.u32 %v2185_v53, %v2182_v54  ;;  %v2213_v58 = vshll.u32 %v6956_v13, 16  ;;  %v10159_v53 = vld [vmem:[#allocation13_spill] sm:$0xff] }
 0x23b   : > { %v2228_v45 = vshrl.u32 %v6961_v44, 16  ;;  %v2163_v61 = vrot.slane %v2162_v5, 4  ;;  %v2231_v42 = vshll.u32 %v6961_v44, 16  ;;  %v2237_v15 = vshll.u32 %v6966_v24, 16  ;;  %1921 = vrot.lane.b32.xlu0 %v1920_v33, %s6204_s21 }
 0x23c   : > { %v2209_v56 = vrot.slane %v2207_v28, 5  ;;  %1916 = vrot.lane.b32.xlu2 %v7324_v16, %s6210_s27  ;;  %v2187_v21 = vrot.slane %v2186_v26, 4  ;;  %v7422_v38 = vrot.slane %v2213_v58, 5  ;;  %v2252_v14 = vshrl.u32 %v6971_v55, 16 }
 0x23d   : > { %v2230_v7 = vrot.slane %v2228_v45, 4  ;;  %v7432_v13 = vsel %vm7356_vm10, %v2163_v61, %v7399_v57  ;;  %v2233_v24 = vrot.slane %v2231_v42, 5  ;;  %v7434_v41 = vrot.slane %v2237_v15, 5  ;;  %v10161_v61 = vld [vmem:[#allocation4_spill] sm:$0xff] }
 0x23e   : > { %v2210_v44 = vor.u32 %v2209_v56, %v2206_v40  ;;  %v7439_v16 = vsel %vm7356_vm10, %v2187_v21, %v7408_v59  ;;  %v2254_v46 = vrot.slane %v2252_v14, 4  ;;  %v2255_v48 = vshll.u32 %v6971_v55, 16  ;;  %v10160_v40 = vld [vmem:[#allocation6_spill] sm:$0xff] }
 0x23f   : > { %v2261_v30 = vshll.u32 %v10155_v49, 16  ;;  %1926 = vrot.lane.b32.xlu1 %v7333_v18, %s6205_s22  ;;  %v2234_v33 = vor.u32 %v2233_v24, %v2230_v7  ;;  %v2276_v10 = vshrl.u32 %v10156_v43, 16  ;;  %v2279_v4 = vshll.u32 %v10156_v43, 16  ;;  %v10162_v7 = vld [vmem:[#allocation15_spill] sm:$0xff] }
 0x240   : > { %v2211_v11 = vrot.slane %v2210_v44, 4  ;;  %v2257_v6 = vrot.slane %v2255_v48, 5  ;;  %v2285_v8 = vshll.u32 %v10157_v34, 16  ;;  %v2300_v2 = vshrl.u32 %v10158_v0, 16  ;;  %v10165_v48 = vld [vmem:[#allocation16_spill] sm:$0xff]  ;;  %v10167_v34 = vld [vmem:[#allocation10_spill] sm:$0xff] }
 0x241   : > { %v7447_v27 = vrot.slane %v2261_v30, 5  ;;  %v2235_v25 = vrot.slane %v2234_v33, 4  ;;  %v2278_v18 = vrot.slane %v2276_v10, 4  ;;  %v2281_v20 = vrot.slane %v2279_v4, 5  ;;  %v10166_v33 = vld [vmem:[#allocation17_spill] sm:$0xff] }
 0x242   : > { %v7454_v55 = vsel %vm7356_vm10, %v2211_v11, %v7422_v38  ;;  %v2258_v35 = vor.u32 %v2257_v6, %v2254_v46  ;;  %v7456_v3 = vrot.slane %v2285_v8, 5  ;;  %v2302_v52 = vrot.slane %v2300_v2, 4 }
 0x243   : > { %v2303_v47 = vshll.u32 %v10158_v0, 16  ;;  %v7462_v50 = vsel %vm7356_vm10, %v2235_v25, %v7434_v41  ;;  %v2282_v54 = vor.u32 %v2281_v20, %v2278_v18  ;;  %v2309_v5 = vshll.u32 %v10159_v53, 16  ;;  %1936 = vrot.lane.b32.xlu0 %v7347_v36, %s6209_s26  ;;  %v10168_v0 = vld [vmem:[#allocation11_spill] sm:$0xff] }
 0x244   : > { %v2324_v28 = vshrl.u32 %v10160_v40, 16  ;;  %1931 = vrot.lane.b32.xlu2 %v1930_v63, %s6208_s25  ;;  %v2259_v26 = vrot.slane %v2258_v35, 4  ;;  %v2327_v45 = vshll.u32 %v10160_v40, 16  ;;  %v2333_v56 = vshll.u32 %v10161_v61, 16 }
 0x245   : > { %v2305_v58 = vrot.slane %v2303_v47, 5  ;;  %v2283_v42 = vrot.slane %v2282_v54, 4  ;;  %v7474_v15 = vrot.slane %v2309_v5, 5  ;;  %v2348_v14 = vshrl.u32 %v10162_v7, 16 }
 0x246   : > { %v2326_v21 = vrot.slane %v2324_v28, 4  ;;  %v7480_v37 = vsel %vm7356_vm10, %v2259_v26, %v7447_v27  ;;  %v2329_v63 = vrot.slane %v2327_v45, 5  ;;  %v7482_v44 = vrot.slane %v2333_v56, 5  ;;  %v10171_v28 = vld [vmem:[#allocation8_spill] sm:$0xff] }
 0x247   : > { %10163 = vst [vmem:[#allocation7_spill] sm:$0xff] %v7480_v37  ;;  %v2306_v29 = vor.u32 %v2305_v58, %v2302_v52  ;;  %v7487_v24 = vsel %vm7356_vm10, %v2283_v42, %v7456_v3  ;;  %v2350_v36 = vrot.slane %v2348_v14, 4  ;;  %v2351_v46 = vshll.u32 %v10162_v7, 16 }
 0x248   : > { %10164 = vst [vmem:[#allocation3_spill] sm:$0xff] %v7487_v24  ;;  %v2357_v49 = vshll.u32 %v10165_v48, 16  ;;  %v2330_v11 = vor.u32 %v2329_v63, %v2326_v21  ;;  %v2372_v43 = vshrl.u32 %v10166_v33, 16  ;;  %v2375_v10 = vshll.u32 %v10166_v33, 16 }
 0x249   : > { %v2307_v30 = vrot.slane %v2306_v29, 4  ;;  %v2353_v4 = vrot.slane %v2351_v46, 5  ;;  %v2381_v8 = vshll.u32 %v10167_v34, 16  ;;  %v2396_v2 = vshrl.u32 %v10168_v0, 16  ;;  %v10173_v46 = vld [vmem:[#allocation5_spill] sm:$0xff] }
 0x24a   : > { %v7493_v6 = vrot.slane %v2357_v49, 5  ;;  %v2331_v18 = vrot.slane %v2330_v11, 4  ;;  %v2374_v20 = vrot.slane %v2372_v43, 4  ;;  %v2377_v35 = vrot.slane %v2375_v10, 5 }
 0x24b   : > { %v7500_v25 = vsel %vm7356_vm10, %v2307_v30, %v7474_v15  ;;  %v2354_v52 = vor.u32 %v2353_v4, %v2350_v36  ;;  %v7502_v47 = vrot.slane %v2381_v8, 5  ;;  %v2398_v54 = vrot.slane %v2396_v2, 4 }
 0x24c   : > { %10169 = vst [vmem:[#allocation14_spill] sm:$0xff] %v7500_v25  ;;  %v2399_v53 = vshll.u32 %v10168_v0, 16  ;;  %v7508_v5 = vsel %vm7356_vm10, %v2331_v18, %v7482_v44  ;;  %v2378_v40 = vor.u32 %v2377_v35, %v2374_v20  ;;  %v2405_v26 = vshll.u32 %v10171_v28, 16 }
 0x24d   : > { %10170 = vst [vmem:[#allocation12_spill] sm:$0xff] %v7508_v5  ;;  %v2451_v58 = vrot.slane %v7414_v32, 4  ;;  %v2355_v45 = vrot.slane %v2354_v52, 4  ;;  %v2457_v56 = vrot.slane %v7439_v16, 4  ;;  %v2479_v42 = vrot.slane %v7432_v13, 4 }
 0x24e   : > { %v2401_v61 = vrot.slane %v2399_v53, 5  ;;  %v2379_v21 = vrot.slane %v2378_v40, 4  ;;  %v7514_v7 = vrot.slane %v2405_v26, 5  ;;  %v2485_v29 = vrot.slane %v7454_v55, 4 }
 0x24f   : > { %v2452_v14 = vsel %vm347_vm0, %v2451_v58, %v7366_v12  ;;  %v7522_v63 = vsel %vm7356_vm10, %v2355_v45, %v7493_v6  ;;  %v2458_v49 = vsel %vm347_vm0, %v2457_v56, %v7389_v51  ;;  %v2480_v33 = vsel %vm347_vm0, %v2479_v42, %v7380_v60 }
 0x250   : > { %10172 = vst [vmem:[#allocation13_spill] sm:$0xff] %v7522_v63  ;;  %v2402_v36 = vor.u32 %v2401_v61, %v2398_v54  ;;  %v2456_v48 = vperm.slane %v2452_v14, %v10173_v46  ;;  %v7530_v30 = vsel %vm7356_vm10, %v2379_v21, %v7502_v47  ;;  %v2462_v11 = vperm.slane %v2458_v49, %v10173_v46 }
 0x251   : > { %10174 = vst [vmem:[#allocation6_spill] sm:$0xff] %v7530_v30  ;;  %v2486_v43 = vsel %vm347_vm0, %v2485_v29, %v7406_v9  ;;  %v2484_v4 = vperm.slane %v2480_v33, %v10173_v46  ;;  %v2507_v8 = vrot.slane %v7508_v5, 4  ;;  %v2513_v2 = vrot.slane %v7530_v30, 4 }
 0x252   : > { %v2403_v10 = vrot.slane %v2402_v36, 4  ;;  %v2490_v34 = vperm.slane %v2486_v43, %v10173_v46  ;;  %v2463_v0 = vrot.slane %v2462_v11, 4  ;;  %v2535_v18 = vrot.slane %v7522_v63, 4 }
 0x253   : > { %v2465_v20 = vrot.slane %v2456_v48, 4  ;;  %v2508_v54 = vsel %vm347_vm0, %v2507_v8, %v7462_v50  ;;  %v2493_v53 = vrot.slane %v2484_v4, 4  ;;  %v2514_v26 = vsel %vm347_vm0, %v2513_v2, %v7487_v24 }
 0x254   : > { %v7545_v35 = vsel %vm7356_vm10, %v2403_v10, %v7514_v7  ;;  %v2491_v52 = vrot.slane %v2490_v34, 4  ;;  %v2464_v40 = vsel %vm347_vm0, %v2463_v0, %v2456_v48  ;;  %v2512_v28 = vperm.slane %v2508_v54, %v10173_v46 }
 0x255   : > { %10175 = vst [vmem:[#allocation4_spill] sm:$0xff] %v7545_v35  ;;  %v2536_v58 = vsel %vm347_vm0, %v2535_v18, %v7480_v37  ;;  %v7556_v45 = vperm.slane %v2464_v40, %v6299_v19  ;;  %v2518_v56 = vperm.slane %v2514_v26, %v10173_v46  ;;  %v2541_v14 = vrot.slane %v7545_v35, 4 }
 0x256   : > { %v2492_v61 = vsel %vm347_vm0, %v2491_v52, %v2484_v4  ;;  %v2540_v42 = vperm.slane %v2536_v58, %v10173_v46  ;;  %v2466_v29 = vsel %vm347_vm0, %v2462_v11, %v2465_v20  ;;  %v2494_v36 = vsel %vm347_vm0, %v2490_v34, %v2493_v53 }
 0x257   : > { %v7562_v21 = vperm.slane %v2492_v61, %v6299_v19  ;;  %v2519_v48 = vrot.slane %v2518_v56, 4  ;;  %v2678_v49 = vshrl.u32 %v7556_v45, 16  ;;  %v2475_v33 = vrot.slane %v7556_v45, 4 }
 0x258   : > { %v2474_v43 = vperm.slane %v2466_v29, %v6299_v19  ;;  %v2542_v10 = vsel %vm347_vm0, %v2541_v14, %v7500_v25  ;;  %v2502_v0 = vperm.slane %v2494_v36, %v6299_v19  ;;  %v2521_v18 = vrot.slane %v2512_v28, 4 }
 0x259   : > { %v2679_v4 = vshrl.u32 %v7562_v21, 16  ;;  %v2503_v8 = vrot.slane %v7562_v21, 4  ;;  %v2520_v11 = vsel %vm347_vm0, %v2519_v48, %v2512_v28  ;;  %v2546_v34 = vperm.slane %v2542_v10, %v10173_v46 }
 0x25a   : > { %v2476_v2 = vsel %vm347_vm0, 0, %v2475_v33  ;;  %v7579_v20 = vperm.slane %v2520_v11, %v6299_v19  ;;  %v2522_v61 = vsel %vm347_vm0, %v2518_v56, %v2521_v18  ;;  %v2549_v10 = vrot.slane %v2540_v42, 4 }
 0x25b   : > { %v2680_v52 = vpack.i.b16 %v2679_v4, %v2678_v49  ;;  %v2504_v54 = vsel %vm347_vm0, 0, %v2503_v8  ;;  %v2684_v53 = vshrl.u32 %v2476_v2, 16  ;;  %v2547_v40 = vrot.slane %v2546_v34, 4 }
 0x25c   : > { %v2683_v26 = vpack.i.b16 %v2504_v54, %v2476_v2  ;;  %v2685_v58 = vshrl.u32 %v2504_v54, 16  ;;  %v2726_v14 = vshrl.u32 %v7579_v20, 16  ;;  %v2531_v36 = vrot.slane %v7579_v20, 4 }
 0x25d   : > { %v2774_v29 = vunpack.c.l.b16 %v2680_v52  ;;  %v2548_v48 = vsel %vm347_vm0, %v2547_v40, %v2540_v42  ;;  %v2530_v33 = vperm.slane %v2522_v61, %v6299_v19  ;;  %v2689_v8 = vpack.i.b16 %v2502_v0, %v2474_v43 }
 0x25e   : > { %v2779_v28 = vunpack.c.l.b16 %v2683_v26  ;;  %v7588_v49 = vperm.slane %v2548_v48, %v6299_v19  ;;  %v2532_v4 = vsel %vm347_vm0, 0, %v2531_v36  ;;  %v2690_v11 = vshrl.u32 %v2474_v43, 16 }
 0x25f   : > { %v2686_v2 = vpack.i.b16 %v2685_v58, %v2684_v53  ;;  %v2732_v56 = vshrl.u32 %v2532_v4, 16  ;;  %v2550_v18 = vsel %vm347_vm0, %v2546_v34, %v2549_v10  ;;  %v2691_v52 = vshrl.u32 %v2502_v0, 16 }
 0x260   : > { %v2727_v54 = vshrl.u32 %v7588_v49, 16  ;;  %v2559_v40 = vrot.slane %v7588_v49, 4  ;;  %v2558_v26 = vperm.slane %v2550_v18, %v6299_v19  ;;  %v7595_v61 = vunpack.c.l.b16 %v2689_v8 }
 0x261   : > { %v2692_v42 = vpack.i.b16 %v2691_v52, %v2690_v11  ;;  %v2738_v48 = vshrl.u32 %v2530_v33, 16  ;;  %v2477_v35 = vrot.slane %v2474_v43, 4  ;;  %v2505_v30 = vrot.slane %v2502_v0, 4 }
 0x262   : > { %v2728_v36 = vpack.i.b16 %v2727_v54, %v2726_v14  ;;  %v2560_v63 = vsel %vm347_vm0, 0, %v2559_v40  ;;  %v2737_v53 = vpack.i.b16 %v2558_v26, %v2530_v33  ;;  %v2739_v58 = vshrl.u32 %v2558_v26, 16 }
 0x263   : > { %v2731_v5 = vpack.i.b16 %v2560_v63, %v2532_v4  ;;  %v2733_v34 = vshrl.u32 %v2560_v63, 16  ;;  %v2784_v10 = vunpack.c.l.b16 %v2686_v2  ;;  %v2478_v25 = vsel %vm347_vm0, 0, %v2477_v35 }
 0x264   : > { %v2775_v24 = vunpack.c.l.b16 %v2728_v36  ;;  %v2790_v37 = vunpack.c.l.b16 %v2737_v53  ;;  %v2740_v18 = vpack.i.b16 %v2739_v58, %v2738_v48  ;;  %v2506_v8 = vsel %vm347_vm0, 0, %v2505_v30  ;;  %v300_v48 = vld [vmem:[%s6253_s20 + $0x8] sm:$0x1] }
 0x265   : > { %v2780_v11 = vunpack.c.l.b16 %v2731_v5  ;;  %v2734_v52 = vpack.i.b16 %v2733_v34, %v2732_v56  ;;  %v2533_v43 = vrot.slane %v2530_v33, 4  ;;  %v2561_v0 = vrot.slane %v2558_v26, 4  ;;  %v6129_v34 = vld [vmem:[%s6253_s20 + $0x10] sm:$0xf] }
 0x266   : > { %v2776_v14 = vpack.c.b16 %v2775_v24, %v2774_v29  ;;  %v2791_v54 = vpack.c.b16 %v2790_v37, %v7595_v61  ;;  %v2794_v40 = vunpack.c.l.b16 %v2692_v42  ;;  %v2695_v4 = vpack.i.b16 %v2506_v8, %v2478_v25  ;;  %v303_v24 = vld [vmem:[%s6253_s20 + $0x14] sm:$0x1]  ;;  %v6128_v42 = vld [vmem:[%s6253_s20 + $0x4] sm:$0xf] }
 0x267   : > { %v2781_v63 = vpack.c.b16 %v2780_v11, %v2779_v28  ;;  %v2785_v2 = vunpack.c.l.b16 %v2734_v52  ;;  %v2534_v35 = vsel %vm347_vm0, 0, %v2533_v43  ;;  %v2562_v36 = vsel %vm347_vm0, 0, %v2561_v0  ;;  %v306_v52 = vld [vmem:[%s6253_s20 + $0x20] sm:$0x1]  ;;  %v6130_v0 = vld [vmem:[%s6253_s20 + $0x1c] sm:$0xf] }
 0x268   : > { %2777 = vrot.lane.b32.xlu1 %v2776_v14, %s6206_s23  ;;  %v2795_v5 = vunpack.c.l.b16 %v2740_v18  ;;  %v2743_v30 = vpack.i.b16 %v2562_v36, %v2534_v35  ;;  %v2799_v33 = vunpack.c.l.b16 %v2695_v4  ;;  %v2696_v56 = vshrl.u32 %v2478_v25, 16  ;;  %v309_v4 = vld [vmem:[%s6253_s20 + $0x2c] sm:$0x1] }
 0x269   : > { %2782 = vrot.lane.b32.xlu2 %v2781_v63, %s6207_s24  ;;  %v2786_v37 = vpack.c.b16 %v2785_v2, %v2784_v10  ;;  %v2697_v29 = vshrl.u32 %v2506_v8, 16  ;;  %v2744_v28 = vshrl.u32 %v2534_v35, 16  ;;  %v2745_v26 = vshrl.u32 %v2562_v36, 16 }
 0x26a   : > { %v2800_v61 = vunpack.c.l.b16 %v2743_v30  ;;  %v2049_v53 = vshrl.u32 %v6128_v42, 16  ;;  %v2055_v58 = vshll.u32 %v300_v48, 16  ;;  %v2073_v11 = vshrl.u32 %v6129_v34, 16 }
 0x26b   : > { %2787 = vrot.lane.b32.xlu0 %v2786_v37, %s6210_s27  ;;  %v2698_v25 = vpack.i.b16 %v2697_v29, %v2696_v56  ;;  %v2746_v18 = vpack.i.b16 %v2745_v26, %v2744_v28  ;;  %v2079_v43 = vshll.u32 %v303_v24, 16  ;;  %v2097_v10 = vshrl.u32 %v6130_v0, 16  ;;  %v312_v37 = vld [vmem:[%s6253_s20 + $0x38] sm:$0x1]  ;;  %v6131_v28 = vld [vmem:[%s6253_s20 + $0x28] sm:$0xf] }
 0x26c   : > { %v2796_v8 = vpack.c.b16 %v2795_v5, %v2794_v40  ;;  %v2801_v14 = vpack.c.b16 %v2800_v61, %v2799_v33  ;;  %v2051_v63 = vrot.slane %v2049_v53, 4  ;;  %v2075_v2 = vrot.slane %v2073_v11, 4  ;;  %v6132_v61 = vld [vmem:[%s6253_s20 + $0x34] sm:$0xf] }
 0x26d   : > { %v2804_v35 = vunpack.c.l.b16 %v2698_v25  ;;  %v2805_v36 = vunpack.c.l.b16 %v2746_v18  ;;  %v2057_v48 = vrot.slane %v2055_v58, 5  ;;  %v2099_v30 = vrot.slane %v2097_v10, 4  ;;  %v315_v58 = vld [vmem:[%s6253_s20 + $0x44] sm:$0x1]  ;;  %v6133_v10 = vld [vmem:[%s6253_s20 + $0x40] sm:$0xf] }
 0x26e   : > { %v2052_v56 = vor.u32 %v2051_v63, %v7335_v23  ;;  %v2076_v29 = vor.u32 %v2075_v2, %v7352_v17  ;;  %v2103_v24 = vshll.u32 %v306_v52, 16  ;;  %v2121_v26 = vshrl.u32 %v6131_v28, 16  ;;  %v318_v17 = vld [vmem:[%s6253_s20 + $0x50] sm:$0x1] }
 0x26f   : > { %v2081_v40 = vrot.slane %v2079_v43, 5  ;;  %v2100_v5 = vor.u32 %v2099_v30, %v7360_v39  ;;  %v2127_v33 = vshll.u32 %v309_v4, 16  ;;  %v2145_v42 = vshrl.u32 %v6132_v61, 16 }
 0x270   : > { %2792 = vrot.lane.b32.xlu1 %v2791_v54, %s6204_s21  ;;  %v2806_v53 = vpack.c.b16 %v2805_v36, %v2804_v35  ;;  %v2053_v34 = vrot.slane %v2052_v56, 4  ;;  %v2077_v23 = vrot.slane %v2076_v29, 4  ;;  %v2123_v11 = vrot.slane %v2121_v26, 4  ;;  %v324_v29 = vld [vmem:[%s6253_s20 + $0x68] sm:$0x1] }
 0x271   : > { %2797 = vrot.lane.b32.xlu2 %v2796_v8, %s6205_s22  ;;  %v2101_v25 = vrot.slane %v2100_v5, 4  ;;  %v2105_v18 = vrot.slane %v2103_v24, 5  ;;  %v2147_v52 = vrot.slane %v2145_v42, 4  ;;  %v2151_v39 = vshll.u32 %v312_v37, 16  ;;  %v321_v8 = vld [vmem:[%s6253_s20 + $0x5c] sm:$0x1] }
 0x272   : > { %v7625_v43 = vsel %vm7356_vm10, %v2053_v34, %v2057_v48  ;;  %v2124_v54 = vor.u32 %v2123_v11, %v7372_v31  ;;  %v2129_v0 = vrot.slane %v2127_v33, 5  ;;  %v2169_v4 = vshrl.u32 %v6133_v10, 16  ;;  %v6134_v37 = vld [vmem:[%s6253_s20 + $0x4c] sm:$0xf]  ;;  %v6135_v26 = vld [vmem:[%s6253_s20 + $0x58] sm:$0xf] }
 0x273   : > { %2802 = vrot.lane.b32.xlu0 %v2801_v14, %s6208_s25  ;;  %v7633_v63 = vsel %vm7356_vm10, %v2077_v23, %v2081_v40  ;;  %v2148_v2 = vor.u32 %v2147_v52, %v7382_v22  ;;  %v2153_v35 = vrot.slane %v2151_v39, 5  ;;  %v2175_v36 = vshll.u32 %v315_v58, 16  ;;  %v327_v5 = vld [vmem:[%s6253_s20 + $0x74] sm:$0x1]  ;;  %v6136_v11 = vld [vmem:[%s6253_s20 + $0x64] sm:$0xf] }
 0x274   : > { %v2125_v48 = vrot.slane %v2124_v54, 4  ;;  %v2171_v30 = vrot.slane %v2169_v4, 4  ;;  %v2193_v31 = vshrl.u32 %v6134_v37, 16  ;;  %v2199_v56 = vshll.u32 %v318_v17, 16  ;;  %v6137_v39 = vld [vmem:[%s6253_s20 + $0x70] sm:$0xf] }
 0x275   : > { %v7640_v14 = vsel %vm7356_vm10, %v2101_v25, %v2105_v18  ;;  %v2149_v24 = vrot.slane %v2148_v2, 4  ;;  %v2177_v28 = vrot.slane %v2175_v36, 5  ;;  %v2217_v40 = vshrl.u32 %v6135_v26, 16  ;;  %v330_v54 = vld [vmem:[%s6253_s20 + $0x80] sm:$0x1] }
 0x276   : > { %v7646_v22 = vsel %vm7356_vm10, %v2125_v48, %v2129_v0  ;;  %v2172_v33 = vor.u32 %v2171_v30, %v7399_v57  ;;  %v2195_v61 = vrot.slane %v2193_v31, 4  ;;  %v2223_v42 = vshll.u32 %v321_v8, 16  ;;  %v6138_v8 = vld [vmem:[%s6253_s20 + $0x7c] sm:$0xf] }
 0x277   : > { %v7651_v58 = vsel %vm7356_vm10, %v2149_v24, %v2153_v35  ;;  %v2201_v34 = vrot.slane %v2199_v56, 5  ;;  %v2219_v23 = vrot.slane %v2217_v40, 4  ;;  %v2241_v17 = vshrl.u32 %v6136_v11, 16  ;;  %v333_v35 = vld [vmem:[%s6253_s20 + $0x8c] sm:$0x1] }
 0x278   : > { %2807 = vrot.lane.b32.xlu1 %v2806_v53, %s6209_s26  ;;  %v2173_v25 = vrot.slane %v2172_v33, 4  ;;  %v2196_v18 = vor.u32 %v2195_v61, %v7408_v59  ;;  %v2247_v52 = vshll.u32 %v324_v29, 16  ;;  %v2265_v57 = vshrl.u32 %v6137_v39, 16  ;;  %v336_v56 = vld [vmem:[%s6253_s20 + $0x98] sm:$0x1] }
 0x279   : > { %v2220_v0 = vor.u32 %v2219_v23, %v7422_v38  ;;  %v2243_v10 = vrot.slane %v2241_v17, 4  ;;  %v2271_v4 = vshll.u32 %v327_v5, 16  ;;  %v2289_v2 = vshrl.u32 %v6138_v8, 16  ;;  %v6139_v40 = vld [vmem:[%s6253_s20 + $0x88] sm:$0xf] }
 0x27a   : > { %v7663_v36 = vsel %vm7356_vm10, %v2173_v25, %v2177_v28  ;;  %v2197_v53 = vrot.slane %v2196_v18, 4  ;;  %v2225_v48 = vrot.slane %v2223_v42, 5  ;;  %v2267_v59 = vrot.slane %v2265_v57, 4  ;;  %v339_v42 = vld [vmem:[%s6253_s20 + $0xa4] sm:$0x1] }
 0x27b   : > { %v2221_v30 = vrot.slane %v2220_v0, 4  ;;  %v2244_v37 = vor.u32 %v2243_v10, %v7434_v41  ;;  %v2249_v31 = vrot.slane %v2247_v52, 5  ;;  %v2291_v38 = vrot.slane %v2289_v2, 4  ;;  %v6140_v25 = vld [vmem:[%s6253_s20 + $0x94] sm:$0xf] }
 0x27c   : > { %v2268_v29 = vor.u32 %v2267_v59, %v7447_v27  ;;  %v2273_v24 = vrot.slane %v2271_v4, 5  ;;  %v2295_v26 = vshll.u32 %v330_v54, 16  ;;  %v2313_v5 = vshrl.u32 %v6139_v40, 16  ;;  %v342_v18 = vld [vmem:[%s6253_s20 + $0xb0] sm:$0x1] }
 0x27d   : > { %v7671_v28 = vsel %vm7356_vm10, %v2197_v53, %v2201_v34  ;;  %v2245_v33 = vrot.slane %v2244_v37, 4  ;;  %v2292_v61 = vor.u32 %v2291_v38, %v7456_v3  ;;  %v2319_v41 = vshll.u32 %v333_v35, 16  ;;  %v345_v57 = vld [vmem:[%s6253_s20 + $0xbc] sm:$0x1]  ;;  %v6141_v4 = vld [vmem:[%s6253_s20 + $0xa0] sm:$0xf] }
 0x27e   : > { %v2269_v23 = vrot.slane %v2268_v29, 4  ;;  %v2297_v11 = vrot.slane %v2295_v26, 5  ;;  %v2315_v17 = vrot.slane %v2313_v5, 4  ;;  %v2337_v27 = vshrl.u32 %v6140_v25, 16  ;;  %v6143_v29 = vld [vmem:[%s6253_s20 + $0xb8] sm:$0xf] }
 0x27f   : > { %v7679_v52 = vsel %vm7356_vm10, %v2221_v30, %v2225_v48  ;;  %v7683_v34 = vsel %vm7356_vm10, %v2245_v33, %v2249_v31  ;;  %v2293_v39 = vrot.slane %v2292_v61, 4  ;;  %v2343_v3 = vshll.u32 %v336_v56, 16  ;;  %v6142_v48 = vld [vmem:[%s6253_s20 + $0xac] sm:$0xf] }
 0x280   : > { %v2316_v54 = vor.u32 %v2315_v17, %v7474_v15  ;;  %v2321_v0 = vrot.slane %v2319_v41, 5  ;;  %v2339_v10 = vrot.slane %v2337_v27, 4  ;;  %v2361_v8 = vshrl.u32 %v6141_v4, 16 }
 0x281   : > { %v7690_v2 = vsel %vm7356_vm10, %v2269_v23, %v2273_v24  ;;  %v7694_v35 = vsel %vm7356_vm10, %v2293_v39, %v2297_v11  ;;  %v2367_v53 = vshll.u32 %v339_v42, 16  ;;  %v2385_v59 = vshrl.u32 %v6142_v48, 16 }
 0x282   : > { %10176 = vst [vmem:[#allocation15_spill] sm:$0xff] %v7690_v2  ;;  %v2340_v30 = vor.u32 %v2339_v10, %v7482_v44  ;;  %v2345_v37 = vrot.slane %v2343_v3, 5  ;;  %v2363_v15 = vrot.slane %v2361_v8, 4  ;;  %v2391_v31 = vshll.u32 %v342_v18, 16 }
 0x283   : > { %10177 = vst [vmem:[#allocation16_spill] sm:$0xff] %v7694_v35  ;;  %v2317_v38 = vrot.slane %v2316_v54, 4  ;;  %v2387_v56 = vrot.slane %v2385_v59, 4  ;;  %v2409_v26 = vshrl.u32 %v6143_v29, 16  ;;  %v2415_v40 = vshll.u32 %v345_v57, 16 }
 0x284   : > { %v2341_v5 = vrot.slane %v2340_v30, 4  ;;  %v2364_v24 = vor.u32 %v2363_v15, %v7493_v6  ;;  %v2369_v33 = vrot.slane %v2367_v53, 5  ;;  %v2393_v61 = vrot.slane %v2391_v31, 5 }
 0x285   : > { %v2388_v41 = vor.u32 %v2387_v56, %v7502_v47  ;;  %v2411_v42 = vrot.slane %v2409_v26, 4  ;;  %v2417_v23 = vrot.slane %v2415_v40, 5  ;;  %v2563_v11 = vrot.slane %v7651_v58, 4 }
 0x286   : > { %v7704_v44 = vsel %vm7356_vm10, %v2341_v5, %v2345_v37  ;;  %v2365_v17 = vrot.slane %v2364_v24, 4  ;;  %v2569_v25 = vrot.slane %v7671_v28, 4  ;;  %v2591_v27 = vrot.slane %v7663_v36, 4 }
 0x287   : > { %10178 = vst [vmem:[#allocation17_spill] sm:$0xff] %v7704_v44  ;;  %v2389_v18 = vrot.slane %v2388_v41, 4  ;;  %v2412_v6 = vor.u32 %v2411_v42, %v7514_v7  ;;  %v2564_v39 = vsel %vm347_vm0, %v2563_v11, %v7625_v43  ;;  %v2597_v47 = vrot.slane %v7679_v52, 4 }
 0x288   : > { %v7714_v3 = vsel %vm7356_vm10, %v2317_v38, %v2321_v0  ;;  %v7718_v57 = vsel %vm7356_vm10, %v2365_v17, %v2369_v33  ;;  %v2570_v54 = vsel %vm347_vm0, %v2569_v25, %v7640_v14  ;;  %v2592_v10 = vsel %vm347_vm0, %v2591_v27, %v7633_v63 }
 0x289   : > { %10179 = vst [vmem:[#allocation10_spill] sm:$0xff] %v7714_v3  ;;  %v7726_v7 = vsel %vm7356_vm10, %v2389_v18, %v2393_v61  ;;  %v2413_v4 = vrot.slane %v2412_v6, 4  ;;  %v2568_v8 = vperm.slane %v2564_v39, %v10173_v46  ;;  %v2574_v0 = vperm.slane %v2570_v54, %v10173_v46 }
 0x28a   : > { %10180 = vst [vmem:[#allocation11_spill] sm:$0xff] %v7718_v57  ;;  %v2598_v53 = vsel %vm347_vm0, %v2597_v47, %v7646_v22  ;;  %v2619_v48 = vrot.slane %v7704_v44, 4  ;;  %v2625_v59 = vrot.slane %v7726_v7, 4  ;;  %v2647_v30 = vrot.slane %v7718_v57, 4 }
 0x28b   : > { %10181 = vst [vmem:[#allocation8_spill] sm:$0xff] %v7726_v7  ;;  %v7737_v37 = vsel %vm7356_vm10, %v2413_v4, %v2417_v23  ;;  %v2575_v15 = vrot.slane %v2574_v0, 4  ;;  %v2596_v31 = vperm.slane %v2592_v10, %v10173_v46  ;;  %v2602_v38 = vperm.slane %v2598_v53, %v10173_v46 }
 0x28c   : > { %10182 = vst [vmem:[#allocation23_spill] sm:$0xff] %v7737_v37  ;;  %v2620_v56 = vsel %vm347_vm0, %v2619_v48, %v7683_v34  ;;  %v2626_v29 = vsel %vm347_vm0, %v2625_v59, %v7694_v35  ;;  %v2648_v26 = vsel %vm347_vm0, %v2647_v30, %v7690_v2  ;;  %v2653_v40 = vrot.slane %v7737_v37, 4 }
 0x28d   : > { %v2576_v1 = vsel %vm347_vm0, %v2575_v15, %v2568_v8  ;;  %v2603_v5 = vrot.slane %v2602_v38, 4  ;;  %v2624_v24 = vperm.slane %v2620_v56, %v10173_v46  ;;  %v2630_v33 = vperm.slane %v2626_v29, %v10173_v46 }
 0x28e   : > { %v7752_v61 = vperm.slane %v2576_v1, %v6299_v19  ;;  %v2654_v41 = vsel %vm347_vm0, %v2653_v40, %v7714_v3  ;;  %v2652_v11 = vperm.slane %v2648_v26, %v10173_v46  ;;  %v2577_v40 = vrot.slane %v2568_v8, 4 }
 0x28f   : > { %v2604_v42 = vsel %vm347_vm0, %v2603_v5, %v2596_v31  ;;  %v2631_v23 = vrot.slane %v2630_v33, 4  ;;  %v2658_v17 = vperm.slane %v2654_v41, %v10173_v46  ;;  %v2605_v1 = vrot.slane %v2596_v31, 4 }
 0x290   : > { %v7760_v25 = vperm.slane %v2604_v42, %v6299_v19  ;;  %v2702_v27 = vshrl.u32 %v7752_v61, 16  ;;  %v2587_v48 = vrot.slane %v7752_v61, 4 }
 0x291   : > { %v2632_v18 = vsel %vm347_vm0, %v2631_v23, %v2624_v24  ;;  %v2659_v6 = vrot.slane %v2658_v17, 4  ;;  %v2606_v31 = vsel %vm347_vm0, %v2602_v38, %v2605_v1 }
 0x292   : > { %10183 = vst [vmem:[#allocation24_spill] sm:$0xff] %v7760_v25  ;;  %v7765_v39 = vperm.slane %v2632_v18, %v6299_v19  ;;  %v2703_v47 = vshrl.u32 %v7760_v25, 16  ;;  %v2615_v15 = vrot.slane %v7760_v25, 4  ;;  %v2588_v29 = vsel %vm347_vm0, 0, %v2587_v48 }
 0x293   : > { %v2660_v54 = vsel %vm347_vm0, %v2659_v6, %v2652_v11  ;;  %v2708_v23 = vshrl.u32 %v2588_v29, 16  ;;  %v2578_v48 = vsel %vm347_vm0, %v2574_v0, %v2577_v40 }
 0x294   : > { %10184 = vst [vmem:[#allocation25_spill] sm:$0xff] %v7765_v39  ;;  %v7770_v10 = vperm.slane %v2660_v54, %v6299_v19  ;;  %v2704_v4 = vpack.i.b16 %v2703_v47, %v2702_v27  ;;  %v2750_v53 = vshrl.u32 %v7765_v39, 16  ;;  %v2643_v56 = vrot.slane %v7765_v39, 4 }
 0x295   : > { %v2616_v41 = vsel %vm347_vm0, 0, %v2615_v15  ;;  %v2586_v8 = vperm.slane %v2578_v48, %v6299_v19 }
 0x296   : > { %10185 = vst [vmem:[#allocation26_spill] sm:$0xff] %v7770_v10  ;;  %v2751_v59 = vshrl.u32 %v7770_v10, 16  ;;  %v2812_v30 = vunpack.c.l.b16 %v2704_v4  ;;  %v2671_v26 = vrot.slane %v7770_v10, 4  ;;  %v2644_v42 = vsel %vm347_vm0, 0, %v2643_v56 }
 0x297   : > { %v2707_v18 = vpack.i.b16 %v2616_v41, %v2588_v29  ;;  %v2709_v6 = vshrl.u32 %v2616_v41, 16  ;;  %v2756_v47 = vshrl.u32 %v2644_v42, 16  ;;  %v2614_v56 = vperm.slane %v2606_v31, %v6299_v19 }
 0x298   : > { %v2752_v5 = vpack.i.b16 %v2751_v59, %v2750_v53  ;;  %v2672_v27 = vsel %vm347_vm0, 0, %v2671_v26  ;;  %v2633_v29 = vrot.slane %v2624_v24, 4  ;;  %v2661_v41 = vrot.slane %v2652_v11, 4 }
 0x299   : > { %v2755_v4 = vpack.i.b16 %v2672_v27, %v2644_v42  ;;  %v2757_v46 = vshrl.u32 %v2672_v27, 16  ;;  %v2817_v39 = vunpack.c.l.b16 %v2707_v18  ;;  %v2710_v10 = vpack.i.b16 %v2709_v6, %v2708_v23 }
 0x29a   : > { %v2813_v54 = vunpack.c.l.b16 %v2752_v5  ;;  %v2714_v25 = vshrl.u32 %v2586_v8, 16  ;;  %v2713_v0 = vpack.i.b16 %v2614_v56, %v2586_v8  ;;  %v2715_v40 = vshrl.u32 %v2614_v56, 16 }
 0x29b   : > { %v2818_v59 = vunpack.c.l.b16 %v2755_v4  ;;  %v2758_v15 = vpack.i.b16 %v2757_v46, %v2756_v47  ;;  %v2822_v26 = vunpack.c.l.b16 %v2710_v10  ;;  %v2634_v23 = vsel %vm347_vm0, %v2630_v33, %v2633_v29 }
 0x29c   : > { %v2814_v53 = vpack.c.b16 %v2813_v54, %v2812_v30  ;;  %v2662_v27 = vsel %vm347_vm0, %v2658_v17, %v2661_v41  ;;  %v2589_v38 = vrot.slane %v2586_v8, 4  ;;  %v2617_v30 = vrot.slane %v2614_v56, 4 }
 0x29d   : > { %v2819_v5 = vpack.c.b16 %v2818_v59, %v2817_v39  ;;  %v2823_v42 = vunpack.c.l.b16 %v2758_v15  ;;  %v2642_v10 = vperm.slane %v2634_v23, %v6299_v19  ;;  %v2670_v24 = vperm.slane %v2662_v27, %v6299_v19 }
 0x29e   : > { %2815 = vrot.lane.b32.xlu2 %v2814_v53, %s6206_s23  ;;  %v2827_v11 = vunpack.c.l.b16 %v2713_v0  ;;  %v2716_v1 = vpack.i.b16 %v2715_v40, %v2714_v25  ;;  %v2590_v39 = vsel %vm347_vm0, 0, %v2589_v38  ;;  %v2618_v18 = vsel %vm347_vm0, 0, %v2617_v30 }
 0x29f   : > { %2820 = vrot.lane.b32.xlu0 %v2819_v5, %s6207_s24  ;;  %v2824_v46 = vpack.c.b16 %v2823_v42, %v2822_v26  ;;  %v2761_v33 = vpack.i.b16 %v2670_v24, %v2642_v10  ;;  %v2762_v6 = vshrl.u32 %v2642_v10, 16  ;;  %v2763_v17 = vshrl.u32 %v2670_v24, 16 }
 0x2a0   : > { %v2645_v47 = vrot.slane %v2642_v10, 4  ;;  %v2832_v54 = vunpack.c.l.b16 %v2716_v1  ;;  %v2673_v4 = vrot.slane %v2670_v24, 4  ;;  %v2719_v48 = vpack.i.b16 %v2618_v18, %v2590_v39  ;;  %v1869_v24 = vpop.permute.xlu2 %1868  ;;  %v10187_v1 = vld [vmem:[#allocation22_spill] sm:$0xff] }
 0x2a1   : > { %2825 = vrot.lane.b32.xlu1 %v2824_v46, %s6210_s27  ;;  %v2720_v8 = vshrl.u32 %v2590_v39, 16  ;;  %v2828_v31 = vunpack.c.l.b16 %v2761_v33  ;;  %v2764_v53 = vpack.i.b16 %v2763_v17, %v2762_v6  ;;  %v2721_v15 = vshrl.u32 %v2618_v18, 16  ;;  %v10188_v33 = vld [vmem:[#allocation9_spill] sm:$0xff]  ;;  %v10189_v6 = vld [vmem:[#allocation2_spill] sm:$0xff] }
 0x2a2   : > { %v2646_v59 = vsel %vm347_vm0, 0, %v2645_v47  ;;  %v2674_v25 = vsel %vm347_vm0, 0, %v2673_v4  ;;  %v2837_v56 = vunpack.c.l.b16 %v2719_v48  ;;  %v10190_v17 = vpack.i.b16 %v10188_v33, %v10189_v6  ;;  %v1874_v48 = vpop.permute.xlu0 %1873 }
 0x2a3   : > { %v2768_v26 = vshrl.u32 %v2646_v59, 16  ;;  %v2829_v29 = vpack.c.b16 %v2828_v31, %v2827_v11  ;;  %v2833_v41 = vunpack.c.l.b16 %v2764_v53  ;;  %v2767_v5 = vpack.i.b16 %v2674_v25, %v2646_v59  ;;  %v10186_v11 = vld [vmem:[#allocation21_spill] sm:$0xff] }
 0x2a4   : > { %v2722_v42 = vpack.i.b16 %v2721_v15, %v2720_v8  ;;  %v2769_v0 = vshrl.u32 %v2674_v25, 16  ;;  %v1816_v39 = vpack.i.b16 %v10187_v1, %v10186_v11  ;;  %v1862_v47 = vunpack.c.l.b16 %v10190_v17  ;;  %v1879_v8 = vpop.permute.xlu1 %1878 }
 0x2a5   : > { %v2834_v40 = vpack.c.b16 %v2833_v41, %v2832_v54  ;;  %v2838_v23 = vunpack.c.l.b16 %v2767_v5  ;;  %v10191_v5 = vld [vmem:[#allocation20_spill] sm:$0xff] }
 0x2a6   : > { %2830 = vrot.lane.b32.xlu2 %v2829_v29, %s6204_s21  ;;  %v2770_v27 = vpack.i.b16 %v2769_v0, %v2768_v26  ;;  %v2842_v38 = vunpack.c.l.b16 %v2722_v42  ;;  %v1863_v18 = vunpack.c.l.b16 %v1816_v39  ;;  %v1840_v42 = vpack.i.b16 %v7273_v62, %v10191_v5  ;;  %v10196_v5 = vld [vmem:[#allocation3_spill] sm:$0xff] }
 0x2a7   : > { %2835 = vrot.lane.b32.xlu0 %v2834_v40, %s6205_s22  ;;  %v2839_v30 = vpack.c.b16 %v2838_v23, %v2837_v56  ;;  %v10192_v40 = vld [vmem:[#allocation19_spill] sm:$0xff]  ;;  %v10193_v23 = vld [vmem:[#allocation18_spill] sm:$0xff] }
 0x2a8   : > { %v2843_v46 = vunpack.c.l.b16 %v2770_v27  ;;  %v1884_v54 = vpop.permute.xlu2 %1883  ;;  %v1864_v4 = vpack.c.b16 %v1863_v18, %v1862_v47  ;;  %v1792_v27 = vpack.i.b16 %v10193_v23, %v10192_v40  ;;  %v193_v40 = vld [vmem:[%s9950_s2 + $0x38] sm:$0xff] }
 0x2a9   : > { %2840 = vrot.lane.b32.xlu1 %v2839_v30, %s6208_s25 }
 0x2aa   : > { %v2844_v10 = vpack.c.b16 %v2843_v46, %v2842_v38  ;;  %v1940_v31 = vsel %vm743_vm1, %v1864_v4, %v1869_v24  ;;  %v1889_v56 = vpop.permute.xlu0 %1888  ;;  %v1901_v38 = vunpack.c.l.b16 %v1840_v42  ;;  %v1900_v30 = vunpack.c.l.b16 %v1792_v27 }
 0x2ab   : > { %v1942_v53 = vsel %vm747_vm2, %v1940_v31, %v1874_v48  ;;  %v2677_v4 = vpack.i.b16 %v7562_v21, %v7556_v45  ;;  %v2725_v48 = vpack.i.b16 %v7588_v49, %v7579_v20 }
 0x2ac   : > { %v1944_v59 = vsel %vm750_vm3, %v1942_v53, %v1879_v8  ;;  %v1894_v26 = vpop.permute.xlu1 %1893  ;;  %v1902_v24 = vpack.c.b16 %v1901_v38, %v1900_v30  ;;  %v10197_v38 = vld [vmem:[#allocation14_spill] sm:$0xff] }
 0x2ad   : > { %v1946_v25 = vsel %vm753_vm4, %v1944_v59, %v1884_v54  ;;  %v2771_v53 = vunpack.c.l.b16 %v2677_v4  ;;  %v2772_v59 = vunpack.c.l.b16 %v2725_v48  ;;  %v10200_v4 = vld [vmem:[#allocation6_spill] sm:$0xff]  ;;  %v10201_v48 = vld [vmem:[#allocation4_spill] sm:$0xff] }
 0x2ae   : > { %2845 = vrot.lane.b32.xlu2 %v2844_v10, %s6209_s26  ;;  %v1948_v29 = vsel %vm756_vm5, %v1946_v25, %v1889_v56  ;;  %v10194_v56 = vld [vmem:[#allocation7_spill] sm:$0xff] }
 0x2af   : > { %2941 = vrot.lane.b32.xlu0 %v7366_v12, %s6211_s28  ;;  %v1950_v41 = vsel %vm759_vm6, %v1948_v29, %v1894_v26  ;;  %v2773_v25 = vpack.c.b16 %v2772_v59, %v2771_v53  ;;  %v7871_v29 = vld [vmem:[%s6248_s17] ss:$0 sm:$0xff]  ;;  %v10203_v59 = vld [vmem:[#allocation25_spill] sm:$0xff] }
 0x2b0   : > { %v1899_v15 = vpop.permute.xlu2 %1898  ;;  %10195 = vst [vmem:[#allocation21_spill] sm:$0xff] %v7871_v29  ;;  %v233_v27 = vmul.f32 %v7871_v29, %v193_v40 }
 0x2b1   : > { %2943 = vrot.lane.b32.xlu1 %v7625_v43, %s6211_s28  ;;  %v1952_v0 = vsel %vm762_vm7, %v1950_v41, %v1899_v15 }
 0x2b2   : > { %1993 = vmatpush.bf16.msrb.mxu0 %v1952_v0  ;;  %v1907_v46 = vpop.permute.xlu0 %1906  ;;  %v192_v0 = vld [vmem:[%s9950_s2 + $0x30] sm:$0xff] }
 0x2b3   : > { %v1956_v11 = vsel %vm743_vm1, %v1902_v24, %v1907_v46  ;;  %v232_v23 = vmul.f32 %v7871_v29, %v192_v0  ;;  %v269_v24 = vpack.c.bf16 %v233_v27, %v233_v27 }
 0x2b4   : > { %v1912_v10 = vpop.permute.xlu1 %1911 }
 0x2b5   : > { %v1958_v1 = vsel %vm747_vm2, %v1956_v11, %v1912_v10 }
 0x2b6   : > { %2945 = vrot.lane.b32.xlu2 %v7380_v60, %s6211_s28 }
 0x2b7   : > { %2947 = vrot.lane.b32.xlu0 %v7633_v63, %s6211_s28 }
 0x2b8   : > { %v1917_v62 = vpop.permute.xlu2 %1916 }
 0x2b9   : > { %2949 = vrot.lane.b32.xlu1 %v7389_v51, %s6211_s28  ;;  %v1960_v33 = vsel %vm750_vm3, %v1958_v1, %v1917_v62  ;;  %v268_v62 = vpack.c.bf16 %v232_v23, %v232_v23 }
 0x2ba   : > { %v1922_v39 = vpop.permute.xlu0 %1921 }
 0x2bb   : > { %v1962_v6 = vsel %vm753_vm4, %v1960_v33, %v1922_v39  ;;  %v1344_v39 = vunpack.c.l.b16 %v268_v62 }
 0x2bc   : > { %v1927_v18 = vpop.permute.xlu1 %1926 }
 0x2bd   : > { %v1964_v47 = vsel %vm756_vm5, %v1962_v6, %v1927_v18  ;;  %v1345_v18 = vunpack.c.l.b16 %v269_v24 }
 0x2be   : > { %2951 = vrot.lane.b32.xlu2 %v7640_v14, %s6211_s28 }
 0x2bf   : > { %2953 = vrot.lane.b32.xlu0 %v7406_v9, %s6211_s28  ;;  %v1347_v6 = vpack.c.b16 %v1345_v18, %v1344_v39 }
 0x2c0   : > { %v1932_v17 = vpop.permute.xlu2 %1931 }
 0x2c1   : > { %2955 = vrot.lane.b32.xlu1 %v7646_v22, %s6211_s28  ;;  %v1966_v31 = vsel %vm759_vm6, %v1964_v47, %v1932_v17  ;;  %v10198_v17 = vld [vmem:[#allocation12_spill] sm:$0xff]  ;;  %6019 = vmatmul.msk.bf16.vlgmr.msra.gmra.mxu2 %vm743_vm1, %v1347_v6  ;;  %v10199_v47 = vld [vmem:[#allocation13_spill] sm:$0xff] }
 0x2c2   : > { %v1937_v54 = vpop.permute.xlu0 %1936  ;;  %6021 = vmatmul.msk.bf16.vlgmr.msra.gmra.mxu3 %vm743_vm1, %v1347_v6 }
 0x2c3   : > { %v1968_v15 = vsel %vm762_vm7, %v1966_v31, %v1937_v54  ;;  %v10202_v31 = vld [vmem:[#allocation24_spill] sm:$0xff] }
 0x2c4   : > { %2012 = vmatpush.bf16.msrb.mxu1 %v1968_v15  ;;  %v2701_v53 = vpack.i.b16 %v10202_v31, %v7752_v61  ;;  %v10204_v15 = vld [vmem:[#allocation26_spill] sm:$0xff] }
 0x2c6   : > { %2957 = vrot.lane.b32.xlu2 %v7414_v32, %s6211_s28 }
 0x2c7   : > { %2959 = vrot.lane.b32.xlu0 %v7651_v58, %s6211_s28 }
 0x2c8   : > { %v2783_v45 = vpop.permute.xlu2 %2782 }
 0x2c9   : > { %2961 = vrot.lane.b32.xlu1 %v7432_v13, %s6211_s28 }
 0x2ce   : > { %2963 = vrot.lane.b32.xlu2 %v7663_v36, %s6211_s28 }
 0x2cf   : > { %2965 = vrot.lane.b32.xlu0 %v7439_v16, %s6211_s28 }
 0x2d0   : > { %v2798_v30 = vpop.permute.xlu2 %2797 }
 0x2d1   : > { %2967 = vrot.lane.b32.xlu1 %v7671_v28, %s6211_s28 }
 0x2d6   : > { %2969 = vrot.lane.b32.xlu2 %v7454_v55, %s6211_s28 }
 0x2d7   : > { %2971 = vrot.lane.b32.xlu0 %v7679_v52, %s6211_s28 }
 0x2d9   : > { %2973 = vrot.lane.b32.xlu1 %v7462_v50, %s6211_s28 }
 0x2da   : > { %v2778_v8 = vpop.permute.xlu1 %2777 }
 0x2db   : > { %v2849_v21 = vsel %vm743_vm1, %v2773_v25, %v2778_v8  ;;  %v2749_v25 = vpack.i.b16 %v10204_v15, %v10203_v59 }
 0x2dc   : > { %v2851_v20 = vsel %vm747_vm2, %v2849_v21, %v2783_v45  ;;  %v2809_v21 = vunpack.c.l.b16 %v2701_v53 }
 0x2dd   : > { %v2788_v49 = vpop.permute.xlu0 %2787 }
 0x2de   : > { %2975 = vrot.lane.b32.xlu2 %v7683_v34, %s6211_s28  ;;  %v2853_v41 = vsel %vm750_vm3, %v2851_v20, %v2788_v49  ;;  %v2810_v20 = vunpack.c.l.b16 %v2749_v25 }
 0x2df   : > { %2977 = vrot.lane.b32.xlu0 %v10194_v56, %s6211_s28 }
 0x2e0   : > { %v2811_v49 = vpack.c.b16 %v2810_v20, %v2809_v21 }
 0x2e1   : > { %2979 = vrot.lane.b32.xlu1 %v7690_v2, %s6211_s28 }
 0x2e2   : > { %v2793_v26 = vpop.permute.xlu1 %2792 }
 0x2e3   : > { %v2855_v42 = vsel %vm753_vm4, %v2853_v41, %v2793_v26 }
 0x2e4   : > { %v2857_v10 = vsel %vm756_vm5, %v2855_v42, %v2798_v30 }
 0x2e5   : > { %v2803_v46 = vpop.permute.xlu0 %2802 }
 0x2e6   : > { %2981 = vrot.lane.b32.xlu2 %v10196_v5, %s6211_s28  ;;  %v2859_v11 = vsel %vm759_vm6, %v2857_v10, %v2803_v46 }
 0x2e7   : > { %2983 = vrot.lane.b32.xlu0 %v7694_v35, %s6211_s28 }
 0x2e9   : > { %2985 = vrot.lane.b32.xlu1 %v10197_v38, %s6211_s28 }
 0x2ea   : > { %v2808_v1 = vpop.permute.xlu1 %2807 }
 0x2eb   : > { %v2861_v33 = vsel %vm762_vm7, %v2859_v11, %v2808_v1 }
 0x2ec   : > { %2902 = vmatpush.bf16.msra.mxu2 %v2861_v33 }
 0x2ee   : > { %2987 = vrot.lane.b32.xlu2 %v7714_v3, %s6211_s28 }
 0x2ef   : > { %2989 = vrot.lane.b32.xlu0 %v10198_v17, %s6211_s28 }
 0x2f1   : > { %2991 = vrot.lane.b32.xlu1 %v7704_v44, %s6211_s28 }
 0x2f6   : > { %2993 = vrot.lane.b32.xlu2 %v10199_v47, %s6211_s28 }
 0x2f7   : > { %2995 = vrot.lane.b32.xlu0 %v7718_v57, %s6211_s28 }
 0x2f8   : > { %v2816_v54 = vpop.permute.xlu2 %2815 }
 0x2f9   : > { %2997 = vrot.lane.b32.xlu1 %v10200_v4, %s6211_s28  ;;  %v2865_v42 = vsel %vm743_vm1, %v2811_v49, %v2816_v54 }
 0x2fe   : > { %2999 = vrot.lane.b32.xlu2 %v7726_v7, %s6211_s28 }
 0x2ff   : > { %3001 = vrot.lane.b32.xlu0 %v10201_v48, %s6211_s28  ;;  %v10205_v48 = vld [vmem:[#allocation5_spill] sm:$0xff] }
 0x300   : > { %v2831_v8 = vpop.permute.xlu2 %2830 }
 0x301   : > { %3003 = vrot.lane.b32.xlu1 %v7737_v37, %s6211_s28 }
 0x308   : > { %v2846_v45 = vpop.permute.xlu2 %2845 }
 0x310   : > { %v2946_v26 = vpop.permute.xlu2 %2945 }
 0x311   : > { %v2821_v41 = vpop.permute.xlu0 %2820 }
 0x312   : > { %v2867_v40 = vsel %vm747_vm2, %v2865_v42, %v2821_v41 }
 0x313   : > { %v2826_v0 = vpop.permute.xlu1 %2825 }
 0x314   : > { %v2869_v23 = vsel %vm750_vm3, %v2867_v40, %v2826_v0 }
 0x315   : > { %v2871_v30 = vsel %vm753_vm4, %v2869_v23, %v2831_v8 }
 0x318   : > { %v2952_v27 = vpop.permute.xlu2 %2951 }
 0x319   : > { %v2836_v61 = vpop.permute.xlu0 %2835 }
 0x31a   : > { %v2873_v46 = vsel %vm756_vm5, %v2871_v30, %v2836_v61 }
 0x31b   : > { %v2841_v10 = vpop.permute.xlu1 %2840 }
 0x31c   : > { %v2875_v62 = vsel %vm759_vm6, %v2873_v46, %v2841_v10 }
 0x31d   : > { %v2877_v24 = vsel %vm762_vm7, %v2875_v62, %v2846_v45 }
 0x31e   : > { %2921 = vmatpush.bf16.msra.mxu3 %v2877_v24 }
 0x320   : > { %v2958_v11 = vpop.permute.xlu2 %2957 }
 0x321   : > { %v2942_v1 = vpop.permute.xlu0 %2941  ;;  %v3037_v62 = vrot.slane %v2958_v11, 4 }
 0x323   : > { %v2944_v39 = vpop.permute.xlu1 %2943  ;;  %v3038_v17 = vsel %vm347_vm0, %v3037_v62, %v2942_v1 }
 0x328   : > { %v2964_v18 = vpop.permute.xlu2 %2963 }
 0x329   : > { %v2948_v33 = vpop.permute.xlu0 %2947  ;;  %v3177_v4 = vrot.slane %v2964_v18, 4 }
 0x32b   : > { %v2950_v6 = vpop.permute.xlu1 %2949 }
 0x330   : > { %v2970_v31 = vpop.permute.xlu2 %2969 }
 0x331   : > { %v2954_v54 = vpop.permute.xlu0 %2953  ;;  %v3071_v46 = vrot.slane %v2970_v31, 4 }
 0x333   : > { %v2956_v53 = vpop.permute.xlu1 %2955  ;;  %v3072_v57 = vsel %vm347_vm0, %v3071_v46, %v2954_v54 }
 0x334   : > { %v3076_v31 = vperm.slane %v3072_v57, %v10205_v48 }
 0x338   : > { %v7923_v15 = vpop.permute.xlu2 %2975 }
 0x339   : > { %v2960_v59 = vpop.permute.xlu0 %2959 }
 0x33a   : > { %v3149_v47 = vrot.slane %v2960_v59, 4 }
 0x33b   : > { %v2962_v8 = vpop.permute.xlu1 %2961 }
 0x33c   : > { %v3065_v24 = vrot.slane %v2962_v8, 4  ;;  %v3178_v8 = vsel %vm347_vm0, %v3177_v4, %v2948_v33  ;;  %v3150_v18 = vsel %vm347_vm0, %v3149_v47, %v2944_v39 }
 0x340   : > { %v2982_v20 = vpop.permute.xlu2 %2981 }
 0x341   : > { %v2966_v25 = vpop.permute.xlu0 %2965 }
 0x342   : > { %v3043_v40 = vrot.slane %v2966_v25, 4  ;;  %v3066_v25 = vsel %vm347_vm0, %v3065_v24, %v2946_v26 }
 0x343   : > { %v2968_v21 = vpop.permute.xlu1 %2967  ;;  %v3070_v54 = vperm.slane %v3066_v25, %v10205_v48 }
 0x344   : > { %v3044_v10 = vsel %vm347_vm0, %v3043_v40, %v2950_v6  ;;  %v3155_v37 = vrot.slane %v2968_v21, 4  ;;  %v3042_v21 = vperm.slane %v3038_v17, %v10205_v48 }
 0x345   : > { %v3048_v7 = vperm.slane %v3044_v10, %v10205_v48  ;;  %v3079_v17 = vrot.slane %v3070_v54, 4 }
 0x346   : > { %v3156_v3 = vsel %vm347_vm0, %v3155_v37, %v2952_v27  ;;  %v3182_v37 = vperm.slane %v3178_v8, %v10205_v48  ;;  %v3077_v27 = vrot.slane %v3076_v31, 4  ;;  %v3051_v46 = vrot.slane %v3042_v21, 4 }
 0x347   : > { %v3049_v6 = vrot.slane %v3048_v7, 4  ;;  %v3160_v59 = vperm.slane %v3156_v3, %v10205_v48 }
 0x348   : > { %v7925_v45 = vpop.permute.xlu2 %2987  ;;  %v3078_v4 = vsel %vm347_vm0, %v3077_v27, %v3070_v54  ;;  %v3191_v10 = vrot.slane %v3182_v37, 4  ;;  %v3080_v54 = vsel %vm347_vm0, %v3076_v31, %v3079_v17 }
 0x349   : > { %v2972_v49 = vpop.permute.xlu0 %2971  ;;  %v3050_v57 = vsel %vm347_vm0, %v3049_v6, %v3042_v21  ;;  %v3161_v33 = vrot.slane %v3160_v59, 4  ;;  %v7955_v6 = vperm.slane %v3078_v4, %v6299_v19 }
 0x34a   : > { %v3183_v38 = vrot.slane %v2972_v49, 4  ;;  %v3154_v49 = vperm.slane %v3150_v18, %v10205_v48  ;;  %v7952_v3 = vperm.slane %v3050_v57, %v6299_v19 }
 0x34b   : > { %v2974_v41 = vpop.permute.xlu1 %2973 }
 0x34c   : > { %v3184_v26 = vsel %vm347_vm0, %v3183_v38, %v2956_v53  ;;  %v3163_v25 = vrot.slane %v3154_v49, 4  ;;  %v3061_v21 = vrot.slane %v7952_v3, 4 }
 0x34d   : > { %v3188_v47 = vperm.slane %v3184_v26, %v10205_v48  ;;  %v3162_v26 = vsel %vm347_vm0, %v3161_v33, %v3154_v49  ;;  %v3265_v33 = vshrl.u32 %v7955_v6, 16 }
 0x34f   : > { %v3189_v27 = vrot.slane %v3188_v47, 4 }
 0x350   : > { %v2994_v30 = vpop.permute.xlu2 %2993 }
 0x351   : > { %v2978_v42 = vpop.permute.xlu0 %2977  ;;  %v3121_v38 = vrot.slane %v2994_v30, 4 }
 0x353   : > { %v7927_v0 = vpop.permute.xlu1 %2979 }
 0x358   : > { %v3000_v1 = vpop.permute.xlu2 %2999 }
 0x359   : > { %v2984_v23 = vpop.permute.xlu0 %2983  ;;  %v3211_v40 = vrot.slane %v3000_v1, 4  ;;  %v3052_v1 = vsel %vm347_vm0, %v3048_v7, %v3051_v46  ;;  %v3264_v7 = vshrl.u32 %v7952_v3, 16  ;;  %v3062_v46 = vsel %vm347_vm0, 0, %v3061_v21 }
 0x35a   : > { %v7973_v49 = vperm.slane %v3052_v1, %v6299_v19 }
 0x35b   : > { %v7929_v61 = vpop.permute.xlu1 %2985  ;;  %v3212_v8 = vsel %vm347_vm0, %v3211_v40, %v2984_v23 }
 0x35c   : > { %v7966_v57 = vperm.slane %v3212_v8, %v10205_v48 }
 0x361   : > { %v2990_v44 = vpop.permute.xlu0 %2989 }
 0x362   : > { %v3093_v53 = vrot.slane %v2990_v44, 4  ;;  %v3122_v44 = vsel %vm347_vm0, %v3121_v38, %v2978_v42  ;;  %v7976_v42 = vsel %vm347_vm0, %v3160_v59, %v3163_v25  ;;  %v7986_v38 = vsel %vm347_vm0, %v3188_v47, %v3191_v10 }
 0x363   : > { %v2992_v11 = vpop.permute.xlu1 %2991  ;;  %v3126_v40 = vperm.slane %v3122_v44, %v10205_v48 }
 0x364   : > { %v3205_v62 = vrot.slane %v2992_v11, 4  ;;  %v3094_v30 = vsel %vm347_vm0, %v3093_v53, %v2974_v41  ;;  %v3089_v41 = vrot.slane %v7955_v6, 4 }
 0x365   : > { %v3098_v4 = vperm.slane %v3094_v30, %v10205_v48  ;;  %v3135_v44 = vrot.slane %v3126_v40, 4 }
 0x366   : > { %v3206_v23 = vsel %vm347_vm0, %v3205_v62, %v7923_v15  ;;  %v3190_v62 = vsel %vm347_vm0, %v3189_v27, %v3182_v37 }
 0x367   : > { %v7989_v53 = vperm.slane %v3206_v23, %v10205_v48  ;;  %v3107_v30 = vrot.slane %v3098_v4, 4 }
 0x369   : > { %v7949_v39 = vpop.permute.xlu0 %2995 }
 0x36a   : > { %v3233_v21 = vrot.slane %v7949_v39, 4 }
 0x36b   : > { %v2998_v24 = vpop.permute.xlu1 %2997 }
 0x36c   : > { %v3099_v18 = vrot.slane %v2998_v24, 4  ;;  %v3217_v24 = vrot.slane %v7966_v57, 4 }
 0x36e   : > { %v3100_v11 = vsel %vm347_vm0, %v3099_v18, %v2982_v20  ;;  %v7979_v20 = vperm.slane %v3162_v26, %v6299_v19  ;;  %v3266_v18 = vpack.i.b16 %v3265_v33, %v3264_v7  ;;  %v3090_v26 = vsel %vm347_vm0, 0, %v3089_v41 }
 0x36f   : > { %v3104_v31 = vperm.slane %v3100_v11, %v10205_v48  ;;  %v3269_v37 = vpack.i.b16 %v3090_v26, %v3062_v46  ;;  %v3218_v27 = vsel %vm347_vm0, %v3217_v24, %v7989_v53  ;;  %v3270_v7 = vshrl.u32 %v3062_v46, 16 }
 0x370   : > { %v3360_v33 = vunpack.c.l.b16 %v3266_v18  ;;  %v3088_v24 = vperm.slane %v3080_v54, %v6299_v19 }
 0x371   : > { %v3105_v15 = vrot.slane %v3104_v31, 4  ;;  %v3002_v17 = vpop.permute.xlu0 %3001 }
 0x372   : > { %v3127_v59 = vrot.slane %v3002_v17, 4 }
 0x373   : > { %v3106_v25 = vsel %vm347_vm0, %v3105_v15, %v3098_v4  ;;  %v3004_v8 = vpop.permute.xlu1 %3003  ;;  %v8013_v4 = vperm.slane %v3190_v62, %v6299_v19 }
 0x374   : > { %v7996_v1 = vperm.slane %v3106_v25, %v6299_v19  ;;  %v3128_v47 = vsel %vm347_vm0, %v3127_v59, %v7929_v61  ;;  %v3239_v10 = vrot.slane %v3004_v8, 4  ;;  %v3271_v59 = vshrl.u32 %v3090_v26, 16 }
 0x375   : > { %v3132_v11 = vperm.slane %v3128_v47, %v10205_v48  ;;  %v3365_v25 = vunpack.c.l.b16 %v3269_v37  ;;  %v8020_v8 = vperm.slane %v3218_v27, %v6299_v19  ;;  %v3234_v47 = vsel %vm347_vm0, %v3233_v21, %v7927_v0 }
 0x376   : > { %10206 = vst [vmem:[#allocation22_spill] sm:$0xff] %v7996_v1  ;;  %v3240_v23 = vsel %vm347_vm0, %v3239_v10, %v7925_v45  ;;  %v3117_v41 = vrot.slane %v7996_v1, 4  ;;  %v3108_v45 = vsel %vm347_vm0, %v3104_v31, %v3107_v30  ;;  %v3272_v26 = vpack.i.b16 %v3271_v59, %v3270_v7 }
 0x377   : > { %v3133_v15 = vrot.slane %v3132_v11, 4  ;;  %v3136_v61 = vsel %vm347_vm0, %v3132_v11, %v3135_v44  ;;  %v8009_v17 = vperm.slane %v3240_v23, %v10205_v48  ;;  %v3276_v31 = vshrl.u32 %v7973_v49, 16 }
 0x378   : > { %v3144_v18 = vperm.slane %v3136_v61, %v6299_v19  ;;  %v3118_v10 = vsel %vm347_vm0, 0, %v3117_v41  ;;  %v3312_v44 = vshrl.u32 %v7996_v1, 16  ;;  %v3238_v11 = vperm.slane %v3234_v47, %v10205_v48 }
 0x379   : > { %v3134_v46 = vsel %vm347_vm0, %v3133_v15, %v3126_v40  ;;  %v3245_v54 = vrot.slane %v8009_v17, 4  ;;  %v3116_v40 = vperm.slane %v3108_v45, %v6299_v19  ;;  %v3275_v37 = vpack.i.b16 %v3088_v24, %v7973_v49 }
 0x37a   : > { %v8025_v62 = vperm.slane %v3134_v46, %v6299_v19  ;;  %v3277_v27 = vshrl.u32 %v3088_v24, 16  ;;  %v3063_v21 = vrot.slane %v7973_v49, 4  ;;  %v3318_v15 = vshrl.u32 %v3118_v10, 16 }
 0x37b   : > { %v3147_v61 = vrot.slane %v3144_v18, 4  ;;  %v3246_v41 = vsel %vm347_vm0, %v3245_v54, %v3238_v11  ;;  %v3325_v46 = vshrl.u32 %v3144_v18, 16  ;;  %v3119_v29 = vrot.slane %v3116_v40, 4 }
 0x37c   : > { %10207 = vst [vmem:[#allocation9_spill] sm:$0xff] %v8025_v62  ;;  %v3313_v30 = vshrl.u32 %v8025_v62, 16  ;;  %v3145_v0 = vrot.slane %v8025_v62, 4  ;;  %v3278_v1 = vpack.i.b16 %v3277_v27, %v3276_v31  ;;  %v3091_v62 = vrot.slane %v3088_v24, 4 }
 0x37d   : > { %v3324_v35 = vshrl.u32 %v3116_v40, 16  ;;  %v3064_v5 = vsel %vm347_vm0, 0, %v3063_v21  ;;  %v8042_v49 = vperm.slane %v3246_v41, %v6299_v19  ;;  %v3375_v24 = vunpack.c.l.b16 %v3275_v37 }
 0x37e   : > { %v3314_v23 = vpack.i.b16 %v3313_v30, %v3312_v44  ;;  %v3146_v7 = vsel %vm347_vm0, 0, %v3145_v0  ;;  %v3323_v30 = vpack.i.b16 %v3144_v18, %v3116_v40  ;;  %v3148_v0 = vsel %vm347_vm0, 0, %v3147_v61 }
 0x37f   : > { %v3317_v59 = vpack.i.b16 %v3146_v7, %v3118_v10  ;;  %v3319_v45 = vshrl.u32 %v3146_v7, 16  ;;  %v3370_v10 = vunpack.c.l.b16 %v3272_v26  ;;  %v3326_v2 = vpack.i.b16 %v3325_v46, %v3324_v35 }
 0x380   : > { %v3361_v39 = vunpack.c.l.b16 %v3314_v23  ;;  %v3247_v23 = vrot.slane %v3238_v11, 4  ;;  %v3092_v31 = vsel %vm347_vm0, 0, %v3091_v62  ;;  %v3120_v27 = vsel %vm347_vm0, 0, %v3119_v29 }
 0x381   : > { %v3366_v47 = vunpack.c.l.b16 %v3317_v59  ;;  %v3320_v48 = vpack.i.b16 %v3319_v45, %v3318_v15  ;;  %v3329_v15 = vpack.i.b16 %v3148_v0, %v3120_v27  ;;  %v3376_v18 = vunpack.c.l.b16 %v3323_v30 }
 0x382   : > { %v3362_v44 = vpack.c.b16 %v3361_v39, %v3360_v33  ;;  %v3282_v33 = vshrl.u32 %v3064_v5, 16  ;;  %v3331_v39 = vshrl.u32 %v3148_v0, 16  ;;  %v3380_v40 = vunpack.c.l.b16 %v3278_v1 }
 0x383   : > { %v3367_v54 = vpack.c.b16 %v3366_v47, %v3365_v25  ;;  %v3371_v7 = vunpack.c.l.b16 %v3320_v48  ;;  %v3337_v25 = vshrl.u32 %v8042_v49, 16  ;;  %v3257_v35 = vrot.slane %v8042_v49, 4 }
 0x384   : > { %3363 = vrot.lane.b32.xlu2 %v3362_v44, %s6206_s23  ;;  %v3381_v48 = vunpack.c.l.b16 %v3326_v2  ;;  %v3281_v26 = vpack.i.b16 %v3092_v31, %v3064_v5  ;;  %v3283_v11 = vshrl.u32 %v3092_v31, 16  ;;  %v3330_v62 = vshrl.u32 %v3120_v27, 16 }
 0x385   : > { %3368 = vrot.lane.b32.xlu0 %v3367_v54, %s6207_s24  ;;  %v3372_v21 = vpack.c.b16 %v3371_v7, %v3370_v10  ;;  %v3289_v29 = vshrl.u32 %v8013_v4, 16  ;;  %v3336_v37 = vshrl.u32 %v8020_v8, 16  ;;  %v3201_v61 = vrot.slane %v8013_v4, 4 }
 0x386   : > { %v3229_v41 = vrot.slane %v8020_v8, 4  ;;  %v3248_v1 = vsel %vm347_vm0, %v8009_v17, %v3247_v23  ;;  %v3386_v59 = vunpack.c.l.b16 %v3329_v15  ;;  %v3332_v45 = vpack.i.b16 %v3331_v39, %v3330_v62 }
 0x387   : > { %3373 = vrot.lane.b32.xlu1 %v3372_v21, %s6210_s27  ;;  %v3288_v46 = vshrl.u32 %v7979_v20, 16  ;;  %v3377_v47 = vpack.c.b16 %v3376_v18, %v3375_v24  ;;  %v3338_v2 = vpack.i.b16 %v3337_v25, %v3336_v37  ;;  %v3173_v5 = vrot.slane %v7979_v20, 4 }
 0x388   : > { %v3258_v44 = vsel %vm347_vm0, 0, %v3257_v35  ;;  %v10208_v30 = vrot.slane %v7989_v53, 4  ;;  %v3382_v54 = vpack.c.b16 %v3381_v48, %v3380_v40  ;;  %v3385_v10 = vunpack.c.l.b16 %v3281_v26 }
 0x389   : > { %v3284_v7 = vpack.i.b16 %v3283_v11, %v3282_v33  ;;  %v3256_v17 = vperm.slane %v3248_v1, %v6299_v19  ;;  %v3290_v23 = vpack.i.b16 %v3289_v29, %v3288_v46  ;;  %v3202_v24 = vsel %vm347_vm0, 0, %v3201_v61 }
 0x38a   : > { %v3220_v0 = vsel %vm347_vm0, %v7966_v57, %v10208_v30  ;;  %v3230_v31 = vsel %vm347_vm0, 0, %v3229_v41  ;;  %v3200_v27 = vperm.slane %v7986_v38, %v6299_v19  ;;  %v3387_v53 = vpack.c.b16 %v3386_v59, %v3385_v10 }
 0x38b   : > { %v3391_v21 = vunpack.c.l.b16 %v3332_v45  ;;  %v3341_v57 = vpack.i.b16 %v3258_v44, %v3230_v31  ;;  %v3399_v15 = vunpack.c.l.b16 %v3338_v2  ;;  %v3174_v33 = vsel %vm347_vm0, 0, %v3173_v5 }
 0x38c   : > { %3378 = vrot.lane.b32.xlu2 %v3377_v47, %s6204_s21  ;;  %v3343_v39 = vshrl.u32 %v3258_v44, 16  ;;  %v3228_v18 = vperm.slane %v3220_v0, %v6299_v19  ;;  %v3172_v40 = vperm.slane %v7976_v42, %v6299_v19  ;;  %v3390_v25 = vunpack.c.l.b16 %v3284_v7 }
 0x38d   : > { %3383 = vrot.lane.b32.xlu0 %v3382_v54, %s6205_s22  ;;  %v3293_v35 = vpack.i.b16 %v3202_v24, %v3174_v33  ;;  %v3398_v48 = vunpack.c.l.b16 %v3290_v23  ;;  %v3295_v38 = vshrl.u32 %v3202_v24, 16  ;;  %v3342_v26 = vshrl.u32 %v3230_v31, 16 }
 0x38e   : > { %v3259_v11 = vrot.slane %v3256_v17, 4  ;;  %v3392_v62 = vpack.c.b16 %v3391_v21, %v3390_v25  ;;  %v3404_v29 = vunpack.c.l.b16 %v3341_v57  ;;  %v3294_v37 = vshrl.u32 %v3174_v33, 16 }
 0x38f   : > { %3388 = vrot.lane.b32.xlu1 %v3387_v53, %s6208_s25  ;;  %v3349_v61 = vshrl.u32 %v3256_v17, 16  ;;  %v3400_v41 = vpack.c.b16 %v3399_v15, %v3398_v48  ;;  %v3344_v1 = vpack.i.b16 %v3343_v39, %v3342_v26  ;;  %v3203_v59 = vrot.slane %v3200_v27, 4 }
 0x390   : > { %v3231_v45 = vrot.slane %v3228_v18, 4  ;;  %v3403_v46 = vunpack.c.l.b16 %v3293_v35  ;;  %v3347_v47 = vpack.i.b16 %v3256_v17, %v3228_v18  ;;  %v3301_v2 = vshrl.u32 %v3200_v27, 16 }
 0x391   : > { %v3348_v42 = vshrl.u32 %v3228_v18, 16  ;;  %v3296_v5 = vpack.i.b16 %v3295_v38, %v3294_v37  ;;  %v3175_v44 = vrot.slane %v3172_v40, 4  ;;  %v3260_v30 = vsel %vm347_vm0, 0, %v3259_v11 }
 0x392   : > { %v3405_v0 = vpack.c.b16 %v3404_v29, %v3403_v46  ;;  %v3299_v54 = vpack.i.b16 %v3200_v27, %v3172_v40  ;;  %v3300_v10 = vshrl.u32 %v3172_v40, 16  ;;  %v3409_v23 = vunpack.c.l.b16 %v3344_v1 }
 0x393   : > { %v3350_v7 = vpack.i.b16 %v3349_v61, %v3348_v42  ;;  %v3204_v24 = vsel %vm347_vm0, 0, %v3203_v59  ;;  %v3232_v31 = vsel %vm347_vm0, 0, %v3231_v45  ;;  %v3414_v17 = vunpack.c.l.b16 %v3347_v47  ;;  %v10218_v42 = vld [vmem:[#allocation22_spill] sm:$0xff] }
 0x394   : > { %3393 = vrot.lane.b32.xlu2 %v3392_v62, %s6209_s26  ;;  %v3302_v53 = vpack.i.b16 %v3301_v2, %v3300_v10  ;;  %v3355_v21 = vshrl.u32 %v3260_v30, 16  ;;  %v3408_v57 = vunpack.c.l.b16 %v3296_v5  ;;  %v3176_v15 = vsel %vm347_vm0, 0, %v3175_v44  ;;  %v10217_v2 = vld [vmem:[#allocation13_spill] sm:$0xff] }
 0x395   : > { %3401 = vrot.lane.b32.xlu0 %v3400_v41, %s6206_s23  ;;  %v3413_v33 = vunpack.c.l.b16 %v3299_v54  ;;  %v3419_v39 = vunpack.c.l.b16 %v3350_v7  ;;  %v3307_v18 = vshrl.u32 %v3204_v24, 16  ;;  %v3354_v25 = vshrl.u32 %v3232_v31, 16  ;;  %v10219_v5 = vld [vmem:[#allocation9_spill] sm:$0xff]  ;;  %v10221_v7 = vld [vmem:[#allocation6_spill] sm:$0xff] }
 0x396   : > { %v3410_v27 = vpack.c.b16 %v3409_v23, %v3408_v57  ;;  %v3353_v40 = vpack.i.b16 %v3260_v30, %v3232_v31  ;;  %v3263_v35 = vpack.i.b16 %v7955_v6, %v7952_v3  ;;  %v3418_v38 = vunpack.c.l.b16 %v3302_v53  ;;  %v10222_v23 = vld [vmem:[#allocation8_spill] sm:$0xff]  ;;  %v10224_v6 = vld [vmem:[#allocation23_spill] sm:$0xff] }
 0x397   : > { %3406 = vrot.lane.b32.xlu1 %v3405_v0, %s6207_s24  ;;  %v3415_v48 = vpack.c.b16 %v3414_v17, %v3413_v33  ;;  %v3306_v26 = vshrl.u32 %v3176_v15, 16  ;;  %v3356_v11 = vpack.i.b16 %v3355_v21, %v3354_v25  ;;  %v3305_v62 = vpack.i.b16 %v3204_v24, %v3176_v15  ;;  %v10220_v0 = vld [vmem:[#allocation11_spill] sm:$0xff]  ;;  %v10223_v17 = vld [vmem:[#allocation4_spill] sm:$0xff] }
 0x398   : > { %v3420_v29 = vpack.c.b16 %v3419_v39, %v3418_v38  ;;  %v3424_v61 = vunpack.c.l.b16 %v3353_v40  ;;  %v3287_v46 = vpack.i.b16 %v8013_v4, %v7979_v20  ;;  %v3311_v44 = vpack.i.b16 %v10219_v5, %v10218_v42 }
 0x399   : > { %v3308_v37 = vpack.i.b16 %v3307_v18, %v3306_v26  ;;  %v3429_v41 = vunpack.c.l.b16 %v3356_v11  ;;  %v3423_v1 = vunpack.c.l.b16 %v3305_v62  ;;  %v3357_v10 = vunpack.c.l.b16 %v3263_v35 }
 0x39a   : > { %v3358_v54 = vunpack.c.l.b16 %v3311_v44  ;;  %v3395_v26 = vunpack.c.l.b16 %v3287_v46 }
 0x39b   : > { %v3428_v59 = vunpack.c.l.b16 %v3308_v37  ;;  %v3425_v45 = vpack.c.b16 %v3424_v61, %v3423_v1 }
 0x39c   : > { %3411 = vrot.lane.b32.xlu2 %v3410_v27, %s6210_s27  ;;  %v3359_v24 = vpack.c.b16 %v3358_v54, %v3357_v10  ;;  %v3335_v27 = vpack.i.b16 %v8042_v49, %v8020_v8 }
 0x39d   : > { %3416 = vrot.lane.b32.xlu0 %v3415_v48, %s6204_s21  ;;  %v3430_v47 = vpack.c.b16 %v3429_v41, %v3428_v59 }
 0x39e   : > { %v3396_v38 = vunpack.c.l.b16 %v3335_v27 }
 0x39f   : > { %3421 = vrot.lane.b32.xlu1 %v3420_v29, %s6205_s22 }
 0x3a0   : > { %v3397_v29 = vpack.c.b16 %v3396_v38, %v3395_v26 }
 0x3a4   : > { %3426 = vrot.lane.b32.xlu2 %v3425_v45, %s6208_s25 }
 0x3a5   : > { %3431 = vrot.lane.b32.xlu0 %v3430_v47, %s6209_s26 }
 0x3a7   : > { %3527 = vrot.lane.b32.xlu1 %v7366_v12, %s6212_s29  ;;  %v10209_v12 = vld [vmem:[#allocation15_spill] sm:$0xff] }
 0x3ac   : > { %3529 = vrot.lane.b32.xlu2 %v7625_v43, %s6212_s29  ;;  %v10213_v43 = vld [vmem:[#allocation14_spill] sm:$0xff] }
 0x3ad   : > { %3531 = vrot.lane.b32.xlu0 %v7380_v60, %s6212_s29  ;;  %v10210_v60 = vld [vmem:[#allocation3_spill] sm:$0xff] }
 0x3af   : > { %3533 = vrot.lane.b32.xlu1 %v7633_v63, %s6212_s29  ;;  %v10214_v63 = vld [vmem:[#allocation10_spill] sm:$0xff] }
 0x3b4   : > { %3535 = vrot.lane.b32.xlu2 %v7389_v51, %s6212_s29 }
 0x3b5   : > { %3537 = vrot.lane.b32.xlu0 %v7640_v14, %s6212_s29 }
 0x3b7   : > { %3539 = vrot.lane.b32.xlu1 %v7406_v9, %s6212_s29  ;;  %v10211_v9 = vld [vmem:[#allocation16_spill] sm:$0xff] }
 0x3bc   : > { %3541 = vrot.lane.b32.xlu2 %v7646_v22, %s6212_s29 }
 0x3bd   : > { %3543 = vrot.lane.b32.xlu0 %v7414_v32, %s6212_s29  ;;  %v190_v32 = vld [vmem:[%s9950_s2 + $0x20] sm:$0xff] }
 0x3bf   : > { %3545 = vrot.lane.b32.xlu1 %v7651_v58, %s6212_s29 }
 0x3c4   : > { %3547 = vrot.lane.b32.xlu2 %v7432_v13, %s6212_s29  ;;  %v191_v13 = vld [vmem:[%s9950_s2 + $0x28] sm:$0xff] }
 0x3c5   : > { %3549 = vrot.lane.b32.xlu0 %v7663_v36, %s6212_s29  ;;  %v10215_v36 = vld [vmem:[#allocation12_spill] sm:$0xff] }
 0x3c7   : > { %3551 = vrot.lane.b32.xlu1 %v7439_v16, %s6212_s29  ;;  %v10212_v16 = vld [vmem:[#allocation21_spill] sm:$0xff] }
 0x3cc   : > { %3553 = vrot.lane.b32.xlu2 %v7671_v28, %s6212_s29 }
 0x3cd   : > { %3555 = vrot.lane.b32.xlu0 %v7454_v55, %s6212_s29  ;;  %v230_v55 = vmul.f32 %v10212_v16, %v190_v32 }
 0x3cf   : > { %3557 = vrot.lane.b32.xlu1 %v7679_v52, %s6212_s29  ;;  %v266_v14 = vpack.c.bf16 %v230_v55, %v230_v55 }
 0x3d1   : > { %v1342_v28 = vunpack.c.l.b16 %v266_v14  ;;  %v10225_v14 = vld [vmem:[#allocation5_spill] sm:$0xff] }
 0x3d4   : > { %3559 = vrot.lane.b32.xlu2 %v7462_v50, %s6212_s29  ;;  %v231_v50 = vmul.f32 %v10212_v16, %v191_v13 }
 0x3d5   : > { %3561 = vrot.lane.b32.xlu0 %v7683_v34, %s6212_s29 }
 0x3d6   : > { %v267_v22 = vpack.c.bf16 %v231_v50, %v231_v50 }
 0x3d7   : > { %3563 = vrot.lane.b32.xlu1 %v10194_v56, %s6212_s29  ;;  %v10216_v56 = vld [vmem:[#allocation17_spill] sm:$0xff] }
 0x3d8   : > { %v1343_v52 = vunpack.c.l.b16 %v267_v22 }
 0x3da   : > { %v1346_v34 = vpack.c.b16 %v1343_v52, %v1342_v28 }
 0x3dc   : > { %3565 = vrot.lane.b32.xlu2 %v10209_v12, %s6212_s29  ;;  %6018 = vmatmul.msk.bf16.vlgmr.msra.gmra.mxu0 %vm743_vm1, %v1346_v34 }
 0x3dd   : > { %3567 = vrot.lane.b32.xlu0 %v10210_v60, %s6212_s29  ;;  %6020 = vmatmul.msk.bf16.vlgmr.msra.gmra.mxu1 %vm743_vm1, %v1346_v34 }
 0x3de   : > { %v3364_v51 = vpop.permute.xlu2 %3363 }
 0x3df   : > { %3569 = vrot.lane.b32.xlu1 %v10211_v9, %s6212_s29  ;;  %v3435_v21 = vsel %vm743_vm1, %v3359_v24, %v3364_v51 }
 0x3e4   : > { %3571 = vrot.lane.b32.xlu2 %v10213_v43, %s6212_s29 }
 0x3e5   : > { %3573 = vrot.lane.b32.xlu0 %v10214_v63, %s6212_s29 }
 0x3e6   : > { %v3379_v58 = vpop.permute.xlu2 %3378 }
 0x3e7   : > { %3575 = vrot.lane.b32.xlu1 %v10215_v36, %s6212_s29 }
 0x3ec   : > { %3577 = vrot.lane.b32.xlu2 %v10216_v56, %s6212_s29 }
 0x3ed   : > { %3579 = vrot.lane.b32.xlu0 %v10217_v2, %s6212_s29 }
 0x3ee   : > { %v3394_v30 = vpop.permute.xlu2 %3393 }
 0x3ef   : > { %3581 = vrot.lane.b32.xlu1 %v10220_v0, %s6212_s29 }
 0x3f4   : > { %3583 = vrot.lane.b32.xlu2 %v10221_v7, %s6212_s29 }
 0x3f5   : > { %3585 = vrot.lane.b32.xlu0 %v10222_v23, %s6212_s29 }
 0x3f6   : > { %v3412_v31 = vpop.permute.xlu2 %3411 }
 0x3f7   : > { %3587 = vrot.lane.b32.xlu1 %v10223_v17, %s6212_s29  ;;  %v3369_v53 = vpop.permute.xlu0 %3368 }
 0x3f8   : > { %v3437_v57 = vsel %vm747_vm2, %v3435_v21, %v3369_v53 }
 0x3f9   : > { %v3374_v15 = vpop.permute.xlu1 %3373 }
 0x3fa   : > { %v3439_v3 = vsel %vm750_vm3, %v3437_v57, %v3374_v15 }
 0x3fb   : > { %v3441_v39 = vsel %vm753_vm4, %v3439_v3, %v3379_v58 }
 0x3fc   : > { %3589 = vrot.lane.b32.xlu2 %v10224_v6, %s6212_s29 }
 0x3fe   : > { %v3427_v33 = vpop.permute.xlu2 %3426 }
 0x3ff   : > { %v3384_v18 = vpop.permute.xlu0 %3383 }
 0x400   : > { %v3443_v25 = vsel %vm756_vm5, %v3441_v39, %v3384_v18 }
 0x401   : > { %v3389_v40 = vpop.permute.xlu1 %3388 }
 0x402   : > { %v3445_v35 = vsel %vm759_vm6, %v3443_v25, %v3389_v40 }
 0x403   : > { %v3447_v48 = vsel %vm762_vm7, %v3445_v35, %v3394_v30 }
 0x404   : > { %3488 = vmatpush.bf16.msra.mxu0 %v3447_v48 }
 0x406   : > { %v3530_v11 = vpop.permute.xlu2 %3529 }
 0x407   : > { %v3402_v62 = vpop.permute.xlu0 %3401 }
 0x408   : > { %v3451_v61 = vsel %vm743_vm1, %v3397_v29, %v3402_v62  ;;  %v8230_v29 = vld [vmem:[%s6253_s20 + $0x8] sm:$0x1] }
 0x409   : > { %v3407_v37 = vpop.permute.xlu1 %3406 }
 0x40a   : > { %v3453_v41 = vsel %vm747_vm2, %v3451_v61, %v3407_v37  ;;  %v8234_v61 = vld [vmem:[%s6253_s20 + $0x14] sm:$0x1] }
 0x40b   : > { %v3455_v1 = vsel %vm750_vm3, %v3453_v41, %v3412_v31 }
 0x40e   : > { %v3536_v8 = vpop.permute.xlu2 %3535 }
 0x40f   : > { %v3417_v49 = vpop.permute.xlu0 %3416 }
 0x410   : > { %v3457_v59 = vsel %vm753_vm4, %v3455_v1, %v3417_v49 }
 0x411   : > { %v3422_v45 = vpop.permute.xlu1 %3421 }
 0x412   : > { %v3459_v47 = vsel %vm756_vm5, %v3457_v59, %v3422_v45  ;;  %v8245_v45 = vld [vmem:[%s6253_s20 + $0x2c] sm:$0x1] }
 0x413   : > { %v3461_v20 = vsel %vm759_vm6, %v3459_v47, %v3427_v33 }
 0x416   : > { %v3542_v12 = vpop.permute.xlu2 %3541 }
 0x417   : > { %v3432_v4 = vpop.permute.xlu0 %3431 }
 0x418   : > { %v3463_v46 = vsel %vm762_vm7, %v3461_v20, %v3432_v4 }
 0x419   : > { %v3528_v60 = vpop.permute.xlu1 %3527  ;;  %3507 = vmatpush.bf16.msra.mxu1 %v3463_v46 }
 0x41e   : > { %v3548_v51 = vpop.permute.xlu2 %3547 }
 0x41f   : > { %v3532_v9 = vpop.permute.xlu0 %3531  ;;  %v3651_v21 = vrot.slane %v3548_v51, 4 }
 0x421   : > { %v3534_v32 = vpop.permute.xlu1 %3533  ;;  %v3652_v18 = vsel %vm347_vm0, %v3651_v21, %v3532_v9  ;;  %v8260_v9 = vld [vmem:[%s6253_s20 + $0x50] sm:$0x1] }
 0x422   : > { %v8225_v38 = vperm.slane %v3652_v18, %v10225_v14  ;;  %v8300_v21 = vld [vmem:[%s6253_s20 + $0xb0] sm:$0x1] }
 0x423   : > { %10228 = vst [vmem:[#allocation19_spill] sm:$0xff] %v8300_v21 }
 0x426   : > { %v3554_v13 = vpop.permute.xlu2 %3553 }
 0x427   : > { %v3538_v16 = vpop.permute.xlu0 %3537  ;;  %v3741_v55 = vrot.slane %v3554_v13, 4  ;;  %v8264_v13 = vld [vmem:[%s6253_s20 + $0x5c] sm:$0x1] }
 0x429   : > { %v3540_v50 = vpop.permute.xlu1 %3539  ;;  %v3742_v43 = vsel %vm347_vm0, %v3741_v55, %v3538_v16 }
 0x42a   : > { %v3746_v22 = vperm.slane %v3742_v43, %v10225_v14 }
 0x42c   : > { %v3747_v52 = vrot.slane %v3746_v22, 4 }
 0x42e   : > { %v8192_v63 = vpop.permute.xlu2 %3559 }
 0x42f   : > { %v3544_v58 = vpop.permute.xlu0 %3543 }
 0x430   : > { %v3623_v6 = vrot.slane %v3544_v58, 4 }
 0x431   : > { %v3546_v36 = vpop.permute.xlu1 %3545 }
 0x432   : > { %v3735_v28 = vrot.slane %v3546_v36, 4  ;;  %v3624_v35 = vsel %vm347_vm0, %v3623_v6, %v3528_v60  ;;  %v8256_v60 = vld [vmem:[%s6253_s20 + $0x44] sm:$0x1] }
 0x433   : > { %v3628_v4 = vperm.slane %v3624_v35, %v10225_v14 }
 0x434   : > { %v3736_v34 = vsel %vm347_vm0, %v3735_v28, %v3530_v11  ;;  %v8276_v28 = vld [vmem:[%s6253_s20 + $0x74] sm:$0x1] }
 0x435   : > { %v3740_v56 = vperm.slane %v3736_v34, %v10225_v14  ;;  %v8280_v34 = vld [vmem:[%s6253_s20 + $0x80] sm:$0x1] }
 0x436   : > { %v8197_v2 = vpop.permute.xlu2 %3565 }
 0x437   : > { %v8200_v42 = vsel %vm347_vm0, %v3747_v52, %v3740_v56  ;;  %v3749_v5 = vrot.slane %v3740_v56, 4  ;;  %v3550_v44 = vpop.permute.xlu0 %3549 }
 0x438   : > { %v3763_v25 = vrot.slane %v3550_v44, 4 }
 0x439   : > { %v8203_v30 = vsel %vm347_vm0, %v3746_v22, %v3749_v5  ;;  %v3552_v0 = vpop.permute.xlu1 %3551 }
 0x43a   : > { %v3629_v24 = vrot.slane %v3552_v0, 4  ;;  %v3764_v1 = vsel %vm347_vm0, %v3763_v25, %v3534_v32  ;;  %v8288_v0 = vld [vmem:[%s6253_s20 + $0x8c] sm:$0x1] }
 0x43b   : > { %v3768_v22 = vperm.slane %v3764_v1, %v10225_v14  ;;  %v8318_v1 = vperm.slane %v8203_v30, %v6299_v19 }
 0x43c   : > { %v3630_v57 = vsel %vm347_vm0, %v3629_v24, %v3536_v8  ;;  %v8238_v8 = vld [vmem:[%s6253_s20 + $0x20] sm:$0x1]  ;;  %v8296_v24 = vld [vmem:[%s6253_s20 + $0xa4] sm:$0x1] }
 0x43d   : > { %v8219_v33 = vperm.slane %v3630_v57, %v10225_v14  ;;  %10227 = vst [vmem:[#allocation20_spill] sm:$0xff] %v8296_v24 }
 0x43e   : > { %v8205_v54 = vpop.permute.xlu2 %3571 }
 0x43f   : > { %v3556_v10 = vpop.permute.xlu0 %3555  ;;  %v3635_v26 = vrot.slane %v8219_v33, 4 }
 0x440   : > { %v3657_v23 = vrot.slane %v3556_v10, 4 }
 0x441   : > { %v3558_v7 = vpop.permute.xlu1 %3557  ;;  %v3636_v58 = vsel %vm347_vm0, %v3635_v26, %v3628_v4  ;;  %v3637_v26 = vrot.slane %v3628_v4, 4 }
 0x442   : > { %v3658_v17 = vsel %vm347_vm0, %v3657_v23, %v3540_v50  ;;  %v3769_v39 = vrot.slane %v3558_v7, 4  ;;  %v8269_v50 = vld [vmem:[%s6253_s20 + $0x68] sm:$0x1]  ;;  %v8292_v7 = vld [vmem:[%s6253_s20 + $0x98] sm:$0x1] }
 0x443   : > { %v8216_v3 = vperm.slane %v3658_v17, %v10225_v14 }
 0x444   : > { %v3770_v11 = vsel %vm347_vm0, %v3769_v39, %v3542_v12  ;;  %v8249_v12 = vld [vmem:[%s6253_s20 + $0x38] sm:$0x1]  ;;  %v8304_v39 = vperm.slane %v3636_v58, %v6299_v19 }
 0x445   : > { %v3663_v27 = vrot.slane %v8216_v3, 4  ;;  %v3774_v55 = vperm.slane %v3770_v11, %v10225_v14  ;;  %v3777_v11 = vrot.slane %v3768_v22, 4 }
 0x446   : > { %v8207_v31 = vpop.permute.xlu2 %3577  ;;  %10229 = vst [vmem:[#allocation18_spill] sm:$0xff] %v8304_v39  ;;  %v3850_v17 = vshrl.u32 %v8304_v39, 16 }
 0x447   : > { %v8210_v53 = vpop.permute.xlu0 %3561  ;;  %v3664_v46 = vsel %vm347_vm0, %v3663_v27, %v8225_v38  ;;  %v3791_v44 = vrot.slane %v8207_v31, 4  ;;  %v3775_v31 = vrot.slane %v3774_v55, 4  ;;  %v3778_v4 = vsel %vm347_vm0, %v3774_v55, %v3777_v11 }
 0x448   : > { %v8284_v5 = vperm.slane %v3664_v46, %v6299_v19 }
 0x449   : > { %v8213_v15 = vpop.permute.xlu1 %3563  ;;  %v3792_v46 = vsel %vm347_vm0, %v3791_v44, %v8210_v53  ;;  %v3776_v35 = vsel %vm347_vm0, %v3775_v31, %v3768_v22 }
 0x44a   : > { %10226 = vst [vmem:[#allocation2_spill] sm:$0xff] %v8284_v5  ;;  %v8332_v53 = vperm.slane %v3792_v46, %v10225_v14  ;;  %v8350_v11 = vperm.slane %v3776_v35, %v6299_v19 }
 0x44c   : > { %10232 = vst [vmem:[#allocation25_spill] sm:$0xff] %v8350_v11 }
 0x44e   : > { %v3584_v40 = vpop.permute.xlu2 %3583 }
 0x44f   : > { %v3568_v48 = vpop.permute.xlu0 %3567  ;;  %v3685_v62 = vrot.slane %v3584_v40, 4  ;;  %v8308_v40 = vld [vmem:[%s6253_s20 + $0xbc] sm:$0x1] }
 0x450   : > { %10230 = vst [vmem:[#allocation7_spill] sm:$0xff] %v8308_v40 }
 0x451   : > { %v8242_v59 = vpop.permute.xlu1 %3569  ;;  %v3686_v36 = vsel %vm347_vm0, %v3685_v62, %v3568_v48  ;;  %v3665_v48 = vrot.slane %v8225_v38, 4  ;;  %v8314_v62 = vperm.slane %v8200_v42, %v6299_v19 }
 0x452   : > { %v3690_v18 = vperm.slane %v3686_v36, %v10225_v14  ;;  %v3851_v36 = vshrl.u32 %v8284_v5, 16 }
 0x453   : > { %10231 = vst [vmem:[#allocation24_spill] sm:$0xff] %v8314_v62  ;;  %v3666_v38 = vsel %vm347_vm0, %v8216_v3, %v3665_v48  ;;  %v3675_v3 = vrot.slane %v8284_v5, 4 }
 0x454   : > { %v3691_v57 = vrot.slane %v3690_v18, 4  ;;  %v3674_v48 = vperm.slane %v3666_v38, %v6299_v19  ;;  %v8341_v31 = vpack.i.b16 %v3851_v36, %v3850_v17  ;;  %v3805_v17 = vrot.slane %v8332_v53, 4 }
 0x456   : > { %v3590_v6 = vpop.permute.xlu2 %3589  ;;  %v3863_v56 = vshrl.u32 %v3674_v48, 16 }
 0x457   : > { %v3574_v25 = vpop.permute.xlu0 %3573  ;;  %v3825_v27 = vrot.slane %v3590_v6, 4  ;;  %v3638_v6 = vsel %vm347_vm0, %v8219_v33, %v3637_v26  ;;  %v3647_v33 = vrot.slane %v8304_v39, 4  ;;  %v6188_v39 = vld [vmem:[%s6253_s20 + $0xa8] sm:$0xf] }
 0x458   : > { %v3646_v55 = vperm.slane %v3638_v6, %v6299_v19 }
 0x459   : > { %v3576_v58 = vpop.permute.xlu1 %3575  ;;  %v3826_v30 = vsel %vm347_vm0, %v3825_v27, %v3574_v25  ;;  %v8344_v25 = vperm.slane %v3778_v4, %v6299_v19  ;;  %v3648_v26 = vsel %vm347_vm0, 0, %v3647_v33 }
 0x45a   : > { %v3679_v42 = vrot.slane %v3576_v58, 4  ;;  %v3830_v27 = vperm.slane %v3826_v30, %v10225_v14  ;;  %v3861_v35 = vpack.i.b16 %v3674_v48, %v3646_v55 }
 0x45c   : > { %v3680_v44 = vsel %vm347_vm0, %v3679_v42, %v8192_v63  ;;  %v3676_v63 = vsel %vm347_vm0, 0, %v3675_v3  ;;  %v3856_v3 = vshrl.u32 %v3648_v26, 16 }
 0x45d   : > { %v3684_v22 = vperm.slane %v3680_v44, %v10225_v14  ;;  %v3855_v38 = vpack.i.b16 %v3676_v63, %v3648_v26  ;;  %v3857_v42 = vshrl.u32 %v3676_v63, 16 }
 0x45f   : > { %v3692_v46 = vsel %vm347_vm0, %v3691_v57, %v3684_v22  ;;  %v3693_v58 = vrot.slane %v3684_v22, 4  ;;  %v3580_v6 = vpop.permute.xlu0 %3579  ;;  %v3831_v57 = vrot.slane %v3830_v27, 4  ;;  %v8366_v63 = vunpack.c.l.b16 %v3855_v38 }
 0x460   : > { %v8355_v36 = vperm.slane %v3692_v46, %v6299_v19  ;;  %v3707_v4 = vrot.slane %v3580_v6, 4 }
 0x461   : > { %v3694_v30 = vsel %vm347_vm0, %v3690_v18, %v3693_v58  ;;  %v3582_v44 = vpop.permute.xlu1 %3581  ;;  %v8368_v18 = vpack.i.b16 %v3857_v42, %v3856_v3  ;;  %v3649_v42 = vrot.slane %v3646_v55, 4  ;;  %v3677_v3 = vrot.slane %v3674_v48, 4 }
 0x462   : > { %10233 = vst [vmem:[#allocation26_spill] sm:$0xff] %v8355_v36  ;;  %v8360_v23 = vperm.slane %v3694_v30, %v6299_v19  ;;  %v3708_v22 = vsel %vm347_vm0, %v3707_v4, %v8213_v15  ;;  %v3819_v10 = vrot.slane %v3582_v44, 4  ;;  %v3703_v6 = vrot.slane %v8355_v36, 4 }
 0x463   : > { %v3712_v46 = vperm.slane %v3708_v22, %v10225_v14  ;;  %v3898_v58 = vshrl.u32 %v8355_v36, 16  ;;  %v3862_v30 = vshrl.u32 %v3646_v55, 16  ;;  %v8377_v4 = vunpack.c.l.b16 %v3861_v35  ;;  %v6190_v36 = vld [vmem:[%s6253_s20 + $0xb4] sm:$0xf] }
 0x464   : > { %v3820_v26 = vsel %vm347_vm0, %v3819_v10, %v8197_v2  ;;  %v8375_v15 = vsel %vm347_vm0, 0, %v3703_v6  ;;  %v3910_v44 = vshrl.u32 %v8360_v23, 16  ;;  %v3650_v51 = vsel %vm347_vm0, 0, %v3649_v42 }
 0x465   : > { %v3824_v52 = vperm.slane %v3820_v26, %v10225_v14  ;;  %v3721_v38 = vrot.slane %v3712_v46, 4  ;;  %v8380_v22 = vpack.i.b16 %v3863_v56, %v3862_v30  ;;  %v3705_v26 = vrot.slane %v8360_v23, 4 }
 0x467   : > { %v3832_v2 = vsel %vm347_vm0, %v3831_v57, %v3824_v52  ;;  %v3833_v10 = vrot.slane %v3824_v52, 4  ;;  %v3586_v43 = vpop.permute.xlu0 %3585  ;;  %v3966_v48 = vunpack.c.l.b16 %v8380_v22  ;;  %v3678_v52 = vsel %vm347_vm0, 0, %v3677_v3 }
 0x468   : > { %v8386_v6 = vperm.slane %v3832_v2, %v6299_v19  ;;  %v3797_v35 = vrot.slane %v3586_v43, 4  ;;  %v8394_v57 = vsel %vm347_vm0, 0, %v3705_v26  ;;  %v3867_v20 = vpack.i.b16 %v3678_v52, %v3650_v51 }
 0x469   : > { %v3834_v56 = vsel %vm347_vm0, %v3830_v27, %v3833_v10  ;;  %v3588_v55 = vpop.permute.xlu1 %3587  ;;  %v3868_v43 = vshrl.u32 %v3650_v51, 16  ;;  %v3869_v27 = vshrl.u32 %v3678_v52, 16  ;;  %v3916_v10 = vshrl.u32 %v8394_v57, 16 }
 0x46a   : > { %10234 = vst [vmem:[#allocation15_spill] sm:$0xff] %v8386_v6  ;;  %v3798_v30 = vsel %vm347_vm0, %v3797_v35, %v8242_v59  ;;  %v3713_v2 = vrot.slane %v3588_v55, 4  ;;  %v8399_v47 = vperm.slane %v3834_v56, %v6299_v19  ;;  %v8405_v3 = vunpack.c.l.b16 %v3867_v20 }
 0x46b   : > { %v3802_v42 = vperm.slane %v3798_v30, %v10225_v14  ;;  %v3874_v26 = vshrl.u32 %v8314_v62, 16  ;;  %v3875_v59 = vshrl.u32 %v8350_v11, 16  ;;  %v8411_v55 = vpack.i.b16 %v3869_v27, %v3868_v43 }
 0x46c   : > { %v3714_v22 = vsel %vm347_vm0, %v3713_v2, %v8205_v54  ;;  %v3923_v49 = vshrl.u32 %v8386_v6, 16  ;;  %v3759_v54 = vrot.slane %v8314_v62, 4 }
 0x46d   : > { %v3803_v35 = vrot.slane %v3802_v42, 4  ;;  %v3806_v51 = vsel %vm347_vm0, %v3802_v42, %v3805_v17  ;;  %v3718_v56 = vperm.slane %v3714_v22, %v10225_v14  ;;  %v3876_v30 = vpack.i.b16 %v3875_v59, %v3874_v26 }
 0x46e   : > { %v8414_v52 = vperm.slane %v3806_v51, %v6299_v19  ;;  %v3976_v17 = vunpack.c.l.b16 %v8411_v55  ;;  %v3760_v22 = vsel %vm347_vm0, 0, %v3759_v54  ;;  %v3787_v59 = vrot.slane %v8350_v11, 4 }
 0x46f   : > { %v3804_v20 = vsel %vm347_vm0, %v3803_v35, %v8332_v53  ;;  %v3719_v2 = vrot.slane %v3718_v56, 4  ;;  %v3722_v41 = vsel %vm347_vm0, %v3718_v56, %v3721_v38  ;;  %v3984_v27 = vunpack.c.l.b16 %v3876_v30 }
 0x470   : > { %v8423_v42 = vperm.slane %v3804_v20, %v6299_v19  ;;  %v3730_v43 = vperm.slane %v3722_v41, %v6299_v19  ;;  %v3843_v51 = vrot.slane %v8386_v6, 4  ;;  %v3880_v53 = vshrl.u32 %v3760_v22, 16 }
 0x471   : > { %v3720_v26 = vsel %vm347_vm0, %v3719_v2, %v3712_v46  ;;  %v3788_v41 = vsel %vm347_vm0, 0, %v3787_v59  ;;  %v10237_v6 = vshrl.u32 %v8375_v15, 16 }
 0x472   : > { %10235 = vst [vmem:[#allocation3_spill] sm:$0xff] %v8423_v42  ;;  %v8431_v35 = vperm.slane %v3720_v26, %v6299_v19  ;;  %v3909_v38 = vpack.i.b16 %v3730_v43, %v8360_v23  ;;  %v3911_v56 = vshrl.u32 %v3730_v43, 16  ;;  %v3733_v55 = vrot.slane %v3730_v43, 4 }
 0x473   : > { %v3922_v20 = vshrl.u32 %v8423_v42, 16  ;;  %v3815_v30 = vrot.slane %v8423_v42, 4  ;;  %v3844_v46 = vsel %vm347_vm0, 0, %v3843_v51  ;;  %v3879_v33 = vpack.i.b16 %v3788_v41, %v3760_v22 }
 0x474   : > { %10236 = vst [vmem:[#allocation16_spill] sm:$0xff] %v8431_v35  ;;  %v3899_v54 = vshrl.u32 %v8431_v35, 16  ;;  %v3731_v2 = vrot.slane %v8431_v35, 4  ;;  %v8440_v37 = vunpack.c.l.b16 %v3909_v38  ;;  %v3912_v26 = vpack.i.b16 %v3911_v56, %v3910_v44 }
 0x475   : > { %v3734_v16 = vsel %vm347_vm0, 0, %v3733_v55  ;;  %v3924_v23 = vpack.i.b16 %v3923_v49, %v3922_v20  ;;  %v3816_v43 = vsel %vm347_vm0, 0, %v3815_v30  ;;  %v10238_v42 = vunpack.c.l.b16 %v8341_v31 }
 0x476   : > { %v3900_v59 = vpack.i.b16 %v3899_v54, %v3898_v58  ;;  %v3732_v32 = vsel %vm347_vm0, 0, %v3731_v2  ;;  %v3963_v51 = vpack.c.b16 %v8440_v37, %v8377_v4  ;;  %v3967_v11 = vunpack.c.l.b16 %v3912_v26 }
 0x477   : > { %v3903_v62 = vpack.i.b16 %v3732_v32, %v8375_v15  ;;  %v3905_v38 = vshrl.u32 %v3732_v32, 16  ;;  %v3915_v44 = vpack.i.b16 %v3734_v16, %v8394_v57  ;;  %v3917_v56 = vshrl.u32 %v3734_v16, 16 }
 0x478   : > { %v3947_v55 = vunpack.c.l.b16 %v3900_v59  ;;  %v3968_v49 = vpack.c.b16 %v3967_v11, %v3966_v48  ;;  %v3985_v20 = vunpack.c.l.b16 %v3924_v23  ;;  %v3927_v30 = vpack.i.b16 %v3844_v46, %v3816_v43 }
 0x479   : > { %v3952_v22 = vunpack.c.l.b16 %v3903_v62  ;;  %v3906_v58 = vpack.i.b16 %v3905_v38, %v10237_v6  ;;  %v3972_v54 = vunpack.c.l.b16 %v3915_v44  ;;  %v3918_v2 = vpack.i.b16 %v3917_v56, %v3916_v10 }
 0x47a   : > { %v3948_v37 = vpack.c.b16 %v3947_v55, %v10238_v42  ;;  %v8455_v4 = vpack.c.b16 %v3985_v20, %v3984_v27  ;;  %v8457_v26 = vunpack.c.l.b16 %v3879_v33  ;;  %v8459_v32 = vunpack.c.l.b16 %v3927_v30  ;;  %v8654_v55 = vld [vmem:[%s6253_s20 + $0xa0] sm:$0xf] }
 0x47b   : > { %v3953_v16 = vpack.c.b16 %v3952_v22, %v8366_v63  ;;  %v3957_v11 = vunpack.c.l.b16 %v3906_v58  ;;  %v3973_v48 = vpack.c.b16 %v3972_v54, %v8405_v3  ;;  %v3977_v62 = vunpack.c.l.b16 %v3918_v2 }
 0x47c   : > { %3949 = vrot.lane.b32.xlu0 %v3948_v37, %s6206_s23  ;;  %v3991_v15 = vpack.c.b16 %v8459_v32, %v8457_v26  ;;  %v3881_v6 = vshrl.u32 %v3788_v41, 16  ;;  %v3928_v31 = vshrl.u32 %v3816_v43, 16  ;;  %v3929_v57 = vshrl.u32 %v3844_v46, 16 }
 0x47d   : > { %3954 = vrot.lane.b32.xlu1 %v3953_v16, %s6207_s24  ;;  %v10239_v33 = vunpack.c.l.b16 %v8368_v18  ;;  %v8469_v42 = vpack.c.b16 %v3977_v62, %v3976_v17  ;;  %v3885_v63 = vpack.i.b16 %v8344_v25, %v8318_v1  ;;  %v3933_v3 = vpack.i.b16 %v8399_v47, %v8414_v52 }
 0x47e   : > { %v3882_v27 = vpack.i.b16 %v3881_v6, %v3880_v53  ;;  %v3930_v23 = vpack.i.b16 %v3929_v57, %v3928_v31  ;;  %v3886_v59 = vshrl.u32 %v8318_v1, 16  ;;  %v3887_v41 = vshrl.u32 %v8344_v25, 16 }
 0x47f   : > { %v3958_v10 = vpack.c.b16 %v3957_v11, %v10239_v33  ;;  %v8478_v46 = vunpack.c.l.b16 %v3885_v63  ;;  %v8480_v18 = vunpack.c.l.b16 %v3933_v3  ;;  %v3934_v17 = vshrl.u32 %v8414_v52, 16 }
 0x480   : > { %v3935_v43 = vshrl.u32 %v8399_v47, 16  ;;  %v3994_v38 = vunpack.c.l.b16 %v3882_v27  ;;  %v3995_v44 = vunpack.c.l.b16 %v3930_v23  ;;  %v3888_v56 = vpack.i.b16 %v3887_v41, %v3886_v59  ;;  %v6162_v41 = vld [vmem:[%s6253_s20 + $0xc] sm:$0xf] }
 0x481   : > { %3959 = vrot.lane.b32.xlu2 %v3958_v10, %s6210_s27  ;;  %v3761_v53 = vrot.slane %v8318_v1, 4  ;;  %v3789_v30 = vrot.slane %v8344_v25, 4  ;;  %v3817_v22 = vrot.slane %v8414_v52, 4  ;;  %v3845_v37 = vrot.slane %v8399_v47, 4 }
 0x482   : > { %v3936_v20 = vpack.i.b16 %v3935_v43, %v3934_v17  ;;  %v8489_v58 = vpack.c.b16 %v3995_v44, %v3994_v38  ;;  %v4004_v54 = vunpack.c.l.b16 %v3888_v56  ;;  %v6043_v17 = vrot.slane %v6162_v41, 9  ;;  %v8516_v44 = vld [vmem:[%s6253_s20 + $0x10] sm:$0xf]  ;;  %v6164_v56 = vld [vmem:[%s6253_s20 + $0x18] sm:$0xf] }
 0x483   : > { %v3762_v2 = vsel %vm347_vm0, 0, %v3761_v53  ;;  %v3790_v11 = vsel %vm347_vm0, 0, %v3789_v30  ;;  %v3818_v1 = vsel %vm347_vm0, 0, %v3817_v22  ;;  %v3846_v25 = vsel %vm347_vm0, 0, %v3845_v37  ;;  %v6166_v37 = vld [vmem:[%s6253_s20 + $0x24] sm:$0xf] }
 0x484   : > { %v4005_v16 = vunpack.c.l.b16 %v3936_v20  ;;  %v3892_v62 = vshrl.u32 %v3762_v2, 16  ;;  %3964 = vrot.lane.b32.xlu0 %v3963_v51, %s6204_s21  ;;  %v3891_v6 = vpack.i.b16 %v3790_v11, %v3762_v2  ;;  %v3893_v52 = vshrl.u32 %v3790_v11, 16  ;;  %v6160_v51 = vld [vmem:[%s6253_s20] sm:$0xf]  ;;  %v8521_v20 = vld [vmem:[%s6253_s20 + $0x1c] sm:$0xf] }
 0x485   : > { %v3940_v31 = vshrl.u32 %v3818_v1, 16  ;;  %3969 = vrot.lane.b32.xlu1 %v3968_v49, %s6205_s22  ;;  %v3939_v47 = vpack.i.b16 %v3846_v25, %v3818_v1  ;;  %v3941_v33 = vshrl.u32 %v3846_v25, 16  ;;  %v6042_v3 = vrot.slane %v6160_v51, 9  ;;  %v8507_v49 = vld [vmem:[%s6253_s20 + $0x4] sm:$0xf] }
 0x486   : > { %v8498_v57 = vpack.c.b16 %v4005_v16, %v4004_v54  ;;  %v8500_v10 = vunpack.c.l.b16 %v3891_v6  ;;  %v3894_v63 = vpack.i.b16 %v3893_v52, %v3892_v62  ;;  %v10035_v59 = vrot.slane %v8507_v49, 5  ;;  %v8546_v62 = vld [vmem:[%s6253_s20 + $0x28] sm:$0xf]  ;;  %v6168_v6 = vld [vmem:[%s6253_s20 + $0x30] sm:$0xf] }
 0x487   : > { %v8504_v27 = vunpack.c.l.b16 %v3939_v47  ;;  %v3942_v23 = vpack.i.b16 %v3941_v33, %v3940_v31  ;;  %v6044_v53 = vrot.slane %v6164_v56, 9  ;;  %v10032_v30 = vrot.slane %v8521_v20, 5  ;;  %v8553_v47 = vld [vmem:[%s6253_s20 + $0x34] sm:$0xf]  ;;  %v8571_v56 = vld [vmem:[%s6253_s20 + $0x4c] sm:$0xf] }
 0x488   : > { %v4014_v43 = vunpack.c.l.b16 %v3894_v63  ;;  %v8530_v2 = vsel %vm8511_vm13, %v6042_v3, %v10035_v59  ;;  %v6045_v16 = vrot.slane %v6166_v37, 9  ;;  %v10031_v25 = vrot.slane %v8546_v62, 5  ;;  %v6170_v63 = vld [vmem:[%s6253_s20 + $0x3c] sm:$0xf]  ;;  %v8558_v3 = vld [vmem:[%s6253_s20 + $0x40] sm:$0xf] }
 0x489   : > { %3974 = vrot.lane.b32.xlu2 %v3973_v48, %s6208_s25  ;;  %v10034_v48 = vrot.slane %v8516_v44, 5  ;;  %v4015_v54 = vunpack.c.l.b16 %v3942_v23  ;;  %10242 = vst [vmem:[#allocation21_spill] sm:$0xff] %v8530_v2  ;;  %v8543_v1 = vsel %vm8511_vm13, %v6044_v53, %v10032_v30  ;;  %v6046_v52 = vrot.slane %v6168_v6, 9  ;;  %v8590_v6 = vld [vmem:[%s6253_s20 + $0x58] sm:$0xf] }
 0x48a   : > { %10244 = vst [vmem:[#allocation10_spill] sm:$0xff] %v8543_v1  ;;  %v10030_v33 = vrot.slane %v8553_v47, 5  ;;  %v6047_v51 = vrot.slane %v6170_v63, 9  ;;  %v10029_v23 = vrot.slane %v8558_v3, 5  ;;  %v8567_v41 = vsel %vm8511_vm13, %v6045_v16, %v10031_v25  ;;  %v8606_v25 = vld [vmem:[%s6253_s20 + $0x70] sm:$0xf] }
 0x48b   : > { %v8537_v11 = vsel %vm8511_vm13, %v6043_v17, %v10034_v48  ;;  %v8550_v31 = vpack.c.b16 %v4015_v54, %v4014_v43  ;;  %10245 = vst [vmem:[#allocation12_spill] sm:$0xff] %v8567_v41  ;;  %v6172_v17 = vld [vmem:[%s6253_s20 + $0x48] sm:$0xf]  ;;  %v10033_v53 = vrot.slane %v8571_v56, 5  ;;  %v6174_v54 = vld [vmem:[%s6253_s20 + $0x54] sm:$0xf] }
 0x48c   : > { %10243 = vst [vmem:[#allocation14_spill] sm:$0xff] %v8537_v11  ;;  %3979 = vrot.lane.b32.xlu0 %v8469_v42, %s6209_s26  ;;  %v6048_v43 = vrot.slane %v6172_v17, 9  ;;  %v6049_v37 = vrot.slane %v6174_v54, 9  ;;  %v8581_v42 = vsel %vm8511_vm13, %v6046_v52, %v10030_v33  ;;  %v8587_v16 = vsel %vm8511_vm13, %v6047_v51, %v10029_v23  ;;  %v8601_v54 = vld [vmem:[%s6253_s20 + $0x64] sm:$0xf] }
 0x48d   : > { %3987 = vrot.lane.b32.xlu1 %v8455_v4, %s6206_s23  ;;  %10246 = vst [vmem:[#allocation17_spill] sm:$0xff] %v8581_v42  ;;  %v10037_v63 = vrot.slane %v8590_v6, 5  ;;  %v6176_v4 = vld [vmem:[%s6253_s20 + $0x60] sm:$0xf]  ;;  %v10036_v51 = vrot.slane %v8601_v54, 5  ;;  %v10038_v30 = vrot.slane %v8606_v25, 5 }
 0x48e   : > { %10247 = vst [vmem:[#allocation13_spill] sm:$0xff] %v8587_v16  ;;  %v6050_v17 = vrot.slane %v6176_v4, 9  ;;  %v8598_v52 = vsel %vm8511_vm13, %v6048_v43, %v10033_v53  ;;  %v6178_v23 = vld [vmem:[%s6253_s20 + $0x6c] sm:$0xf]  ;;  %v6180_v4 = vld [vmem:[%s6253_s20 + $0x78] sm:$0xf] }
 0x48f   : > { %10248 = vst [vmem:[#allocation22_spill] sm:$0xff] %v8598_v52  ;;  %v6051_v33 = vrot.slane %v6178_v23, 9  ;;  %v8617_v43 = vsel %vm8511_vm13, %v6049_v37, %v10037_v63  ;;  %v6052_v53 = vrot.slane %v6180_v4, 9  ;;  %v8621_v23 = vld [vmem:[%s6253_s20 + $0x7c] sm:$0xf]  ;;  %v10046_v5 = vrot.slane %v8654_v55, 5 }
 0x490   : > { %10249 = vst [vmem:[#allocation9_spill] sm:$0xff] %v8617_v43  ;;  %v10041_v48 = vrot.slane %v8621_v23, 5  ;;  %v6182_v59 = vld [vmem:[%s6253_s20 + $0x84] sm:$0xf]  ;;  %v8629_v26 = vsel %vm8511_vm13, %v6050_v17, %v10036_v51  ;;  %v6184_v4 = vld [vmem:[%s6253_s20 + $0x90] sm:$0xf] }
 0x491   : > { %3992 = vrot.lane.b32.xlu2 %v3991_v15, %s6207_s24  ;;  %v6053_v22 = vrot.slane %v6182_v59, 9  ;;  %10250 = vst [vmem:[#allocation11_spill] sm:$0xff] %v8629_v26  ;;  %v8635_v32 = vsel %vm8511_vm13, %v6051_v33, %v10038_v30  ;;  %v8638_v15 = vld [vmem:[%s6253_s20 + $0x88] sm:$0xf]  ;;  %v6054_v59 = vrot.slane %v6184_v4, 9  ;;  %v6057_v63 = vrot.slane %v6190_v36, 9 }
 0x492   : > { %10251 = vst [vmem:[#allocation6_spill] sm:$0xff] %v8635_v32  ;;  %v10045_v37 = vrot.slane %v8638_v15, 5  ;;  %v8646_v17 = vsel %vm8511_vm13, %v6052_v53, %v10041_v48  ;;  %v8649_v51 = vld [vmem:[%s6253_s20 + $0x94] sm:$0xf]  ;;  %v6186_v33 = vld [vmem:[%s6253_s20 + $0x9c] sm:$0xf] }
 0x493   : > { %10252 = vst [vmem:[#allocation8_spill] sm:$0xff] %v8646_v17  ;;  %v6055_v30 = vrot.slane %v6186_v33, 9  ;;  %v6056_v53 = vrot.slane %v6188_v39, 9  ;;  %v8665_v48 = vld [vmem:[%s6253_s20 + $0xac] sm:$0xf]  ;;  %v10254_v33 = vrot.slane %v8649_v51, 5  ;;  %v10259_v39 = vpack.c.b16 %v8480_v18, %v8478_v46 }
 0x494   : > { %v8661_v4 = vsel %vm8511_vm13, %v6053_v22, %v10045_v37  ;;  %v8682_v37 = vld [vmem:[%s6253_s20 + $0xb8] sm:$0xf]  ;;  %v4276_v35 = vrot.slane %v8581_v42, 4  ;;  %3997 = vrot.lane.b32.xlu0 %v8489_v58, %s6210_s27  ;;  %v10257_v36 = vrot.slane %v8665_v48, 5 }
 0x495   : > { %10253 = vst [vmem:[#allocation4_spill] sm:$0xff] %v8661_v4  ;;  %v8673_v40 = vsel %vm8511_vm13, %v6054_v59, %v10254_v33  ;;  %v8679_v22 = vsel %vm8511_vm13, %v6055_v30, %v10046_v5  ;;  %v4282_v33 = vrot.slane %v8598_v52, 4  ;;  %v4304_v30 = vrot.slane %v8587_v16, 4  ;;  %4002 = vrot.lane.b32.xlu1 %v10259_v39, %s6204_s21 }
 0x496   : > { %10255 = vst [vmem:[#allocation23_spill] sm:$0xff] %v8673_v40  ;;  %v8692_v59 = vsel %vm8511_vm13, %v6056_v53, %v10257_v36  ;;  %v4310_v5 = vrot.slane %v8617_v43, 4  ;;  %v10260_v42 = vrot.slane %v8682_v37, 5  ;;  %v4277_v53 = vsel %vm347_vm0, %v4276_v35, %v8530_v2 }
 0x497   : > { %10256 = vst [vmem:[#allocation27_spill] sm:$0xff] %v8679_v22  ;;  %v4332_v36 = vrot.slane %v8673_v40, 4  ;;  %v4338_v16 = vrot.slane %v8692_v59, 4  ;;  %v4281_v43 = vperm.slane %v4277_v53, %v10225_v14  ;;  %v4283_v52 = vsel %vm347_vm0, %v4282_v33, %v8543_v1 }
 0x498   : > { %10258 = vst [vmem:[#allocation28_spill] sm:$0xff] %v8692_v59  ;;  %v8705_v58 = vsel %vm8511_vm13, %v6057_v63, %v10260_v42  ;;  %v4305_v46 = vsel %vm347_vm0, %v4304_v30, %v8537_v11  ;;  %v4311_v18 = vsel %vm347_vm0, %v4310_v5, %v8567_v41  ;;  %v4287_v35 = vperm.slane %v4283_v52, %v10225_v14 }
 0x499   : > { %10261 = vst [vmem:[#allocation29_spill] sm:$0xff] %v8705_v58  ;;  %4007 = vrot.lane.b32.xlu2 %v8498_v57, %s6205_s22  ;;  %v4309_v42 = vperm.slane %v4305_v46, %v10225_v14  ;;  %v4315_v63 = vperm.slane %v4311_v18, %v10225_v14  ;;  %v4333_v39 = vsel %vm347_vm0, %v4332_v36, %v8629_v26  ;;  %v4360_v53 = vrot.slane %v8679_v22, 4 }
 0x49a   : > { %v4337_v33 = vperm.slane %v4333_v39, %v10225_v14  ;;  %v4339_v30 = vsel %vm347_vm0, %v4338_v16, %v8646_v17  ;;  %v4366_v5 = vrot.slane %v8705_v58, 4  ;;  %v4288_v40 = vrot.slane %v4287_v35, 4 }
 0x49b   : > { %v4316_v57 = vrot.slane %v4315_v63, 4  ;;  %v4343_v52 = vperm.slane %v4339_v30, %v10225_v14  ;;  %v4290_v41 = vrot.slane %v4281_v43, 4  ;;  %v4361_v46 = vsel %vm347_vm0, %v4360_v53, %v8635_v32 }
 0x49c   : > { %v4367_v36 = vsel %vm347_vm0, %v4366_v5, %v8661_v4  ;;  %v4318_v18 = vrot.slane %v4309_v42, 4  ;;  %v4346_v39 = vrot.slane %v4337_v33, 4  ;;  %v4289_v26 = vsel %vm347_vm0, %v4288_v40, %v4281_v43 }
 0x49d   : > { %v4317_v16 = vsel %vm347_vm0, %v4316_v57, %v4309_v42  ;;  %v4344_v22 = vrot.slane %v4343_v52, 4  ;;  %v4365_v17 = vperm.slane %v4361_v46, %v10225_v14  ;;  %v10262_v30 = vpack.c.b16 %v8504_v27, %v8500_v10  ;;  %4017 = vrot.lane.b32.xlu1 %v8550_v31, %s6209_s26 }
 0x49e   : > { %v8743_v1 = vperm.slane %v4289_v26, %v6299_v19  ;;  %v8746_v53 = vperm.slane %v4317_v16, %v6299_v19  ;;  %v4371_v5 = vperm.slane %v4367_v36, %v10225_v14  ;;  %v4291_v40 = vsel %vm347_vm0, %v4287_v35, %v4290_v41 }
 0x49f   : > { %4012 = vrot.lane.b32.xlu0 %v10262_v30, %s6208_s25  ;;  %v4345_v43 = vsel %vm347_vm0, %v4344_v22, %v4337_v33  ;;  %v4299_v42 = vperm.slane %v4291_v40, %v6299_v19  ;;  %v4319_v10 = vsel %vm347_vm0, %v4315_v63, %v4318_v18  ;;  %v4347_v27 = vsel %vm347_vm0, %v4343_v52, %v4346_v39 }
 0x4a0   : > { %10263 = vst [vmem:[#allocation30_spill] sm:$0xff] %v8743_v1  ;;  %v8757_v26 = vperm.slane %v4345_v43, %v6299_v19  ;;  %v4372_v57 = vrot.slane %v4371_v5, 4  ;;  %v4503_v46 = vshrl.u32 %v8743_v1, 16  ;;  %v4504_v36 = vshrl.u32 %v8746_v53, 16 }
 0x4a1   : > { %10264 = vst [vmem:[#allocation31_spill] sm:$0xff] %v8746_v53  ;;  %v4300_v41 = vrot.slane %v8743_v1, 4  ;;  %v4328_v31 = vrot.slane %v8746_v53, 4  ;;  %v4327_v22 = vperm.slane %v4319_v10, %v6299_v19  ;;  %v4355_v35 = vperm.slane %v4347_v27, %v6299_v19 }
 0x4a2   : > { %10265 = vst [vmem:[#allocation32_spill] sm:$0xff] %v8757_v26  ;;  %v4373_v63 = vsel %vm347_vm0, %v4372_v57, %v4365_v17  ;;  %v4505_v33 = vpack.i.b16 %v4504_v36, %v4503_v46  ;;  %v4551_v52 = vshrl.u32 %v8757_v26, 16  ;;  %v4356_v18 = vrot.slane %v8757_v26, 4 }
 0x4a3   : > { %v8769_v39 = vperm.slane %v4373_v63, %v6299_v19  ;;  %v4301_v16 = vsel %vm347_vm0, 0, %v4300_v41  ;;  %v4329_v30 = vsel %vm347_vm0, 0, %v4328_v31  ;;  %v4374_v40 = vrot.slane %v4365_v17, 4 }
 0x4a4   : > { %v4599_v43 = vunpack.c.l.b16 %v4505_v33  ;;  %v4357_v10 = vsel %vm347_vm0, 0, %v4356_v18  ;;  %v4508_v32 = vpack.i.b16 %v4329_v30, %v4301_v16  ;;  %v4509_v27 = vshrl.u32 %v4301_v16, 16 }
 0x4a5   : > { %10266 = vst [vmem:[#allocation33_spill] sm:$0xff] %v8769_v39  ;;  %v4552_v57 = vshrl.u32 %v8769_v39, 16  ;;  %v4384_v46 = vrot.slane %v8769_v39, 4  ;;  %v4510_v36 = vshrl.u32 %v4329_v30, 16  ;;  %v4557_v4 = vshrl.u32 %v4357_v10, 16 }
 0x4a6   : > { %v4604_v26 = vunpack.c.l.b16 %v4508_v32  ;;  %v4375_v63 = vsel %vm347_vm0, %v4371_v5, %v4374_v40  ;;  %v4514_v53 = vpack.i.b16 %v4327_v22, %v4299_v42  ;;  %v4515_v1 = vshrl.u32 %v4299_v42, 16 }
 0x4a7   : > { %v4553_v41 = vpack.i.b16 %v4552_v57, %v4551_v52  ;;  %v4385_v31 = vsel %vm347_vm0, 0, %v4384_v46  ;;  %v4511_v17 = vpack.i.b16 %v4510_v36, %v4509_v27  ;;  %v4383_v33 = vperm.slane %v4375_v63, %v6299_v19 }
 0x4a8   : > { %v4556_v18 = vpack.i.b16 %v4385_v31, %v4357_v10  ;;  %v4558_v58 = vshrl.u32 %v4385_v31, 16  ;;  %v4614_v16 = vunpack.c.l.b16 %v4514_v53  ;;  %v4516_v59 = vshrl.u32 %v4327_v22, 16 }
 0x4a9   : > { %v4600_v11 = vunpack.c.l.b16 %v4553_v41  ;;  %v4609_v2 = vunpack.c.l.b16 %v4511_v17  ;;  %v4562_v39 = vpack.i.b16 %v4383_v33, %v4355_v35  ;;  %v4563_v30 = vshrl.u32 %v4355_v35, 16 }
 0x4aa   : > { %v4605_v14 = vunpack.c.l.b16 %v4556_v18  ;;  %v4559_v32 = vpack.i.b16 %v4558_v58, %v4557_v4  ;;  %v4517_v21 = vpack.i.b16 %v4516_v59, %v4515_v1  ;;  %v4564_v5 = vshrl.u32 %v4383_v33, 16 }
 0x4ab   : > { %v4601_v40 = vpack.c.b16 %v4600_v11, %v4599_v43  ;;  %v4615_v24 = vunpack.c.l.b16 %v4562_v39  ;;  %v4302_v52 = vrot.slane %v4299_v42, 4  ;;  %v4330_v57 = vrot.slane %v4327_v22, 4 }
 0x4ac   : > { %v4606_v46 = vpack.c.b16 %v4605_v14, %v4604_v26  ;;  %v4610_v27 = vunpack.c.l.b16 %v4559_v32  ;;  %v4565_v36 = vpack.i.b16 %v4564_v5, %v4563_v30  ;;  %v4619_v63 = vunpack.c.l.b16 %v4517_v21 }
 0x4ad   : > { %4602 = vrot.lane.b32.xlu2 %v4601_v40, %s6206_s23  ;;  %v4616_v53 = vpack.c.b16 %v4615_v24, %v4614_v16  ;;  %v4303_v10 = vsel %vm347_vm0, 0, %v4302_v52  ;;  %v4331_v41 = vsel %vm347_vm0, 0, %v4330_v57  ;;  %v4358_v31 = vrot.slane %v4355_v35, 4 }
 0x4ae   : > { %4607 = vrot.lane.b32.xlu0 %v4606_v46, %s6207_s24  ;;  %v4611_v1 = vpack.c.b16 %v4610_v27, %v4609_v2  ;;  %v4620_v4 = vunpack.c.l.b16 %v4565_v36  ;;  %v4386_v11 = vrot.slane %v4383_v33, 4  ;;  %v4520_v59 = vpack.i.b16 %v4331_v41, %v4303_v10 }
 0x4af   : > { %v4359_v58 = vsel %vm347_vm0, 0, %v4358_v31  ;;  %v4521_v14 = vshrl.u32 %v4303_v10, 16  ;;  %v4522_v42 = vshrl.u32 %v4331_v41, 16  ;;  %v10267_v21 = vrot.slane %v8507_v49, 5 }
 0x4b0   : > { %4612 = vrot.lane.b32.xlu1 %v4611_v1, %s6210_s27  ;;  %v4621_v24 = vpack.c.b16 %v4620_v4, %v4619_v63  ;;  %v4387_v22 = vsel %vm347_vm0, 0, %v4386_v11  ;;  %v4624_v39 = vunpack.c.l.b16 %v4520_v59  ;;  %v4569_v35 = vshrl.u32 %v4359_v58, 16 }
 0x4b1   : > { %v4136_v26 = vrot.slane %v10267_v21, 4  ;;  %v4568_v43 = vpack.i.b16 %v4387_v22, %v4359_v58  ;;  %v4523_v17 = vpack.i.b16 %v4522_v42, %v4521_v14  ;;  %v4570_v2 = vshrl.u32 %v4387_v22, 16 }
 0x4b2   : > { %v10268_v33 = vrot.slane %v8230_v29, 5  ;;  %v10269_v16 = vrot.slane %v8516_v44, 5  ;;  %v10270_v30 = vrot.slane %v8521_v20, 5  ;;  %v10271_v5 = vrot.slane %v8546_v62, 5 }
 0x4b3   : > { %v10272_v52 = vrot.slane %v8553_v47, 5  ;;  %v4625_v46 = vunpack.c.l.b16 %v4568_v43  ;;  %v4571_v27 = vpack.i.b16 %v4570_v2, %v4569_v35  ;;  %v4629_v36 = vunpack.c.l.b16 %v4523_v17 }
 0x4b4   : > { %v8792_v18 = vsel %vm8511_vm13, %v4136_v26, %v10268_v33  ;;  %v4143_v49 = vrot.slane %v10269_v16, 4  ;;  %v4150_v32 = vrot.slane %v10270_v30, 4  ;;  %v4157_v40 = vrot.slane %v10271_v5, 4 }
 0x4b5   : > { %v4164_v57 = vrot.slane %v10272_v52, 4  ;;  %v10273_v29 = vrot.slane %v8558_v3, 5  ;;  %v10274_v10 = vrot.slane %v8234_v61, 5  ;;  %v10275_v20 = vrot.slane %v8238_v8, 5  ;;  %4617 = vrot.lane.b32.xlu2 %v4616_v53, %s6204_s21 }
 0x4b6   : > { %v10276_v47 = vrot.slane %v8245_v45, 5  ;;  %v10277_v3 = vrot.slane %v8249_v12, 5  ;;  %v4626_v31 = vpack.c.b16 %v4625_v46, %v4624_v39  ;;  %v4630_v8 = vunpack.c.l.b16 %v4571_v27  ;;  %4622 = vrot.lane.b32.xlu0 %v4621_v24, %s6205_s22 }
 0x4b7   : > { %v4171_v63 = vrot.slane %v10273_v29, 4  ;;  %v8808_v44 = vsel %vm8511_vm13, %v4143_v49, %v10274_v10  ;;  %v8814_v62 = vsel %vm8511_vm13, %v4150_v32, %v10275_v20  ;;  %v10278_v1 = vrot.slane %v8256_v60, 5 }
 0x4b8   : > { %v8820_v41 = vsel %vm8511_vm13, %v4157_v40, %v10276_v47  ;;  %v8826_v61 = vsel %vm8511_vm13, %v4164_v57, %v10277_v3  ;;  %v10279_v45 = vrot.slane %v8571_v56, 5  ;;  %v10280_v12 = vrot.slane %v8590_v6, 5  ;;  %4627 = vrot.lane.b32.xlu1 %v4626_v31, %s6208_s25  ;;  %v10302_v3 = vld [vmem:[#allocation5_spill] sm:$0xff] }
 0x4b9   : > { %v8833_v4 = vsel %vm8511_vm13, %v4171_v63, %v10278_v1  ;;  %v10281_v58 = vrot.slane %v8601_v54, 5  ;;  %v10282_v53 = vrot.slane %v8606_v25, 5  ;;  %v10283_v60 = vrot.slane %v8621_v23, 5 }
 0x4ba   : > { %v4178_v11 = vrot.slane %v10279_v45, 4  ;;  %v4185_v59 = vrot.slane %v10280_v12, 4  ;;  %v4631_v26 = vpack.c.b16 %v4630_v8, %v4629_v36  ;;  %v10284_v22 = vrot.slane %v8260_v9, 5  ;;  %v10300_v36 = vld [vmem:[#allocation7_spill] sm:$0xff] }
 0x4bb   : > { %v4192_v14 = vrot.slane %v10281_v58, 4  ;;  %v4199_v42 = vrot.slane %v10282_v53, 4  ;;  %v4206_v21 = vrot.slane %v10283_v60, 4  ;;  %v10285_v24 = vrot.slane %v8638_v15, 5 }
 0x4bc   : > { %v8850_v56 = vsel %vm8511_vm13, %v4178_v11, %v10284_v22  ;;  %v10286_v39 = vrot.slane %v8649_v51, 5  ;;  %v10287_v25 = vrot.slane %v8264_v13, 5  ;;  %v10288_v9 = vrot.slane %v8269_v50, 5 }
 0x4bd   : > { %v4213_v6 = vrot.slane %v10285_v24, 4  ;;  %v10289_v15 = vrot.slane %v8276_v28, 5  ;;  %v10290_v43 = vrot.slane %v8280_v34, 5  ;;  %v10291_v17 = vrot.slane %v8288_v0, 5  ;;  %4632 = vrot.lane.b32.xlu2 %v4631_v26, %s6209_s26 }
 0x4be   : > { %v4220_v54 = vrot.slane %v10286_v39, 4  ;;  %v8861_v23 = vsel %vm8511_vm13, %v4185_v59, %v10287_v25  ;;  %v8867_v35 = vsel %vm8511_vm13, %v4192_v14, %v10288_v9  ;;  %v10292_v2 = vrot.slane %v8292_v7, 5  ;;  %v10296_v7 = vld [vmem:[#allocation20_spill] sm:$0xff] }
 0x4bf   : > { %v8873_v51 = vsel %vm8511_vm13, %v4199_v42, %v10289_v15  ;;  %v8879_v13 = vsel %vm8511_vm13, %v4206_v21, %v10290_v43  ;;  %v8885_v50 = vsel %vm8511_vm13, %v4213_v6, %v10291_v17  ;;  %v10293_v33 = vrot.slane %v8654_v55, 5  ;;  %v10298_v55 = vld [vmem:[#allocation19_spill] sm:$0xff] }
 0x4c0   : > { %v8891_v28 = vsel %vm8511_vm13, %v4220_v54, %v10292_v2  ;;  %v10294_v34 = vrot.slane %v8665_v48, 5  ;;  %v10295_v30 = vrot.slane %v8682_v37, 5  ;;  %v4388_v0 = vrot.slane %v8826_v61, 4 }
 0x4c1   : > { %v4227_v16 = vrot.slane %v10293_v33, 4  ;;  %v4394_v5 = vrot.slane %v8850_v56, 4  ;;  %v4416_v40 = vrot.slane %v8833_v4, 4  ;;  %v10297_v52 = vrot.slane %v10296_v7, 5 }
 0x4c2   : > { %v4234_v49 = vrot.slane %v10294_v34, 4  ;;  %v4241_v32 = vrot.slane %v10295_v30, 4  ;;  %v10299_v46 = vrot.slane %v10298_v55, 5  ;;  %v4422_v37 = vrot.slane %v8861_v23, 4 }
 0x4c3   : > { %v8906_v57 = vsel %vm8511_vm13, %v4227_v16, %v10297_v52  ;;  %v4444_v27 = vrot.slane %v8891_v28, 4  ;;  %v10301_v29 = vrot.slane %v10300_v36, 5  ;;  %v4389_v10 = vsel %vm347_vm0, %v4388_v0, %v8792_v18 }
 0x4c4   : > { %v8912_v48 = vsel %vm8511_vm13, %v4234_v49, %v10299_v46  ;;  %v4395_v20 = vsel %vm347_vm0, %v4394_v5, %v8814_v62  ;;  %v4417_v47 = vsel %vm347_vm0, %v4416_v40, %v8808_v44  ;;  %v4393_v31 = vperm.slane %v4389_v10, %v10302_v3 }
 0x4c5   : > { %v8920_v63 = vsel %vm8511_vm13, %v4241_v32, %v10301_v29  ;;  %v4399_v8 = vperm.slane %v4395_v20, %v10302_v3  ;;  %v4421_v1 = vperm.slane %v4417_v47, %v10302_v3  ;;  %v4423_v38 = vsel %vm347_vm0, %v4422_v37, %v8820_v41 }
 0x4c6   : > { %v4427_v45 = vperm.slane %v4423_v38, %v10302_v3  ;;  %v4445_v11 = vsel %vm347_vm0, %v4444_v27, %v8867_v35  ;;  %v4450_v12 = vrot.slane %v8912_v48, 4  ;;  %v4472_v59 = vrot.slane %v8906_v57, 4 }
 0x4c7   : > { %v4400_v58 = vrot.slane %v4399_v8, 4  ;;  %v4449_v14 = vperm.slane %v4445_v11, %v10302_v3  ;;  %v4478_v53 = vrot.slane %v8920_v63, 4  ;;  %v4402_v42 = vrot.slane %v4393_v31, 4 }
 0x4c8   : > { %v4428_v60 = vrot.slane %v4427_v45, 4  ;;  %v4451_v21 = vsel %vm347_vm0, %v4450_v12, %v8879_v13  ;;  %v4473_v26 = vsel %vm347_vm0, %v4472_v59, %v8873_v51  ;;  %v4430_v22 = vrot.slane %v4421_v1, 4 }
 0x4c9   : > { %v4401_v24 = vsel %vm347_vm0, %v4400_v58, %v4393_v31  ;;  %v4455_v6 = vperm.slane %v4451_v21, %v10302_v3  ;;  %v4477_v39 = vperm.slane %v4473_v26, %v10302_v3  ;;  %v4479_v54 = vsel %vm347_vm0, %v4478_v53, %v8885_v50 }
 0x4ca   : > { %v8951_v25 = vperm.slane %v4401_v24, %v6299_v19  ;;  %v4429_v9 = vsel %vm347_vm0, %v4428_v60, %v4421_v1  ;;  %v4483_v15 = vperm.slane %v4479_v54, %v10302_v3  ;;  %v4403_v43 = vsel %vm347_vm0, %v4399_v8, %v4402_v42 }
 0x4cb   : > { %v8957_v17 = vperm.slane %v4429_v9, %v6299_v19  ;;  %v4456_v2 = vrot.slane %v4455_v6, 4  ;;  %v4411_v33 = vperm.slane %v4403_v43, %v6299_v19  ;;  %v4431_v16 = vsel %vm347_vm0, %v4427_v45, %v4430_v22 }
 0x4cc   : > { %v4484_v34 = vrot.slane %v4483_v15, 4  ;;  %v4527_v49 = vshrl.u32 %v8951_v25, 16  ;;  %v4412_v30 = vrot.slane %v8951_v25, 4  ;;  %v4439_v32 = vperm.slane %v4431_v16, %v6299_v19 }
 0x4cd   : > { %v4457_v0 = vsel %vm347_vm0, %v4456_v2, %v4449_v14  ;;  %v4528_v5 = vshrl.u32 %v8957_v17, 16  ;;  %v4440_v40 = vrot.slane %v8957_v17, 4  ;;  %v4458_v7 = vrot.slane %v4449_v14, 4 }
 0x4ce   : > { %v8968_v52 = vperm.slane %v4457_v0, %v6299_v19  ;;  %v4485_v55 = vsel %vm347_vm0, %v4484_v34, %v4477_v39  ;;  %v4413_v46 = vsel %vm347_vm0, 0, %v4412_v30  ;;  %v4486_v37 = vrot.slane %v4477_v39, 4 }
 0x4cf   : > { %v8973_v27 = vperm.slane %v4485_v55, %v6299_v19  ;;  %v4529_v36 = vpack.i.b16 %v4528_v5, %v4527_v49  ;;  %v4441_v29 = vsel %vm347_vm0, 0, %v4440_v40  ;;  %v4533_v10 = vshrl.u32 %v4413_v46, 16 }
 0x4d0   : > { %v4575_v20 = vshrl.u32 %v8968_v52, 16  ;;  %v4468_v47 = vrot.slane %v8968_v52, 4  ;;  %v4532_v31 = vpack.i.b16 %v4441_v29, %v4413_v46  ;;  %v4534_v8 = vshrl.u32 %v4441_v29, 16 }
 0x4d1   : > { %v4576_v1 = vshrl.u32 %v8973_v27, 16  ;;  %v4637_v38 = vunpack.c.l.b16 %v4529_v36  ;;  %v4496_v45 = vrot.slane %v8973_v27, 4  ;;  %v4459_v11 = vsel %vm347_vm0, %v4455_v6, %v4458_v7 }
 0x4d2   : > { %v4469_v12 = vsel %vm347_vm0, 0, %v4468_v47  ;;  %v4642_v59 = vunpack.c.l.b16 %v4532_v31  ;;  %v4535_v58 = vpack.i.b16 %v4534_v8, %v4533_v10  ;;  %v4467_v14 = vperm.slane %v4459_v11, %v6299_v19 }
 0x4d3   : > { %v4577_v53 = vpack.i.b16 %v4576_v1, %v4575_v20  ;;  %v4497_v42 = vsel %vm347_vm0, 0, %v4496_v45  ;;  %v4581_v60 = vshrl.u32 %v4469_v12, 16  ;;  %v4487_v21 = vsel %vm347_vm0, %v4483_v15, %v4486_v37 }
 0x4d4   : > { %v4580_v26 = vpack.i.b16 %v4497_v42, %v4469_v12  ;;  %v4582_v22 = vshrl.u32 %v4497_v42, 16  ;;  %v4647_v24 = vunpack.c.l.b16 %v4535_v58  ;;  %v4495_v39 = vperm.slane %v4487_v21, %v6299_v19 }
 0x4d5   : > { %v4638_v54 = vunpack.c.l.b16 %v4577_v53  ;;  %v4538_v9 = vpack.i.b16 %v4439_v32, %v4411_v33  ;;  %v4539_v6 = vshrl.u32 %v4411_v33, 16  ;;  %v4540_v43 = vshrl.u32 %v4439_v32, 16 }
 0x4d6   : > { %v4643_v2 = vunpack.c.l.b16 %v4580_v26  ;;  %v4583_v16 = vpack.i.b16 %v4582_v22, %v4581_v60  ;;  %v4586_v34 = vpack.i.b16 %v4495_v39, %v4467_v14  ;;  %v4587_v49 = vshrl.u32 %v4467_v14, 16 }
 0x4d7   : > { %v4639_v30 = vpack.c.b16 %v4638_v54, %v4637_v38  ;;  %v4541_v0 = vpack.i.b16 %v4540_v43, %v4539_v6  ;;  %v4588_v5 = vshrl.u32 %v4495_v39, 16  ;;  %v4652_v55 = vunpack.c.l.b16 %v4538_v9  ;;  %v10303_v9 = vld [vmem:[#allocation21_spill] sm:$0xff]  ;;  %v10304_v43 = vld [vmem:[#allocation14_spill] sm:$0xff] }
 0x4d8   : > { %v4644_v40 = vpack.c.b16 %v4643_v2, %v4642_v59  ;;  %v4648_v7 = vunpack.c.l.b16 %v4583_v16  ;;  %v4414_v15 = vrot.slane %v4411_v33, 4  ;;  %v4653_v46 = vunpack.c.l.b16 %v4586_v34  ;;  %v10305_v2 = vld [vmem:[#allocation22_spill] sm:$0xff]  ;;  %v10307_v34 = vld [vmem:[#allocation16_spill] sm:$0xff] }
 0x4d9   : > { %4640 = vrot.lane.b32.xlu0 %v4639_v30, %s6206_s23  ;;  %v4589_v37 = vpack.i.b16 %v4588_v5, %v4587_v49  ;;  %v4442_v36 = vrot.slane %v4439_v32, 4  ;;  %v4470_v29 = vrot.slane %v4467_v14, 4  ;;  %v4657_v20 = vunpack.c.l.b16 %v4541_v0  ;;  %v10306_v16 = vld [vmem:[#allocation26_spill] sm:$0xff] }
 0x4da   : > { %4645 = vrot.lane.b32.xlu1 %v4644_v40, %s6207_s24  ;;  %v4649_v10 = vpack.c.b16 %v4648_v7, %v4647_v24  ;;  %v4415_v47 = vsel %vm347_vm0, 0, %v4414_v15  ;;  %v4498_v31 = vrot.slane %v4495_v39, 4  ;;  %v4654_v59 = vpack.c.b16 %v4653_v46, %v4652_v55  ;;  %v10308_v30 = vld [vmem:[#allocation18_spill] sm:$0xff]  ;;  %v10310_v55 = vld [vmem:[#allocation9_spill] sm:$0xff] }
 0x4db   : > { %v4658_v8 = vunpack.c.l.b16 %v4589_v37  ;;  %v4443_v1 = vsel %vm347_vm0, 0, %v4442_v36  ;;  %v4471_v38 = vsel %vm347_vm0, 0, %v4470_v29  ;;  %v4545_v45 = vshrl.u32 %v4415_v47, 16  ;;  %v3960_v6 = vpop.permute.xlu2 %3959  ;;  %v10309_v0 = vld [vmem:[#allocation2_spill] sm:$0xff]  ;;  %v10311_v29 = vld [vmem:[#allocation28_spill] sm:$0xff] }
 0x4dc   : > { %4650 = vrot.lane.b32.xlu2 %v4649_v10, %s6210_s27  ;;  %v4499_v33 = vsel %vm347_vm0, 0, %v4498_v31  ;;  %v4544_v11 = vpack.i.b16 %v4443_v1, %v4415_v47  ;;  %v4546_v32 = vshrl.u32 %v4443_v1, 16  ;;  %v4593_v12 = vshrl.u32 %v4471_v38, 16 }
 0x4dd   : > { %v4592_v58 = vpack.i.b16 %v4499_v33, %v4471_v38  ;;  %v4594_v14 = vshrl.u32 %v4499_v33, 16  ;;  %v4659_v53 = vpack.c.b16 %v4658_v8, %v4657_v20  ;;  %v3897_v49 = vpack.i.b16 %v10307_v34, %v10306_v16  ;;  %v10312_v8 = vld [vmem:[#allocation29_spill] sm:$0xff]  ;;  %v10313_v33 = vld [vmem:[#allocation3_spill] sm:$0xff] }
 0x4de   : > { %v4662_v42 = vunpack.c.l.b16 %v4544_v11  ;;  %v4547_v60 = vpack.i.b16 %v4546_v32, %v4545_v45  ;;  %v3849_v5 = vpack.i.b16 %v10309_v0, %v10308_v30  ;;  %v10314_v11 = vld [vmem:[#allocation15_spill] sm:$0xff] }
 0x4df   : > { %v4663_v21 = vunpack.c.l.b16 %v4592_v58  ;;  %v4595_v26 = vpack.i.b16 %v4594_v14, %v4593_v12  ;;  %v3944_v40 = vunpack.c.l.b16 %v3897_v49  ;;  %v3921_v32 = vpack.i.b16 %v10314_v11, %v10313_v33  ;;  %v186_v12 = vld [vmem:[%s9950_s2] sm:$0xff] }
 0x4e0   : > { %v4667_v24 = vunpack.c.l.b16 %v4547_v60  ;;  %v3943_v15 = vunpack.c.l.b16 %v3849_v5  ;;  %v9036_v58 = vld [vmem:[%s6248_s17] ss:$0 sm:$0xff]  ;;  %v10316_v60 = vld [vmem:[#allocation25_spill] sm:$0xff] }
 0x4e1   : > { %4655 = vrot.lane.b32.xlu0 %v4654_v59, %s6204_s21  ;;  %v4664_v22 = vpack.c.b16 %v4663_v21, %v4662_v42  ;;  %v4668_v39 = vunpack.c.l.b16 %v4595_v26  ;;  %v187_v59 = vld [vmem:[%s9950_s2 + $0x8] sm:$0xff]  ;;  %v226_v14 = vmul.f32 %v9036_v58, %v186_v12  ;;  %v10315_v42 = vld [vmem:[#allocation24_spill] sm:$0xff] }
 0x4e2   : > { %4660 = vrot.lane.b32.xlu1 %v4659_v53, %s6205_s22  ;;  %v3945_v36 = vpack.c.b16 %v3944_v40, %v3943_v15  ;;  %v227_v53 = vmul.f32 %v9036_v58, %v187_v59  ;;  %v3873_v21 = vpack.i.b16 %v10316_v60, %v10315_v42  ;;  %v10323_v60 = vld [vmem:[#allocation32_spill] sm:$0xff] }
 0x4e3   : > { %v4669_v54 = vpack.c.b16 %v4668_v39, %v4667_v24  ;;  %v3975_v37 = vpop.permute.xlu2 %3974 }
 0x4e4   : > { %4665 = vrot.lane.b32.xlu2 %v4664_v22, %s6208_s25  ;;  %v262_v22 = vpack.c.bf16 %v226_v14, %v226_v14  ;;  %v263_v24 = vpack.c.bf16 %v227_v53, %v227_v53  ;;  %v3981_v0 = vunpack.c.l.b16 %v3873_v21  ;;  %v10321_v14 = vld [vmem:[#allocation30_spill] sm:$0xff]  ;;  %v10322_v53 = vld [vmem:[#allocation31_spill] sm:$0xff]  ;;  %v10324_v21 = vld [vmem:[#allocation33_spill] sm:$0xff] }
 0x4e5   : > { %v4502_v42 = vpack.i.b16 %v10322_v53, %v10321_v14 }
 0x4e6   : > { %v1396_v34 = vunpack.c.l.b16 %v262_v22  ;;  %v1397_v49 = vunpack.c.l.b16 %v263_v24  ;;  %v10325_v22 = vld [vmem:[#allocation8_spill] sm:$0xff] }
 0x4e7   : > { %v4596_v24 = vunpack.c.l.b16 %v4502_v42 }
 0x4e8   : > { %v1400_v40 = vpack.c.b16 %v1397_v49, %v1396_v34  ;;  %v194_v49 = vld [vmem:[%s9950_s2 + $0x40] sm:$0xff] }
 0x4e9   : > { %4670 = vrot.lane.b32.xlu0 %v4669_v54, %s6209_s26  ;;  %v3982_v54 = vunpack.c.l.b16 %v3921_v32  ;;  %v10320_v32 = vld [vmem:[#allocation13_spill] sm:$0xff] }
 0x4ea   : > { %4766 = vrot.lane.b32.xlu1 %v10303_v9, %s6211_s28  ;;  %6022 = vmatmul.msk.bf16.vlgmr.msrb.gmra.mxu2 %vm743_vm1, %v1400_v40 }
 0x4eb   : > { %v3993_v38 = vpop.permute.xlu2 %3992  ;;  %v3983_v15 = vpack.c.b16 %v3982_v54, %v3981_v0  ;;  %6024 = vmatmul.msk.bf16.vlgmr.msrb.gmra.mxu3 %vm743_vm1, %v1400_v40  ;;  %v10326_v54 = vld [vmem:[#allocation4_spill] sm:$0xff] }
 0x4ec   : > { %4768 = vrot.lane.b32.xlu2 %v8792_v18, %s6211_s28 }
 0x4ee   : > { %v3950_v7 = vpop.permute.xlu0 %3949 }
 0x4ef   : > { %v3955_v46 = vpop.permute.xlu1 %3954  ;;  %v4021_v10 = vsel %vm743_vm1, %v3945_v36, %v3950_v7  ;;  %v10318_v7 = vld [vmem:[#allocation12_spill] sm:$0xff] }
 0x4f0   : > { %v4023_v20 = vsel %vm747_vm2, %v4021_v10, %v3955_v46 }
 0x4f1   : > { %4770 = vrot.lane.b32.xlu0 %v10304_v43, %s6211_s28  ;;  %v4025_v1 = vsel %vm750_vm3, %v4023_v20, %v3960_v6  ;;  %v10317_v6 = vld [vmem:[#allocation10_spill] sm:$0xff] }
 0x4f2   : > { %4790 = vrot.lane.b32.xlu1 %v10305_v2, %s6211_s28 }
 0x4f3   : > { %v4008_v46 = vpop.permute.xlu2 %4007 }
 0x4f4   : > { %4792 = vrot.lane.b32.xlu2 %v8850_v56, %s6211_s28 }
 0x4f6   : > { %v3965_v47 = vpop.permute.xlu0 %3964 }
 0x4f7   : > { %v3970_v31 = vpop.permute.xlu1 %3969  ;;  %v4027_v45 = vsel %vm753_vm4, %v4025_v1, %v3965_v47  ;;  %v10319_v47 = vld [vmem:[#allocation17_spill] sm:$0xff] }
 0x4f8   : > { %v4029_v26 = vsel %vm756_vm5, %v4027_v45, %v3970_v31 }
 0x4f9   : > { %4794 = vrot.lane.b32.xlu0 %v10310_v55, %s6211_s28  ;;  %v4031_v30 = vsel %vm759_vm6, %v4029_v26, %v3975_v37  ;;  %v4550_v26 = vpack.i.b16 %v10324_v21, %v10323_v60  ;;  %v10329_v60 = vld [vmem:[#allocation11_spill] sm:$0xff] }
 0x4fa   : > { %4796 = vrot.lane.b32.xlu1 %v8861_v23, %s6211_s28 }
 0x4fc   : > { %4822 = vrot.lane.b32.xlu2 %v10311_v29, %s6211_s28 }
 0x4fe   : > { %v3980_v39 = vpop.permute.xlu0 %3979 }
 0x4ff   : > { %v3988_v16 = vpop.permute.xlu1 %3987  ;;  %v4033_v5 = vsel %vm762_vm7, %v4031_v30, %v3980_v39  ;;  %v4597_v39 = vunpack.c.l.b16 %v4550_v26  ;;  %v195_v30 = vld [vmem:[%s9950_s2 + $0x48] sm:$0xff] }
 0x500   : > { %v4037_v36 = vsel %vm743_vm1, %v3983_v15, %v3988_v16  ;;  %4074 = vmatpush.bf16.msrb.mxu2 %v4033_v5  ;;  %v234_v5 = vmul.f32 %v9036_v58, %v194_v49  ;;  %v235_v40 = vmul.f32 %v9036_v58, %v195_v30 }
 0x501   : > { %4824 = vrot.lane.b32.xlu0 %v8912_v48, %s6211_s28  ;;  %v4039_v37 = vsel %vm747_vm2, %v4037_v36, %v3993_v38  ;;  %v4598_v34 = vpack.c.b16 %v4597_v39, %v4596_v24  ;;  %v10330_v24 = vld [vmem:[#allocation6_spill] sm:$0xff] }
 0x502   : > { %4826 = vrot.lane.b32.xlu1 %v10312_v8, %s6211_s28  ;;  %v270_v36 = vpack.c.bf16 %v234_v5, %v234_v5 }
 0x504   : > { %4828 = vrot.lane.b32.xlu2 %v8920_v63, %s6211_s28 }
 0x506   : > { %v3998_v10 = vpop.permute.xlu0 %3997 }
 0x507   : > { %v4003_v20 = vpop.permute.xlu1 %4002  ;;  %v4041_v31 = vsel %vm750_vm3, %v4039_v37, %v3998_v10  ;;  %v4603_v45 = vpop.permute.xlu2 %4602  ;;  %v271_v10 = vpack.c.bf16 %v235_v40, %v235_v40 }
 0x508   : > { %v4043_v1 = vsel %vm753_vm4, %v4041_v31, %v4003_v20  ;;  %v4674_v0 = vsel %vm743_vm1, %v4598_v34, %v4603_v45  ;;  %v1974_v31 = vunpack.c.l.b16 %v270_v36  ;;  %v10328_v45 = vld [vmem:[#allocation27_spill] sm:$0xff]  ;;  %v4574_v34 = vpack.i.b16 %v8973_v27, %v8968_v52 }
 0x509   : > { %4774 = vrot.lane.b32.xlu0 %v10317_v6, %s6211_s28  ;;  %v4045_v33 = vsel %vm756_vm5, %v4043_v1, %v4008_v46  ;;  %v10327_v46 = vld [vmem:[#allocation23_spill] sm:$0xff]  ;;  %v1975_v1 = vunpack.c.l.b16 %v271_v10 }
 0x50a   : > { %4776 = vrot.lane.b32.xlu1 %v8814_v62, %s6211_s28 }
 0x50c   : > { %4778 = vrot.lane.b32.xlu2 %v10318_v7, %s6211_s28 }
 0x50f   : > { %v4018_v12 = vpop.permute.xlu1 %4017  ;;  %v4618_v16 = vpop.permute.xlu2 %4617 }
 0x511   : > { %4780 = vrot.lane.b32.xlu0 %v8820_v41, %s6211_s28  ;;  %v4013_v11 = vpop.permute.xlu0 %4012 }
 0x512   : > { %4782 = vrot.lane.b32.xlu1 %v10319_v47, %s6211_s28  ;;  %v4047_v38 = vsel %vm759_vm6, %v4045_v33, %v4013_v11 }
 0x513   : > { %v4049_v59 = vsel %vm762_vm7, %v4047_v38, %v4018_v12  ;;  %v1978_v38 = vpack.c.b16 %v1975_v1, %v1974_v31 }
 0x514   : > { %4784 = vrot.lane.b32.xlu2 %v8826_v61, %s6211_s28  ;;  %4093 = vmatpush.bf16.msrb.mxu3 %v4049_v59 }
 0x515   : > { %6026 = vmatmul.msk.bf16.vlgmr.msrb.gmra.mxu0 %vm743_vm1, %v1978_v38  ;;  %6028 = vmatmul.msk.bf16.vlgmr.msrb.gmra.mxu1 %vm743_vm1, %v1978_v38 }
 0x517   : > { %v4633_v33 = vpop.permute.xlu2 %4632 }
 0x519   : > { %4786 = vrot.lane.b32.xlu0 %v10320_v32, %s6211_s28 }
 0x51a   : > { %4788 = vrot.lane.b32.xlu1 %v8833_v4, %s6211_s28 }
 0x51c   : > { %4806 = vrot.lane.b32.xlu2 %v10325_v22, %s6211_s28 }
 0x520   : > { %v4608_v15 = vpop.permute.xlu0 %4607 }
 0x521   : > { %4808 = vrot.lane.b32.xlu0 %v8879_v13, %s6211_s28  ;;  %v4676_v37 = vsel %vm747_vm2, %v4674_v0, %v4608_v15  ;;  %v4635_v0 = vunpack.c.l.b16 %v4574_v34 }
 0x522   : > { %4810 = vrot.lane.b32.xlu1 %v10326_v54, %s6211_s28  ;;  %v4613_v20 = vpop.permute.xlu1 %4612 }
 0x523   : > { %v4678_v11 = vsel %vm750_vm3, %v4676_v37, %v4613_v20 }
 0x524   : > { %4812 = vrot.lane.b32.xlu2 %v8885_v50, %s6211_s28  ;;  %v4680_v12 = vsel %vm753_vm4, %v4678_v11, %v4618_v16  ;;  %v4526_v16 = vpack.i.b16 %v8957_v17, %v8951_v25 }
 0x526   : > { %v4634_v30 = vunpack.c.l.b16 %v4526_v16 }
 0x528   : > { %v4623_v59 = vpop.permute.xlu0 %4622 }
 0x529   : > { %4814 = vrot.lane.b32.xlu0 %v10327_v46, %s6211_s28  ;;  %v4682_v14 = vsel %vm756_vm5, %v4680_v12, %v4623_v59 }
 0x52a   : > { %4816 = vrot.lane.b32.xlu1 %v8891_v28, %s6211_s28  ;;  %v4628_v53 = vpop.permute.xlu1 %4627 }
 0x52b   : > { %v4684_v42 = vsel %vm759_vm6, %v4682_v14, %v4628_v53 }
 0x52c   : > { %4818 = vrot.lane.b32.xlu2 %v10328_v45, %s6211_s28  ;;  %v4686_v21 = vsel %vm762_vm7, %v4684_v42, %v4633_v33 }
 0x52d   : > { %4727 = vmatpush.bf16.msrb.mxu0 %v4686_v21 }
 0x531   : > { %4820 = vrot.lane.b32.xlu0 %v8906_v57, %s6211_s28 }
 0x532   : > { %4772 = vrot.lane.b32.xlu1 %v8808_v44, %s6211_s28 }
 0x534   : > { %4798 = vrot.lane.b32.xlu2 %v10329_v60, %s6211_s28 }
 0x536   : > { %v4651_v26 = vpop.permute.xlu2 %4650 }
 0x539   : > { %4800 = vrot.lane.b32.xlu0 %v8867_v35, %s6211_s28 }
 0x53a   : > { %4802 = vrot.lane.b32.xlu1 %v10330_v24, %s6211_s28 }
 0x53c   : > { %4804 = vrot.lane.b32.xlu2 %v8873_v51, %s6211_s28 }
 0x53e   : > { %v4666_v39 = vpop.permute.xlu2 %4665 }
 0x541   : > { %5376 = vrot.lane.b32.xlu0 %v10305_v2, %s6212_s29  ;;  %v4636_v2 = vpack.c.b16 %v4635_v0, %v4634_v30 }
 0x542   : > { %5378 = vrot.lane.b32.xlu1 %v8850_v56, %s6212_s29 }
 0x544   : > { %5380 = vrot.lane.b32.xlu2 %v10310_v55, %s6212_s29 }
 0x546   : > { %v4769_v49 = vpop.permute.xlu2 %4768 }
 0x549   : > { %5382 = vrot.lane.b32.xlu0 %v8861_v23, %s6212_s29 }
 0x54a   : > { %5408 = vrot.lane.b32.xlu1 %v10311_v29, %s6212_s29 }
 0x54b   : > { %v4641_v56 = vpop.permute.xlu0 %4640 }
 0x54c   : > { %v4646_v5 = vpop.permute.xlu1 %4645  ;;  %5410 = vrot.lane.b32.xlu2 %v8912_v48, %s6212_s29  ;;  %v4690_v25 = vsel %vm743_vm1, %v4636_v2, %v4641_v56 }
 0x54d   : > { %v4692_v52 = vsel %vm747_vm2, %v4690_v25, %v4646_v5 }
 0x54e   : > { %v4793_v17 = vpop.permute.xlu2 %4792  ;;  %v4694_v27 = vsel %vm750_vm3, %v4692_v52, %v4651_v26 }
 0x551   : > { %5412 = vrot.lane.b32.xlu0 %v10312_v8, %s6212_s29 }
 0x552   : > { %5414 = vrot.lane.b32.xlu1 %v8920_v63, %s6212_s29 }
 0x553   : > { %v4656_v23 = vpop.permute.xlu0 %4655 }
 0x554   : > { %v4661_v55 = vpop.permute.xlu1 %4660  ;;  %5360 = vrot.lane.b32.xlu2 %v10317_v6, %s6212_s29  ;;  %v4696_v48 = vsel %vm753_vm4, %v4694_v27, %v4656_v23 }
 0x555   : > { %v4698_v40 = vsel %vm756_vm5, %v4696_v48, %v4661_v55 }
 0x556   : > { %v9143_v29 = vpop.permute.xlu2 %4822  ;;  %v4700_v63 = vsel %vm759_vm6, %v4698_v40, %v4666_v39 }
 0x557   : > { %v4924_v5 = vrot.slane %v9143_v29, 4 }
 0x559   : > { %5362 = vrot.lane.b32.xlu0 %v8814_v62, %s6212_s29 }
 0x55a   : > { %5364 = vrot.lane.b32.xlu1 %v10318_v7, %s6212_s29 }
 0x55b   : > { %v4671_v8 = vpop.permute.xlu0 %4670 }
 0x55c   : > { %v4702_v15 = vsel %vm762_vm7, %v4700_v63, %v4671_v8  ;;  %v4767_v36 = vpop.permute.xlu1 %4766  ;;  %5366 = vrot.lane.b32.xlu2 %v8820_v41, %s6212_s29 }
 0x55d   : > { %4746 = vmatpush.bf16.msrb.mxu1 %v4702_v15 }
 0x55e   : > { %v9154_v6 = vpop.permute.xlu2 %4828 }
 0x55f   : > { %v5064_v52 = vrot.slane %v9154_v6, 4 }
 0x561   : > { %5368 = vrot.lane.b32.xlu0 %v10319_v47, %s6212_s29 }
 0x562   : > { %5370 = vrot.lane.b32.xlu1 %v8826_v61, %s6212_s29 }
 0x563   : > { %v9160_v62 = vpop.permute.xlu0 %4770 }
 0x564   : > { %v4791_v7 = vpop.permute.xlu1 %4790  ;;  %5372 = vrot.lane.b32.xlu2 %v10320_v32, %s6212_s29 }
 0x565   : > { %v4868_v38 = vrot.slane %v4791_v7, 4 }
 0x566   : > { %v4779_v10 = vpop.permute.xlu2 %4778 }
 0x569   : > { %5374 = vrot.lane.b32.xlu0 %v8833_v4, %s6212_s29 }
 0x56a   : > { %5392 = vrot.lane.b32.xlu1 %v10325_v22, %s6212_s29 }
 0x56b   : > { %v4795_v41 = vpop.permute.xlu0 %4794 }
 0x56c   : > { %v9168_v37 = vpop.permute.xlu1 %4796  ;;  %5394 = vrot.lane.b32.xlu2 %v8879_v13, %s6212_s29  ;;  %v4896_v0 = vrot.slane %v4795_v41, 4 }
 0x56d   : > { %v5008_v23 = vrot.slane %v9168_v37, 4 }
 0x56e   : > { %v4785_v61 = vpop.permute.xlu2 %4784 }
 0x56f   : > { %v4974_v47 = vrot.slane %v4785_v61, 4 }
 0x571   : > { %5396 = vrot.lane.b32.xlu0 %v10326_v54, %s6212_s29  ;;  %v4975_v20 = vsel %vm347_vm0, %v4974_v47, %v4769_v49 }
 0x572   : > { %5398 = vrot.lane.b32.xlu1 %v8885_v50, %s6212_s29  ;;  %v4979_v13 = vperm.slane %v4975_v20, %v10302_v3  ;;  %v4980_v50 = vrot.slane %v4793_v17, 4 }
 0x573   : > { %v9176_v32 = vpop.permute.xlu0 %4824 }
 0x574   : > { %v9178_v4 = vpop.permute.xlu1 %4826  ;;  %5400 = vrot.lane.b32.xlu2 %v10327_v46, %s6212_s29  ;;  %v4988_v46 = vrot.slane %v4979_v13, 4  ;;  %v5036_v37 = vrot.slane %v9176_v32, 4 }
 0x575   : > { %v4952_v20 = vrot.slane %v9178_v4, 4 }
 0x576   : > { %v4807_v22 = vpop.permute.xlu2 %4806 }
 0x579   : > { %5402 = vrot.lane.b32.xlu0 %v8891_v28, %s6212_s29 }
 0x57a   : > { %5404 = vrot.lane.b32.xlu1 %v10328_v45, %s6212_s29 }
 0x57b   : > { %v4775_v54 = vpop.permute.xlu0 %4774 }
 0x57c   : > { %v4777_v31 = vpop.permute.xlu1 %4776  ;;  %5406 = vrot.lane.b32.xlu2 %v8906_v57, %s6212_s29  ;;  %v4869_v59 = vsel %vm347_vm0, %v4868_v38, %v4775_v54 }
 0x57d   : > { %v4981_v1 = vsel %vm347_vm0, %v4980_v50, %v4777_v31  ;;  %v4873_v14 = vperm.slane %v4869_v59, %v10302_v3 }
 0x57e   : > { %v4985_v33 = vperm.slane %v4981_v1, %v10302_v3  ;;  %v4813_v11 = vpop.permute.xlu2 %4812 }
 0x57f   : > { %v4874_v39 = vrot.slane %v4873_v14, 4  ;;  %v5065_v48 = vsel %vm347_vm0, %v5064_v52, %v4813_v11 }
 0x580   : > { %v4986_v12 = vrot.slane %v4985_v33, 4  ;;  %v9193_v28 = vsel %vm347_vm0, %v4985_v33, %v4988_v46  ;;  %v9241_v7 = vperm.slane %v5065_v48, %v10302_v3 }
 0x581   : > { %5352 = vrot.lane.b32.xlu0 %v10303_v9, %s6212_s29 }
 0x582   : > { %v9199_v45 = vsel %vm347_vm0, %v4986_v12, %v4979_v13  ;;  %5354 = vrot.lane.b32.xlu1 %v8792_v18, %s6212_s29  ;;  %v5070_v54 = vrot.slane %v9241_v7, 4 }
 0x583   : > { %v4781_v57 = vpop.permute.xlu0 %4780 }
 0x584   : > { %v4783_v53 = vpop.permute.xlu1 %4782  ;;  %5356 = vrot.lane.b32.xlu2 %v10304_v43, %s6212_s29  ;;  %v5009_v29 = vsel %vm347_vm0, %v5008_v23, %v4781_v57 }
 0x585   : > { %v4862_v42 = vrot.slane %v4783_v53, 4 }
 0x586   : > { %v9206_v21 = vpop.permute.xlu2 %4818 }
 0x587   : > { %v4863_v26 = vsel %vm347_vm0, %v4862_v42, %v4767_v36 }
 0x588   : > { %v4867_v9 = vperm.slane %v4863_v26, %v10302_v3 }
 0x589   : > { %5358 = vrot.lane.b32.xlu0 %v8808_v44, %s6212_s29 }
 0x58a   : > { %v4875_v18 = vsel %vm347_vm0, %v4874_v39, %v4867_v9  ;;  %v4876_v16 = vrot.slane %v4867_v9, 4  ;;  %5384 = vrot.lane.b32.xlu1 %v10329_v60, %s6212_s29  ;;  %v4897_v60 = vsel %vm347_vm0, %v4896_v0, %v4779_v10  ;;  %v9244_v10 = vperm.slane %v5009_v29, %v10302_v3 }
 0x58b   : > { %v4787_v34 = vpop.permute.xlu0 %4786 }
 0x58c   : > { %v9216_v43 = vsel %vm347_vm0, %v4873_v14, %v4876_v16  ;;  %v4789_v49 = vpop.permute.xlu1 %4788  ;;  %5386 = vrot.lane.b32.xlu2 %v8867_v35, %s6212_s29  ;;  %v4890_v44 = vrot.slane %v4787_v34, 4  ;;  %v4901_v35 = vperm.slane %v4897_v60, %v10302_v3  ;;  %v5014_v31 = vrot.slane %v9244_v10, 4 }
 0x58d   : > { %v5002_v1 = vrot.slane %v4789_v49, 4  ;;  %v9283_v16 = vperm.slane %v9199_v45, %v6299_v19  ;;  %v4946_v34 = vrot.slane %v9206_v21, 4  ;;  %v9294_v0 = vperm.slane %v9216_v43, %v6299_v19 }
 0x58e   : > { %v4799_v30 = vpop.permute.xlu2 %4798  ;;  %v4891_v25 = vsel %vm347_vm0, %v4890_v44, %v9160_v62  ;;  %v4902_v27 = vrot.slane %v4901_v35, 4 }
 0x58f   : > { %v5113_v23 = vshrl.u32 %v9283_v16, 16 }
 0x591   : > { %5388 = vrot.lane.b32.xlu0 %v10330_v24, %s6212_s29  ;;  %v4895_v24 = vperm.slane %v4891_v25, %v10302_v3 }
 0x592   : > { %5390 = vrot.lane.b32.xlu1 %v8873_v51, %s6212_s29  ;;  %v4925_v51 = vsel %vm347_vm0, %v4924_v5, %v4807_v22  ;;  %v9252_v22 = vperm.slane %v4875_v18, %v6299_v19 }
 0x593   : > { %v4809_v2 = vpop.permute.xlu0 %4808  ;;  %v4929_v8 = vperm.slane %v4925_v51, %v10302_v3  ;;  %v4903_v15 = vsel %vm347_vm0, %v4902_v27, %v4895_v24  ;;  %v4904_v36 = vrot.slane %v4895_v24, 4  ;;  %v4998_v27 = vrot.slane %v9283_v16, 4 }
 0x594   : > { %v4811_v56 = vpop.permute.xlu1 %4810  ;;  %v9249_v61 = vperm.slane %v4903_v15, %v6299_v19  ;;  %v5037_v50 = vsel %vm347_vm0, %v5036_v37, %v4809_v2  ;;  %v5089_v53 = vshrl.u32 %v9252_v22, 16  ;;  %v4886_v18 = vrot.slane %v9252_v22, 4 }
 0x595   : > { %v4930_v47 = vrot.slane %v4929_v8, 4  ;;  %v4905_v13 = vsel %vm347_vm0, %v4901_v35, %v4904_v36  ;;  %v4953_v33 = vsel %vm347_vm0, %v4952_v20, %v4811_v56  ;;  %v9267_v57 = vperm.slane %v5037_v50, %v10302_v3 }
 0x596   : > { %v4805_v17 = vpop.permute.xlu2 %4804  ;;  %v5090_v12 = vshrl.u32 %v9249_v61, 16  ;;  %v4914_v4 = vrot.slane %v9249_v61, 4  ;;  %v9264_v59 = vperm.slane %v4905_v13, %v6299_v19  ;;  %v9287_v49 = vperm.slane %v4953_v33, %v10302_v3 }
 0x597   : > { %v5042_v60 = vrot.slane %v9267_v57, 4  ;;  %v4887_v43 = vsel %vm347_vm0, 0, %v4886_v18 }
 0x598   : > { %v9298_v2 = vpack.i.b16 %v5090_v12, %v5089_v53  ;;  %v4915_v45 = vsel %vm347_vm0, 0, %v4914_v4  ;;  %v5100_v35 = vpack.i.b16 %v9264_v59, %v9294_v0  ;;  %v4958_v52 = vrot.slane %v9287_v49, 4 }
 0x599   : > { %v5094_v51 = vpack.i.b16 %v4915_v45, %v4887_v43 }
 0x59b   : > { %v4815_v55 = vpop.permute.xlu0 %4814 }
 0x59c   : > { %v4918_v40 = vrot.slane %v4815_v55, 4  ;;  %v4817_v63 = vpop.permute.xlu1 %4816 }
 0x59d   : > { %v5030_v56 = vrot.slane %v4817_v63, 4  ;;  %v5096_v63 = vshrl.u32 %v4915_v45, 16 }
 0x59e   : > { %v4919_v6 = vsel %vm347_vm0, %v4918_v40, %v4799_v30  ;;  %v9238_v62 = vpop.permute.xlu2 %5380  ;;  %v5185_v40 = vunpack.c.l.b16 %v9298_v2 }
 0x59f   : > { %v4923_v41 = vperm.slane %v4919_v6, %v10302_v3 }
 0x5a1   : > { %v4931_v32 = vsel %vm347_vm0, %v4930_v47, %v4923_v41  ;;  %v4932_v21 = vrot.slane %v4923_v41, 4  ;;  %v5095_v41 = vshrl.u32 %v4887_v43, 16 }
 0x5a2   : > { %v9272_v42 = vperm.slane %v4931_v32, %v6299_v19 }
 0x5a3   : > { %v4821_v46 = vpop.permute.xlu0 %4820  ;;  %v9320_v15 = vsel %vm347_vm0, %v4929_v8, %v4932_v21  ;;  %v9339_v33 = vpack.i.b16 %v5096_v63, %v5095_v41 }
 0x5a4   : > { %v5058_v11 = vrot.slane %v4821_v46, 4  ;;  %v4773_v38 = vpop.permute.xlu1 %4772  ;;  %v5137_v8 = vshrl.u32 %v9272_v42, 16 }
 0x5a5   : > { %v5003_v14 = vsel %vm347_vm0, %v5002_v1, %v4773_v38  ;;  %v9333_v1 = vsel %vm347_vm0, 0, %v4998_v27 }
 0x5a6   : > { %v5059_v26 = vsel %vm347_vm0, %v5058_v11, %v4805_v17  ;;  %v9276_v39 = vperm.slane %v5003_v14, %v10302_v3  ;;  %v9278_v9 = vpop.permute.xlu2 %5410  ;;  %v4942_v17 = vrot.slane %v9272_v42, 4 }
 0x5a7   : > { %v9290_v30 = vperm.slane %v5059_v26, %v10302_v3 }
 0x5a8   : > { %v5015_v44 = vsel %vm347_vm0, %v5014_v31, %v9276_v39  ;;  %v4943_v50 = vsel %vm347_vm0, 0, %v4942_v17  ;;  %v5190_v31 = vunpack.c.l.b16 %v5094_v51  ;;  %v5016_v38 = vrot.slane %v9276_v39, 4 }
 0x5a9   : > { %v5071_v5 = vsel %vm347_vm0, %v5070_v54, %v9290_v30  ;;  %v9305_v25 = vperm.slane %v5015_v44, %v6299_v19  ;;  %v5143_v14 = vshrl.u32 %v4943_v50, 16  ;;  %v5072_v44 = vrot.slane %v9290_v30, 4 }
 0x5aa   : > { %v9315_v55 = vperm.slane %v5071_v5, %v6299_v19 }
 0x5ab   : > { %v4801_v24 = vpop.permute.xlu0 %4800  ;;  %v5026_v37 = vrot.slane %v9305_v25, 4  ;;  %v5114_v13 = vshrl.u32 %v9305_v25, 16 }
 0x5ac   : > { %v5031_v48 = vsel %vm347_vm0, %v5030_v56, %v4801_v24  ;;  %v4803_v29 = vpop.permute.xlu1 %4802  ;;  %v5082_v11 = vrot.slane %v9315_v55, 4  ;;  %v5162_v4 = vshrl.u32 %v9315_v55, 16 }
 0x5ad   : > { %v5035_v36 = vperm.slane %v5031_v48, %v10302_v3  ;;  %v4947_v6 = vsel %vm347_vm0, %v4946_v34, %v4803_v29  ;;  %v5115_v26 = vpack.i.b16 %v5114_v13, %v5113_v23  ;;  %v5027_v34 = vsel %vm347_vm0, 0, %v5026_v37 }
 0x5ae   : > { %v4951_v47 = vperm.slane %v4947_v6, %v10302_v3  ;;  %v9326_v20 = vpop.permute.xlu2 %5360  ;;  %v5083_v17 = vsel %vm347_vm0, 0, %v5082_v11  ;;  %v5120_v23 = vshrl.u32 %v5027_v34, 16 }
 0x5af   : > { %v5043_v54 = vsel %vm347_vm0, %v5042_v60, %v5035_v36  ;;  %v5044_v21 = vrot.slane %v5035_v36, 4  ;;  %v5223_v27 = vunpack.c.l.b16 %v5115_v26  ;;  %v5168_v37 = vshrl.u32 %v5083_v17, 16 }
 0x5b0   : > { %v9336_v32 = vperm.slane %v5043_v54, %v6299_v19  ;;  %v4959_v46 = vsel %vm347_vm0, %v4958_v52, %v4951_v47  ;;  %v4960_v2 = vrot.slane %v4951_v47, 4  ;;  %v5017_v52 = vsel %vm347_vm0, %v9244_v10, %v5016_v38 }
 0x5b1   : > { %v9344_v12 = vperm.slane %v4959_v46, %v6299_v19  ;;  %v5045_v47 = vsel %vm347_vm0, %v9267_v57, %v5044_v21  ;;  %v9372_v38 = vperm.slane %v5017_v52, %v6299_v19  ;;  %v5102_v26 = vshrl.u32 %v9264_v59, 16 }
 0x5b2   : > { %v5054_v53 = vrot.slane %v9336_v32, 4  ;;  %v5161_v18 = vshrl.u32 %v9336_v32, 16  ;;  %v4961_v36 = vsel %vm347_vm0, %v9287_v49, %v4960_v2  ;;  %v9377_v57 = vperm.slane %v5045_v47, %v6299_v19 }
 0x5b3   : > { %v4970_v45 = vrot.slane %v9344_v12, 4  ;;  %v9352_v60 = vpop.permute.xlu0 %5376  ;;  %v5138_v39 = vshrl.u32 %v9344_v12, 16  ;;  %v4969_v49 = vperm.slane %v4961_v36, %v6299_v19 }
 0x5b4   : > { %v9355_v56 = vpop.permute.xlu1 %5378  ;;  %v5163_v5 = vpack.i.b16 %v5162_v4, %v5161_v18  ;;  %v5055_v43 = vsel %vm347_vm0, 0, %v5054_v53  ;;  %v4941_v18 = vperm.slane %v9320_v15, %v6299_v19 }
 0x5b5   : > { %v5139_v24 = vpack.i.b16 %v5138_v39, %v5137_v8  ;;  %v4971_v30 = vsel %vm347_vm0, 0, %v4970_v45  ;;  %v5167_v41 = vshrl.u32 %v5055_v43, 16  ;;  %v5073_v8 = vsel %vm347_vm0, %v9241_v7, %v5072_v44 }
 0x5b6   : > { %v9362_v51 = vpop.permute.xlu2 %5366  ;;  %v5224_v48 = vunpack.c.l.b16 %v5163_v5  ;;  %v5142_v29 = vpack.i.b16 %v4971_v30, %v4943_v50  ;;  %v5144_v63 = vshrl.u32 %v4971_v30, 16  ;;  %v5166_v11 = vpack.i.b16 %v5083_v17, %v5055_v43 }
 0x5b7   : > { %v5186_v6 = vunpack.c.l.b16 %v5139_v24  ;;  %v5119_v50 = vshrl.u32 %v9333_v1, 16  ;;  %v5169_v53 = vpack.i.b16 %v5168_v37, %v5167_v41  ;;  %v5118_v7 = vpack.i.b16 %v5027_v34, %v9333_v1 }
 0x5b8   : > { %v5225_v10 = vpack.c.b16 %v5224_v48, %v5223_v27  ;;  %v5191_v13 = vunpack.c.l.b16 %v5142_v29  ;;  %v5145_v54 = vpack.i.b16 %v5144_v63, %v5143_v14  ;;  %v9392_v45 = vperm.slane %v9193_v28, %v6299_v19 }
 0x5b9   : > { %v5187_v46 = vpack.c.b16 %v5186_v6, %v5185_v40  ;;  %v5101_v40 = vshrl.u32 %v9294_v0, 16  ;;  %v5121_v2 = vpack.i.b16 %v5120_v23, %v5119_v50  ;;  %v5081_v39 = vperm.slane %v5073_v8, %v6299_v19 }
 0x5ba   : > { %5226 = vrot.lane.b32.xlu0 %v5225_v10, %s6206_s23  ;;  %v5192_v4 = vpack.c.b16 %v5191_v13, %v5190_v31  ;;  %v5196_v31 = vunpack.c.l.b16 %v5145_v54  ;;  %v5229_v1 = vunpack.c.l.b16 %v5166_v11  ;;  %v5195_v5 = vunpack.c.l.b16 %v9339_v33 }
 0x5bb   : > { %5188 = vrot.lane.b32.xlu2 %v5187_v46, %s6206_s23  ;;  %v9380_v14 = vpop.permute.xlu0 %5382  ;;  %v5103_v34 = vpack.i.b16 %v5102_v26, %v5101_v40  ;;  %v5234_v43 = vunpack.c.l.b16 %v5169_v53  ;;  %v5150_v15 = vshrl.u32 %v4969_v49, 16  ;;  %v4888_v17 = vrot.slane %v9294_v0, 4 }
 0x5bc   : > { %v9387_v44 = vpop.permute.xlu1 %5408  ;;  %5193 = vrot.lane.b32.xlu1 %v5192_v4, %s6207_s24  ;;  %v5228_v52 = vunpack.c.l.b16 %v5118_v7  ;;  %v5124_v24 = vpack.i.b16 %v9372_v38, %v9392_v45  ;;  %v5172_v30 = vpack.i.b16 %v5081_v39, %v9377_v57  ;;  %v4916_v28 = vrot.slane %v9264_v59, 4 }
 0x5bd   : > { %v5197_v23 = vpack.c.b16 %v5196_v31, %v5195_v5  ;;  %v5233_v27 = vunpack.c.l.b16 %v5121_v2  ;;  %v5148_v48 = vpack.i.b16 %v4969_v49, %v4941_v18  ;;  %v5149_v29 = vshrl.u32 %v4941_v18, 16 }
 0x5be   : > { %v9395_v21 = vpop.permute.xlu2 %5372  ;;  %v5230_v63 = vpack.c.b16 %v5229_v1, %v5228_v52  ;;  %v4889_v36 = vsel %vm347_vm0, 0, %v4888_v17  ;;  %v4917_v33 = vsel %vm347_vm0, 0, %v4916_v28  ;;  %v4972_v6 = vrot.slane %v4969_v49, 4 }
 0x5bf   : > { %v5235_v41 = vpack.c.b16 %v5234_v43, %v5233_v27  ;;  %v5151_v37 = vpack.i.b16 %v5150_v15, %v5149_v29  ;;  %v5106_v47 = vpack.i.b16 %v4917_v33, %v4889_v36  ;;  %v5239_v13 = vunpack.c.l.b16 %v5172_v30 }
 0x5c0   : > { %v4944_v54 = vrot.slane %v4941_v18, 4  ;;  %v5000_v8 = vrot.slane %v9392_v45, 4  ;;  %v5201_v11 = vunpack.c.l.b16 %v5148_v48  ;;  %v5238_v50 = vunpack.c.l.b16 %v5124_v24 }
 0x5c1   : > { %v5200_v49 = vunpack.c.l.b16 %v5100_v35  ;;  %v4973_v4 = vsel %vm347_vm0, 0, %v4972_v6  ;;  %v5173_v53 = vshrl.u32 %v9377_v57, 16  ;;  %v5206_v40 = vunpack.c.l.b16 %v5151_v37 }
 0x5c2   : > { %5198 = vrot.lane.b32.xlu0 %v5197_v23, %s6210_s27  ;;  %v5028_v26 = vrot.slane %v9372_v38, 4  ;;  %v5056_v18 = vrot.slane %v9377_v57, 4  ;;  %v5084_v31 = vrot.slane %v5081_v39, 4  ;;  %v5240_v2 = vpack.c.b16 %v5239_v13, %v5238_v50 }
 0x5c3   : > { %5231 = vrot.lane.b32.xlu2 %v5230_v63, %s6207_s24  ;;  %v9407_v10 = vpop.permute.xlu0 %5412  ;;  %v4945_v1 = vsel %vm347_vm0, 0, %v4944_v54  ;;  %v5126_v5 = vshrl.u32 %v9372_v38, 16  ;;  %v5174_v43 = vshrl.u32 %v5081_v39, 16  ;;  %v5202_v59 = vpack.c.b16 %v5201_v11, %v5200_v49 }
 0x5c4   : > { %v9410_v46 = vpop.permute.xlu1 %5414  ;;  %5236 = vrot.lane.b32.xlu1 %v5235_v41, %s6210_s27  ;;  %v5205_v0 = vunpack.c.l.b16 %v5103_v34  ;;  %v5154_v35 = vpack.i.b16 %v4973_v4, %v4945_v1  ;;  %v5057_v15 = vsel %vm347_vm0, 0, %v5056_v18  ;;  %v5125_v17 = vshrl.u32 %v9392_v45, 16 }
 0x5c5   : > { %v5175_v52 = vpack.i.b16 %v5174_v43, %v5173_v53  ;;  %v5029_v24 = vsel %vm347_vm0, 0, %v5028_v26  ;;  %v5085_v30 = vsel %vm347_vm0, 0, %v5084_v31  ;;  %v5107_v23 = vshrl.u32 %v4889_v36, 16 }
 0x5c6   : > { %v9418_v7 = vpop.permute.xlu2 %5394  ;;  %v5207_v57 = vpack.c.b16 %v5206_v40, %v5205_v0  ;;  %v5178_v28 = vpack.i.b16 %v5085_v30, %v5057_v15  ;;  %v5108_v27 = vshrl.u32 %v4917_v33, 16  ;;  %v5127_v39 = vpack.i.b16 %v5126_v5, %v5125_v17 }
 0x5c7   : > { %v5001_v34 = vsel %vm347_vm0, 0, %v5000_v8  ;;  %v5211_v45 = vunpack.c.l.b16 %v5154_v35  ;;  %v5179_v63 = vshrl.u32 %v5057_v15, 16  ;;  %v5244_v41 = vunpack.c.l.b16 %v5175_v52 }
 0x5c8   : > { %v5130_v29 = vpack.i.b16 %v5029_v24, %v5001_v34  ;;  %v5109_v6 = vpack.i.b16 %v5108_v27, %v5107_v23  ;;  %v5156_v37 = vshrl.u32 %v4973_v4, 16  ;;  %v5210_v13 = vunpack.c.l.b16 %v5106_v47 }
 0x5c9   : > { %v5249_v54 = vunpack.c.l.b16 %v5178_v28  ;;  %v5132_v36 = vshrl.u32 %v5029_v24, 16  ;;  %v5180_v33 = vshrl.u32 %v5085_v30, 16  ;;  %v5243_v50 = vunpack.c.l.b16 %v5127_v39  ;;  %v188_v24 = vld [vmem:[%s9950_s2 + $0x10] sm:$0xff]  ;;  %v189_v30 = vld [vmem:[%s9950_s2 + $0x18] sm:$0xff] }
 0x5ca   : > { %5241 = vrot.lane.b32.xlu0 %v5240_v2, %s6204_s21  ;;  %v5155_v49 = vshrl.u32 %v4945_v1, 16  ;;  %v5212_v53 = vpack.c.b16 %v5211_v45, %v5210_v13  ;;  %v5248_v40 = vunpack.c.l.b16 %v5130_v29  ;;  %v5131_v8 = vshrl.u32 %v5001_v34, 16 }
 0x5cb   : > { %5203 = vrot.lane.b32.xlu2 %v5202_v59, %s6204_s21  ;;  %v9430_v38 = vpop.permute.xlu0 %5362  ;;  %v5181_v26 = vpack.i.b16 %v5180_v33, %v5179_v63  ;;  %v5245_v18 = vpack.c.b16 %v5244_v41, %v5243_v50  ;;  %v5215_v0 = vunpack.c.l.b16 %v5109_v6  ;;  %v228_v28 = vmul.f32 %v9036_v58, %v188_v24 }
 0x5cc   : > { %v5365_v48 = vpop.permute.xlu1 %5364  ;;  %5208 = vrot.lane.b32.xlu1 %v5207_v57, %s6205_s22  ;;  %v5157_v31 = vpack.i.b16 %v5156_v37, %v5155_v49  ;;  %v5250_v2 = vpack.c.b16 %v5249_v54, %v5248_v40  ;;  %v5133_v5 = vpack.i.b16 %v5132_v36, %v5131_v8  ;;  %v229_v23 = vmul.f32 %v9036_v58, %v189_v30 }
 0x5cd   : > { %v5254_v43 = vunpack.c.l.b16 %v5181_v26  ;;  %v264_v27 = vpack.c.bf16 %v228_v28, %v228_v28  ;;  %v5482_v29 = vrot.slane %v9238_v62, 4  ;;  %v5476_v63 = vrot.slane %v9395_v21, 4 }
 0x5ce   : > { %v9434_v11 = vpop.permute.xlu2 %5400  ;;  %v5216_v1 = vunpack.c.l.b16 %v5157_v31  ;;  %v5253_v59 = vunpack.c.l.b16 %v5133_v5  ;;  %v265_v39 = vpack.c.bf16 %v229_v23, %v229_v23  ;;  %v5454_v41 = vrot.slane %v9352_v60, 4 }
 0x5cf   : > { %v1398_v34 = vunpack.c.l.b16 %v264_v27  ;;  %v5594_v37 = vrot.slane %v9380_v14, 4  ;;  %v5622_v36 = vrot.slane %v9278_v9, 4  ;;  %v5483_v33 = vsel %vm347_vm0, %v5482_v29, %v5365_v48 }
 0x5d0   : > { %v5255_v35 = vpack.c.b16 %v5254_v43, %v5253_v59  ;;  %v5217_v17 = vpack.c.b16 %v5216_v1, %v5215_v0  ;;  %v1399_v45 = vunpack.c.l.b16 %v265_v39  ;;  %v5455_v21 = vsel %vm347_vm0, %v5454_v41, %v9326_v20 }
 0x5d1   : > { %v5566_v60 = vrot.slane %v9355_v56, 4  ;;  %v5595_v14 = vsel %vm347_vm0, %v5594_v37, %v9362_v51  ;;  %v5487_v49 = vperm.slane %v5483_v33, %v10302_v3  ;;  %v5623_v9 = vsel %vm347_vm0, %v5622_v36, %v9418_v7 }
 0x5d2   : > { %5213 = vrot.lane.b32.xlu0 %v5212_v53, %s6208_s25  ;;  %v1401_v6 = vpack.c.b16 %v1399_v45, %v1398_v34  ;;  %v9478_v40 = vperm.slane %v5455_v21, %v10302_v3  ;;  %v9481_v20 = vperm.slane %v5595_v14, %v10302_v3  ;;  %v5510_v56 = vrot.slane %v9387_v44, 4 }
 0x5d3   : > { %5246 = vrot.lane.b32.xlu2 %v5245_v18, %s6205_s22  ;;  %v9438_v47 = vpop.permute.xlu0 %5368  ;;  %v5567_v48 = vsel %vm347_vm0, %v5566_v60, %v9430_v38  ;;  %v5538_v51 = vrot.slane %v9407_v10, 4  ;;  %v5650_v8 = vrot.slane %v9410_v46, 4  ;;  %v5627_v26 = vperm.slane %v5623_v9, %v10302_v3  ;;  %v198_v38 = vld [vmem:[%s9950_s2 + $0x60] sm:$0xff] }
 0x5d4   : > { %v9440_v4 = vpop.permute.xlu1 %5370  ;;  %5251 = vrot.lane.b32.xlu1 %v5250_v2, %s6208_s25  ;;  %6023 = vmatmul.msk.bf16.gmra.mxu2 %vm743_vm1, %v1401_v6  ;;  %v5488_v7 = vrot.slane %v5487_v49, 4  ;;  %v199_v2 = vld [vmem:[%s9950_s2 + $0x68] sm:$0xff]  ;;  %v9494_v5 = vperm.slane %v5567_v48, %v10302_v3  ;;  %v238_v46 = vmul.f32 %v9036_v58, %v198_v38  ;;  %v5460_v23 = vrot.slane %v9478_v40, 4  ;;  %v197_v38 = vld [vmem:[%s9950_s2 + $0x58] sm:$0xff] }
 0x5d5   : > { %6025 = vmatmul.msk.bf16.gmra.mxu3 %vm743_vm1, %v1401_v6  ;;  %v239_v43 = vmul.f32 %v9036_v58, %v199_v2  ;;  %v5600_v27 = vrot.slane %v9481_v20, 4  ;;  %v5628_v39 = vrot.slane %v5627_v26, 4  ;;  %v5560_v36 = vrot.slane %v9440_v4, 4 }
 0x5d6   : > { %v9443_v15 = vpop.permute.xlu2 %5406  ;;  %v274_v30 = vpack.c.bf16 %v238_v46, %v238_v46 }
 0x5d7   : > { %v275_v28 = vpack.c.bf16 %v239_v43, %v239_v43  ;;  %v9555_v43 = vld [vmem:[%s6248_s17] ss:$0 sm:$0xff]  ;;  %s9928_s17 = scalar_lea.vmem %s9951_s3, %s6072_s11 }
 0x5d8   : > { %v2883_v45 = vunpack.c.l.b16 %v274_v30 }
 0x5d9   : > { %v2884_v29 = vunpack.c.l.b16 %v275_v28 }
 0x5da   : > { %5256 = vrot.lane.b32.xlu0 %v5255_v35, %s6209_s26 }
 0x5db   : > { %5218 = vrot.lane.b32.xlu2 %v5217_v17, %s6209_s26  ;;  %v9447_v52 = vpop.permute.xlu0 %5374  ;;  %v2887_v33 = vpack.c.b16 %v2884_v29, %v2883_v45 }
 0x5dc   : > { %v5393_v57 = vpop.permute.xlu1 %5392 }
 0x5dd   : > { %v5511_v1 = vsel %vm347_vm0, %v5510_v56, %v5393_v57 }
 0x5de   : > { %v5357_v13 = vpop.permute.xlu2 %5356  ;;  %v9509_v57 = vperm.slane %v5511_v1, %v10302_v3 }
 0x5df   : > { %v5477_v62 = vsel %vm347_vm0, %v5476_v63, %v5357_v13  ;;  %v5572_v63 = vrot.slane %v9494_v5, 4  ;;  %v5504_v13 = vrot.slane %v9434_v11, 4 }
 0x5e0   : > { %v5481_v53 = vperm.slane %v5477_v62, %v10302_v3  ;;  %v5588_v62 = vrot.slane %v9447_v52, 4 }
 0x5e2   : > { %v5489_v59 = vsel %vm347_vm0, %v5488_v7, %v5481_v53  ;;  %v5490_v0 = vrot.slane %v5481_v53, 4 }
 0x5e3   : > { %v5397_v54 = vpop.permute.xlu0 %5396  ;;  %v9512_v34 = vperm.slane %v5489_v59, %v6299_v19 }
 0x5e4   : > { %v5399_v50 = vpop.permute.xlu1 %5398  ;;  %v5539_v35 = vsel %vm347_vm0, %v5538_v51, %v5397_v54  ;;  %v5491_v6 = vsel %vm347_vm0, %v5487_v49, %v5490_v0  ;;  %v5448_v54 = vrot.slane %v9438_v47, 4  ;;  %v5516_v49 = vrot.slane %v9509_v57, 4  ;;  %6030 = vmatmul.msk.bf16.vlgmr.msra.gmra.mxu2 %vm743_vm1, %v2887_v33 }
 0x5e5   : > { %v5651_v17 = vsel %vm347_vm0, %v5650_v8, %v5399_v50  ;;  %v9517_v41 = vperm.slane %v5539_v35, %v10302_v3  ;;  %v5644_v50 = vrot.slane %v9443_v15, 4  ;;  %v9530_v9 = vperm.slane %v5491_v6, %v6299_v19  ;;  %6032 = vmatmul.msk.bf16.vlgmr.msra.gmra.mxu3 %vm743_vm1, %v2887_v33  ;;  %v201_v33 = vld [vmem:[%s9950_s2 + $0x78] sm:$0xff] }
 0x5e6   : > { %v5387_v31 = vpop.permute.xlu2 %5386  ;;  %v9520_v37 = vperm.slane %v5651_v17, %v10302_v3  ;;  %v5500_v11 = vrot.slane %v9512_v34, 4  ;;  %v237_v17 = vmul.f32 %v9555_v43, %v197_v38 }
 0x5e7   : > { %v5544_v4 = vrot.slane %v9517_v41, 4 }
 0x5e8   : > { %v5656_v52 = vrot.slane %v9520_v37, 4  ;;  %v9569_v30 = vsel %vm347_vm0, 0, %v5500_v11 }
 0x5eb   : > { %v5403_v18 = vpop.permute.xlu0 %5402 }
 0x5ec   : > { %v5616_v44 = vrot.slane %v5403_v18, 4  ;;  %v9496_v10 = vpop.permute.xlu1 %5404  ;;  %v5676_v18 = vshrl.u32 %v9512_v34, 16 }
 0x5ed   : > { %v5532_v51 = vrot.slane %v9496_v10, 4 }
 0x5ee   : > { %v5617_v24 = vsel %vm347_vm0, %v5616_v44, %v5387_v31  ;;  %v196_v31 = vld [vmem:[%s9950_s2 + $0x50] sm:$0xff] }
 0x5ef   : > { %v5621_v58 = vperm.slane %v5617_v24, %v10302_v3  ;;  %v236_v1 = vmul.f32 %v9555_v43, %v196_v31 }
 0x5f1   : > { %v5629_v21 = vsel %vm347_vm0, %v5628_v39, %v5621_v58  ;;  %v5630_v60 = vrot.slane %v5621_v58, 4  ;;  %v272_v28 = vpack.c.bf16 %v236_v1, %v236_v1 }
 0x5f2   : > { %v9542_v8 = vperm.slane %v5629_v21, %v6299_v19 }
 0x5f3   : > { %v5353_v14 = vpop.permute.xlu0 %5352  ;;  %v5631_v2 = vsel %vm347_vm0, %v5627_v26, %v5630_v60  ;;  %v1976_v11 = vunpack.c.l.b16 %v272_v28 }
 0x5f4   : > { %v5449_v47 = vsel %vm347_vm0, %v5448_v54, %v5353_v14  ;;  %v5355_v48 = vpop.permute.xlu1 %5354  ;;  %v5640_v29 = vrot.slane %v9542_v8, 4  ;;  %v5747_v6 = vshrl.u32 %v9542_v8, 16  ;;  %v273_v54 = vpack.c.bf16 %v237_v17, %v237_v17 }
 0x5f5   : > { %v5453_v53 = vperm.slane %v5449_v47, %v10302_v3  ;;  %v5561_v56 = vsel %vm347_vm0, %v5560_v36, %v5355_v48  ;;  %v200_v36 = vld [vmem:[%s9950_s2 + $0x70] sm:$0xff] }
 0x5f6   : > { %v5565_v7 = vperm.slane %v5561_v56, %v10302_v3  ;;  %v1977_v56 = vunpack.c.l.b16 %v273_v54  ;;  %v240_v38 = vmul.f32 %v9555_v43, %v200_v36  ;;  %v9621_v28 = vsel %vm347_vm0, 0, %v5640_v29 }
 0x5f7   : > { %v5461_v44 = vsel %vm347_vm0, %v5460_v23, %v5453_v53  ;;  %v5462_v46 = vrot.slane %v5453_v53, 4  ;;  %v9572_v23 = vperm.slane %v5631_v2, %v6299_v19 }
 0x5f8   : > { %v9559_v59 = vperm.slane %v5461_v44, %v6299_v19  ;;  %v5573_v0 = vsel %vm347_vm0, %v5572_v63, %v5565_v7  ;;  %v5574_v35 = vrot.slane %v5565_v7, 4  ;;  %v1979_v1 = vpack.c.b16 %v1977_v56, %v1976_v11 }
 0x5f9   : > { %v5463_v24 = vsel %vm347_vm0, %v9478_v40, %v5462_v46  ;;  %v9566_v26 = vperm.slane %v5573_v0, %v6299_v19 }
 0x5fa   : > { %v5472_v39 = vrot.slane %v9559_v59, 4  ;;  %v5575_v58 = vsel %vm347_vm0, %v9494_v5, %v5574_v35  ;;  %v5675_v45 = vshrl.u32 %v9559_v59, 16  ;;  %v9580_v40 = vperm.slane %v5463_v24, %v6299_v19  ;;  %6027 = vmatmul.msk.bf16.gmra.mxu0 %vm743_vm1, %v1979_v1  ;;  %6029 = vmatmul.msk.bf16.gmra.mxu1 %vm743_vm1, %v1979_v1 }
 0x5fb   : > { %v5359_v63 = vpop.permute.xlu0 %5358  ;;  %v9590_v5 = vperm.slane %v5575_v58, %v6299_v19  ;;  %v5584_v47 = vrot.slane %v9566_v26, 4  ;;  %v276_v35 = vpack.c.bf16 %v240_v38, %v240_v38  ;;  %v5699_v58 = vshrl.u32 %v9566_v26, 16 }
 0x5fc   : > { %v5589_v21 = vsel %vm347_vm0, %v5588_v62, %v5359_v63  ;;  %v5385_v60 = vpop.permute.xlu1 %5384  ;;  %v9594_v14 = vsel %vm347_vm0, 0, %v5472_v39  ;;  %v9600_v31 = vpack.i.b16 %v5676_v18, %v5675_v45  ;;  %v241_v62 = vmul.f32 %v9555_v43, %v201_v33 }
 0x5fd   : > { %v5593_v48 = vperm.slane %v5589_v21, %v10302_v3  ;;  %v5505_v53 = vsel %vm347_vm0, %v5504_v13, %v5385_v60  ;;  %v5680_v46 = vpack.i.b16 %v9569_v30, %v9594_v14  ;;  %v2885_v33 = vunpack.c.l.b16 %v276_v35 }
 0x5fe   : > { %v5509_v7 = vperm.slane %v5505_v53, %v10302_v3  ;;  %v5771_v54 = vunpack.c.l.b16 %v9600_v31  ;;  %v5585_v11 = vsel %vm347_vm0, 0, %v5584_v47 }
 0x5ff   : > { %v5601_v2 = vsel %vm347_vm0, %v5600_v27, %v5593_v48  ;;  %v5602_v44 = vrot.slane %v5593_v48, 4  ;;  %v277_v27 = vpack.c.bf16 %v241_v62, %v241_v62  ;;  %v9630_v36 = vunpack.c.l.b16 %v5680_v46 }
 0x600   : > { %v9610_v13 = vperm.slane %v5601_v2, %v6299_v19  ;;  %v5517_v0 = vsel %vm347_vm0, %v5516_v49, %v5509_v7  ;;  %v5518_v18 = vrot.slane %v5509_v7, 4 }
 0x601   : > { %v5603_v17 = vsel %vm347_vm0, %v9481_v20, %v5602_v44  ;;  %v9616_v24 = vperm.slane %v5517_v0, %v6299_v19  ;;  %v2886_v60 = vunpack.c.l.b16 %v277_v27 }
 0x602   : > { %v5612_v39 = vrot.slane %v9610_v13, 4  ;;  %v5519_v49 = vsel %vm347_vm0, %v9509_v57, %v5518_v18  ;;  %v5700_v20 = vshrl.u32 %v9610_v13, 16  ;;  %v9633_v29 = vperm.slane %v5603_v17, %v6299_v19 }
 0x603   : > { %v5528_v45 = vrot.slane %v9616_v24, 4  ;;  %v5389_v63 = vpop.permute.xlu0 %5388  ;;  %v9640_v48 = vperm.slane %v5519_v49, %v6299_v19  ;;  %v2888_v38 = vpack.c.b16 %v2886_v60, %v2885_v33  ;;  %v5723_v2 = vshrl.u32 %v9616_v24, 16 }
 0x604   : > { %v5533_v21 = vsel %vm347_vm0, %v5532_v51, %v5389_v63  ;;  %v5391_v57 = vpop.permute.xlu1 %5390  ;;  %v5701_v7 = vpack.i.b16 %v5700_v20, %v5699_v58  ;;  %v5613_v10 = vsel %vm347_vm0, 0, %v5612_v39  ;;  %v5681_v51 = vshrl.u32 %v9594_v14, 16 }
 0x605   : > { %v5537_v53 = vperm.slane %v5533_v21, %v10302_v3  ;;  %v5645_v56 = vsel %vm347_vm0, %v5644_v50, %v5391_v57  ;;  %v5529_v44 = vsel %vm347_vm0, 0, %v5528_v45  ;;  %6031 = vmatmul.msk.bf16.gmra.mxu2 %vm743_vm1, %v2888_v38  ;;  %v5682_v14 = vshrl.u32 %v9569_v30, 16  ;;  %6033 = vmatmul.msk.bf16.gmra.mxu3 %vm743_vm1, %v2888_v38 }
 0x606   : > { %v5649_v31 = vperm.slane %v5645_v56, %v10302_v3  ;;  %v5809_v1 = vunpack.c.l.b16 %v5701_v7  ;;  %v5704_v0 = vpack.i.b16 %v5613_v10, %v5585_v11  ;;  %v5729_v17 = vshrl.u32 %v5529_v44, 16 }
 0x607   : > { %v5545_v47 = vsel %vm347_vm0, %v5544_v4, %v5537_v53  ;;  %v5546_v62 = vrot.slane %v5537_v53, 4  ;;  %v5705_v49 = vshrl.u32 %v5585_v11, 16  ;;  %v5706_v45 = vshrl.u32 %v5613_v10, 16 }
 0x608   : > { %v9655_v15 = vperm.slane %v5545_v47, %v6299_v19  ;;  %v5657_v3 = vsel %vm347_vm0, %v5656_v52, %v5649_v31  ;;  %v5658_v50 = vrot.slane %v5649_v31, 4  ;;  %v5683_v52 = vpack.i.b16 %v5682_v14, %v5681_v51 }
 0x609   : > { %v5547_v4 = vsel %vm347_vm0, %v9517_v41, %v5546_v62  ;;  %v9666_v46 = vperm.slane %v5657_v3, %v6299_v19  ;;  %v5753_v56 = vshrl.u32 %v9621_v28, 16  ;;  %v5686_v38 = vpack.i.b16 %v9530_v9, %v9580_v40 }
 0x60a   : > { %v5556_v18 = vrot.slane %v9655_v15, 4  ;;  %v5724_v35 = vshrl.u32 %v9655_v15, 16  ;;  %v9671_v27 = vperm.slane %v5547_v4, %v6299_v19  ;;  %v5659_v41 = vsel %vm347_vm0, %v9520_v37, %v5658_v50  ;;  %v202_v4 = vld [vmem:[%s9950_s2 + $0x80] sm:$0xff] }
 0x60b   : > { %v5668_v30 = vrot.slane %v9666_v46, 4  ;;  %v5748_v39 = vshrl.u32 %v9666_v46, 16  ;;  %v5707_v47 = vpack.i.b16 %v5706_v45, %v5705_v49  ;;  %v5814_v50 = vunpack.c.l.b16 %v5704_v0  ;;  %v203_v0 = vld [vmem:[%s9950_s2 + $0x88] sm:$0xff] }
 0x60c   : > { %v5725_v58 = vpack.i.b16 %v5724_v35, %v5723_v2  ;;  %v5557_v20 = vsel %vm347_vm0, 0, %v5556_v18  ;;  %v5734_v3 = vpack.i.b16 %v9671_v27, %v9640_v48  ;;  %v5781_v14 = vunpack.c.l.b16 %v5683_v52  ;;  %v206_v35 = vld [vmem:[%s9950_s2 + $0xa0] sm:$0xff]  ;;  %v207_v49 = vld [vmem:[%s9950_s2 + $0xa8] sm:$0xff] }
 0x60d   : > { %v5749_v63 = vpack.i.b16 %v5748_v39, %v5747_v6  ;;  %v5728_v33 = vpack.i.b16 %v5557_v20, %v5529_v44  ;;  %v5669_v21 = vsel %vm347_vm0, 0, %v5668_v30  ;;  %v5730_v57 = vshrl.u32 %v5557_v20, 16 }
 0x60e   : > { %v5772_v60 = vunpack.c.l.b16 %v5725_v58  ;;  %v5752_v53 = vpack.i.b16 %v5669_v21, %v9621_v28  ;;  %v5754_v11 = vshrl.u32 %v5669_v21, 16  ;;  %v9689_v28 = vperm.slane %v5659_v41, %v6299_v19 }
 0x60f   : > { %v5810_v7 = vunpack.c.l.b16 %v5749_v63  ;;  %v5777_v31 = vunpack.c.l.b16 %v5728_v33  ;;  %v5731_v37 = vpack.i.b16 %v5730_v57, %v5729_v17  ;;  %v9701_v19 = vunpack.c.l.b16 %v5734_v3 }
 0x610   : > { %v5773_v10 = vpack.c.b16 %v5772_v60, %v5771_v54  ;;  %v5815_v51 = vunpack.c.l.b16 %v5752_v53  ;;  %v5755_v6 = vpack.i.b16 %v5754_v11, %v5753_v56  ;;  %v5710_v54 = vpack.i.b16 %v9633_v29, %v9590_v5 }
 0x611   : > { %v5811_v62 = vpack.c.b16 %v5810_v7, %v5809_v1  ;;  %v5778_v2 = vpack.c.b16 %v5777_v31, %v9630_v36  ;;  %v5782_v44 = vunpack.c.l.b16 %v5731_v37  ;;  %v9699_v1 = vunpack.c.l.b16 %v5686_v38 }
 0x612   : > { %5774 = vrot.lane.b32.xlu1 %v5773_v10, %s6206_s23  ;;  %v5820_v36 = vunpack.c.l.b16 %v5755_v6  ;;  %v5687_v18 = vshrl.u32 %v9580_v40, 16  ;;  %v5816_v52 = vpack.c.b16 %v5815_v51, %v5814_v50  ;;  %v5819_v30 = vunpack.c.l.b16 %v5707_v47 }
 0x613   : > { %5812 = vrot.lane.b32.xlu2 %v5811_v62, %s6206_s23  ;;  %5779 = vrot.lane.b32.xlu0 %v5778_v2, %s6207_s24  ;;  %v5783_v17 = vpack.c.b16 %v5782_v44, %v5781_v14  ;;  %v5688_v39 = vshrl.u32 %v9530_v9, 16  ;;  %v5788_v41 = vpack.c.b16 %v9701_v19, %v9699_v1  ;;  %v5735_v58 = vshrl.u32 %v9640_v48, 16 }
 0x614   : > { %v5736_v20 = vshrl.u32 %v9671_v27, 16  ;;  %v242_v45 = vmul.f32 %v9555_v43, %v202_v4  ;;  %v5758_v63 = vpack.i.b16 %v9689_v28, %v9572_v23  ;;  %v243_v21 = vmul.f32 %v9555_v43, %v203_v0 }
 0x615   : > { %v5689_v33 = vpack.i.b16 %v5688_v39, %v5687_v18  ;;  %v246_v57 = vmul.f32 %v9555_v43, %v206_v35  ;;  %v5821_v60 = vpack.c.b16 %v5820_v36, %v5819_v30  ;;  %v247_v11 = vmul.f32 %v9555_v43, %v207_v49  ;;  %v9734_v35 = vpop.permute.xlu2 %5188 }
 0x616   : > { %v5737_v53 = vpack.i.b16 %v5736_v20, %v5735_v58  ;;  %v278_v56 = vpack.c.bf16 %v242_v45, %v242_v45  ;;  %v279_v31 = vpack.c.bf16 %v243_v21, %v243_v21  ;;  %v5711_v38 = vshrl.u32 %v9590_v5, 16 }
 0x617   : > { %v5791_v7 = vunpack.c.l.b16 %v5689_v33  ;;  %v282_v37 = vpack.c.bf16 %v246_v57, %v246_v57  ;;  %v283_v47 = vpack.c.bf16 %v247_v11, %v247_v11  ;;  %v5712_v6 = vshrl.u32 %v9633_v29, 16 }
 0x618   : > { %v5792_v10 = vunpack.c.l.b16 %v5737_v53  ;;  %v3469_v51 = vunpack.c.l.b16 %v278_v56  ;;  %v3470_v62 = vunpack.c.l.b16 %v279_v31  ;;  %v5759_v44 = vshrl.u32 %v9572_v23, 16 }
 0x619   : > { %v4055_v2 = vunpack.c.l.b16 %v282_v37  ;;  %v5760_v3 = vshrl.u32 %v9689_v28, 16  ;;  %v4056_v14 = vunpack.c.l.b16 %v283_v47  ;;  %v5713_v4 = vpack.i.b16 %v5712_v6, %v5711_v38 }
 0x61a   : > { %5817 = vrot.lane.b32.xlu1 %v5816_v52, %s6207_s24  ;;  %v5793_v50 = vpack.c.b16 %v5792_v10, %v5791_v7  ;;  %v5474_v36 = vrot.slane %v9580_v40, 4  ;;  %v5825_v1 = vunpack.c.l.b16 %v5758_v63  ;;  %v3473_v19 = vpack.c.b16 %v3470_v62, %v3469_v51  ;;  %v205_v62 = vld [vmem:[%s9950_s2 + $0x98] sm:$0xff] }
 0x61b   : > { %5784 = vrot.lane.b32.xlu2 %v5783_v17, %s6210_s27  ;;  %5822 = vrot.lane.b32.xlu0 %v5821_v60, %s6210_s27  ;;  %v5502_v18 = vrot.slane %v9530_v9, 4  ;;  %v5530_v0 = vrot.slane %v9640_v48, 4  ;;  %v4059_v52 = vpack.c.b16 %v4056_v14, %v4055_v2  ;;  %v5761_v30 = vpack.i.b16 %v5760_v3, %v5759_v44  ;;  %v208_v2 = vld [vmem:[%s9950_s2 + $0xb0] sm:$0xff] }
 0x61c   : > { %v5475_v39 = vsel %vm347_vm0, 0, %v5474_v36  ;;  %v5558_v17 = vrot.slane %v9671_v27, 4  ;;  %v5824_v49 = vunpack.c.l.b16 %v5710_v54  ;;  %6034 = vmatmul.msk.bf16.vlgmr.msra.gmra.mxu0 %vm743_vm1, %v3473_v19  ;;  %6036 = vmatmul.msk.bf16.vlgmr.msra.gmra.mxu1 %vm743_vm1, %v3473_v19  ;;  %v5586_v9 = vrot.slane %v9590_v5, 4 }
 0x61d   : > { %v5503_v40 = vsel %vm347_vm0, 0, %v5502_v18  ;;  %v5531_v58 = vsel %vm347_vm0, 0, %v5530_v0  ;;  %6038 = vmatmul.msk.bf16.vlgmr.msrb.gmra.mxu2 %vm743_vm1, %v4059_v52  ;;  %v5614_v45 = vrot.slane %v9633_v29, 4  ;;  %v5642_v27 = vrot.slane %v9572_v23, 4  ;;  %6040 = vmatmul.msk.bf16.vlgmr.msrb.gmra.mxu3 %vm743_vm1, %v4059_v52  ;;  %v9768_v36 = vpop.permute.xlu2 %5231 }
 0x61e   : > { %v5559_v48 = vsel %vm347_vm0, 0, %v5558_v17  ;;  %v5692_v20 = vpack.i.b16 %v5503_v40, %v5475_v39  ;;  %v5826_v54 = vpack.c.b16 %v5825_v1, %v5824_v49  ;;  %v5670_v33 = vrot.slane %v9689_v28, 4 }
 0x61f   : > { %v5740_v63 = vpack.i.b16 %v5559_v48, %v5531_v58  ;;  %v5830_v21 = vunpack.c.l.b16 %v5761_v30  ;;  %v5587_v60 = vsel %vm347_vm0, 0, %v5586_v9  ;;  %v5615_v5 = vsel %vm347_vm0, 0, %v5614_v45 }
 0x620   : > { %v5796_v57 = vunpack.c.l.b16 %v5692_v20  ;;  %v5643_v56 = vsel %vm347_vm0, 0, %v5642_v27  ;;  %v5671_v29 = vsel %vm347_vm0, 0, %v5670_v33  ;;  %v5716_v23 = vpack.i.b16 %v5615_v5, %v5587_v60 }
 0x621   : > { %v5797_v53 = vunpack.c.l.b16 %v5740_v63  ;;  %v5764_v11 = vpack.i.b16 %v5671_v29, %v5643_v56  ;;  %v5693_v28 = vshrl.u32 %v5475_v39, 16  ;;  %v5694_v7 = vshrl.u32 %v5503_v40, 16 }
 0x622   : > { %5789 = vrot.lane.b32.xlu1 %v5788_v41, %s6204_s21  ;;  %v5829_v31 = vunpack.c.l.b16 %v5713_v4  ;;  %v5834_v38 = vunpack.c.l.b16 %v5716_v23  ;;  %v204_v41 = vld [vmem:[%s9950_s2 + $0x90] sm:$0xff]  ;;  %v5741_v47 = vshrl.u32 %v5531_v58, 16  ;;  %v5742_v6 = vshrl.u32 %v5559_v48, 16  ;;  %v209_v4 = vld [vmem:[%s9950_s2 + $0xb8] sm:$0xff] }
 0x623   : > { %5827 = vrot.lane.b32.xlu2 %v5826_v54, %s6204_s21  ;;  %5794 = vrot.lane.b32.xlu0 %v5793_v50, %s6205_s22  ;;  %v5798_v37 = vpack.c.b16 %v5797_v53, %v5796_v57  ;;  %v5835_v10 = vunpack.c.l.b16 %v5764_v11  ;;  %v5695_v51 = vpack.i.b16 %v5694_v7, %v5693_v28  ;;  %v5717_v3 = vshrl.u32 %v5587_v60, 16  ;;  %v211_v53 = vld [vmem:[%s9950_s2 + $0xc8] sm:$0xff] }
 0x624   : > { %v5831_v44 = vpack.c.b16 %v5830_v21, %v5829_v31  ;;  %v5718_v50 = vshrl.u32 %v5615_v5, 16  ;;  %v5766_v14 = vshrl.u32 %v5671_v29, 16  ;;  %v5743_v19 = vpack.i.b16 %v5742_v6, %v5741_v47  ;;  %v210_v5 = vld [vmem:[%s9950_s2 + $0xc0] sm:$0xff] }
 0x625   : > { %v5836_v1 = vpack.c.b16 %v5835_v10, %v5834_v38  ;;  %v5765_v18 = vshrl.u32 %v5643_v56, 16  ;;  %v244_v0 = vmul.f32 %v9555_v43, %v204_v41  ;;  %v5801_v52 = vunpack.c.l.b16 %v5695_v51  ;;  %v5204_v31 = vpop.permute.xlu2 %5203 }
 0x626   : > { %v5719_v30 = vpack.i.b16 %v5718_v50, %v5717_v3  ;;  %v245_v39 = vmul.f32 %v9555_v43, %v205_v62  ;;  %v248_v17 = vmul.f32 %v9555_v43, %v208_v2  ;;  %v5802_v49 = vunpack.c.l.b16 %v5743_v19  ;;  %v214_v62 = vld [vmem:[%s9950_s2 + $0xe0] sm:$0xff]  ;;  %v215_v2 = vld [vmem:[%s9950_s2 + $0xe8] sm:$0xff] }
 0x627   : > { %v5767_v40 = vpack.i.b16 %v5766_v14, %v5765_v18  ;;  %v280_v58 = vpack.c.bf16 %v244_v0, %v244_v0  ;;  %v249_v9 = vmul.f32 %v9555_v43, %v209_v4  ;;  %v250_v28 = vmul.f32 %v9555_v43, %v210_v5 }
 0x628   : > { %v281_v48 = vpack.c.bf16 %v245_v39, %v245_v39  ;;  %v284_v20 = vpack.c.bf16 %v248_v17, %v248_v17  ;;  %v5803_v45 = vpack.c.b16 %v5802_v49, %v5801_v52  ;;  %v5839_v23 = vunpack.c.l.b16 %v5719_v30  ;;  %v212_v30 = vld [vmem:[%s9950_s2 + $0xd0] sm:$0xff] }
 0x629   : > { %v3471_v27 = vunpack.c.l.b16 %v280_v58  ;;  %v285_v54 = vpack.c.bf16 %v249_v9, %v249_v9  ;;  %v5840_v57 = vunpack.c.l.b16 %v5767_v40  ;;  %v251_v7 = vmul.f32 %v9555_v43, %v211_v53 }
 0x62a   : > { %5832 = vrot.lane.b32.xlu1 %v5831_v44, %s6205_s22  ;;  %v3472_v33 = vunpack.c.l.b16 %v281_v48  ;;  %v4057_v21 = vunpack.c.l.b16 %v284_v20  ;;  %v5136_v38 = vpack.i.b16 %v9344_v12, %v9272_v42  ;;  %v286_v10 = vpack.c.bf16 %v250_v28, %v250_v28  ;;  %v9823_v20 = vpop.f32.mrf.mxu3 }
 0x62b   : > { %5799 = vrot.lane.b32.xlu2 %v5798_v37, %s6208_s25  ;;  %5837 = vrot.lane.b32.xlu0 %v5836_v1, %s6208_s25  ;;  %v4058_v60 = vunpack.c.l.b16 %v285_v54  ;;  %v5841_v37 = vpack.c.b16 %v5840_v57, %v5839_v23  ;;  %v287_v51 = vpack.c.bf16 %v251_v7, %v251_v7  ;;  %v5088_v47 = vpack.i.b16 %v9249_v61, %v9252_v22  ;;  %v9805_v22 = vpop.f32.mrf.mxu2  ;;  %v217_v7 = vld [vmem:[%s9950_s2 + $0xf8] sm:$0xff] }
 0x62c   : > { %v5227_v63 = vpop.permute.xlu0 %5226  ;;  %v3474_v29 = vpack.c.b16 %v3472_v33, %v3471_v27  ;;  %v5183_v44 = vunpack.c.l.b16 %v5136_v38  ;;  %v4708_v3 = vunpack.c.l.b16 %v286_v10  ;;  %v5160_v42 = vpack.i.b16 %v9315_v55, %v9336_v32  ;;  %v213_v55 = vld [vmem:[%s9950_s2 + $0xd8] sm:$0xff] }
 0x62d   : > { %v4060_v11 = vpack.c.b16 %v4058_v60, %v4057_v21  ;;  %v4709_v50 = vunpack.c.l.b16 %v287_v51  ;;  %v5182_v12 = vunpack.c.l.b16 %v5088_v47  ;;  %v254_v14 = vmul.f32 %v9555_v43, %v214_v62  ;;  %v5247_v1 = vpop.permute.xlu2 %5246 }
 0x62e   : > { %v5194_v56 = vpop.permute.xlu1 %5193  ;;  %6035 = vmatmul.msk.bf16.gmra.mxu0 %vm743_vm1, %v3474_v29  ;;  %6037 = vmatmul.msk.bf16.gmra.mxu1 %vm743_vm1, %v3474_v29  ;;  %v255_v61 = vmul.f32 %v9555_v43, %v215_v2  ;;  %v5112_v4 = vpack.i.b16 %v9305_v25, %v9283_v16  ;;  %v5221_v52 = vunpack.c.l.b16 %v5160_v42  ;;  %v252_v58 = vmul.f32 %v9555_v43, %v212_v30 }
 0x62f   : > { %6039 = vmatmul.msk.bf16.gmra.mxu2 %vm743_vm1, %v4060_v11  ;;  %6041 = vmatmul.msk.bf16.gmra.mxu3 %vm743_vm1, %v4060_v11  ;;  %v5184_v19 = vpack.c.b16 %v5183_v44, %v5182_v12  ;;  %v4712_v0 = vpack.c.b16 %v4709_v50, %v4708_v3  ;;  %v290_v39 = vpack.c.bf16 %v254_v14, %v254_v14  ;;  %v1363_v12 = vpop.f32.mrf.mxu0  ;;  %v1382_v14 = vpop.f32.mrf.mxu1 }
 0x630   : > { %v291_v17 = vpack.c.bf16 %v255_v61, %v255_v61  ;;  %v5220_v49 = vunpack.c.l.b16 %v5112_v4  ;;  %v253_v9 = vmul.f32 %v9555_v43, %v213_v55  ;;  %v288_v60 = vpack.c.bf16 %v252_v58, %v252_v58 }
 0x631   : > { %v5260_v32 = vsel %vm743_vm1, %v5184_v19, %v9734_v35  ;;  %v5294_v35 = vunpack.c.l.b16 %v290_v39  ;;  %v257_v51 = vmul.f32 %v9555_v43, %v217_v7 }
 0x632   : > { %5804 = vrot.lane.b32.xlu1 %v5803_v45, %s6209_s26  ;;  %v5262_v16 = vsel %vm747_vm2, %v5260_v32, %v5194_v56  ;;  %v5222_v48 = vpack.c.b16 %v5221_v52, %v5220_v49  ;;  %v5295_v45 = vunpack.c.l.b16 %v291_v17  ;;  %v289_v5 = vpack.c.bf16 %v253_v9, %v253_v9 }
 0x633   : > { %5842 = vrot.lane.b32.xlu2 %v5841_v37, %s6209_s26  ;;  %v9825_v27 = vpop.f32.mrf.mxu2  ;;  %v4710_v37 = vunpack.c.l.b16 %v288_v60  ;;  %v293_v42 = vpack.c.bf16 %v257_v51, %v257_v51  ;;  %v5722_v51 = vpack.i.b16 %v9655_v15, %v9616_v24 }
 0x634   : > { %v5199_v41 = vpop.permute.xlu0 %5198  ;;  %v5276_v54 = vsel %vm743_vm1, %v5222_v48, %v5227_v63  ;;  %v5298_v11 = vpack.c.b16 %v5295_v45, %v5294_v35  ;;  %v216_v63 = vld [vmem:[%s9950_s2 + $0xf0] sm:$0xff]  ;;  %v4711_v38 = vunpack.c.l.b16 %v289_v5 }
 0x635   : > { %v5264_v40 = vsel %vm750_vm3, %v5262_v16, %v5199_v41  ;;  %v5219_v53 = vpop.permute.xlu2 %5218  ;;  %v5278_v29 = vsel %vm747_vm2, %v5276_v54, %v9768_v36  ;;  %v1389_v36 = vpop.f32.mrf.mxu3  ;;  %v256_v10 = vmul.f32 %v9555_v43, %v216_v63  ;;  %v5297_v19 = vunpack.c.l.b16 %v293_v42 }
 0x636   : > { %v5237_v6 = vpop.permute.xlu1 %5236  ;;  %v5266_v33 = vsel %vm753_vm4, %v5264_v40, %v5204_v31  ;;  %v4713_v44 = vpack.c.b16 %v4711_v38, %v4710_v37 }
 0x637   : > { %v5280_v28 = vsel %vm750_vm3, %v5278_v29, %v5237_v6  ;;  %v292_v50 = vpack.c.bf16 %v256_v10, %v256_v10  ;;  %v1365_v30 = vpop.f32.mrf.mxu0  ;;  %v1384_v55 = vpop.f32.mrf.mxu1  ;;  %v5698_v10 = vpack.i.b16 %v9610_v13, %v9566_v26 }
 0x63b   : > { %v1417_v6 = vpop.f32.mrf.mxu2 }
 0x63c   : > { %v5242_v18 = vpop.permute.xlu0 %5241  ;;  %v1418_v61 = vadd.f32 %v1417_v6, %v1363_v12 }
 0x63d   : > { %v5282_v31 = vsel %vm753_vm4, %v5280_v28, %v5242_v18  ;;  %v1436_v4 = vpop.f32.mrf.mxu3 }
 0x63e   : > { %v5209_v25 = vpop.permute.xlu1 %5208  ;;  %6058 = vmatmul.msk.bf16.vlgmr.msrb.gmra.mxu0 %vm743_vm1, %v4712_v0  ;;  %6060 = vmatmul.msk.bf16.vlgmr.msrb.gmra.mxu1 %vm743_vm1, %v4712_v0  ;;  %v5284_v47 = vsel %vm756_vm5, %v5282_v31, %v5247_v1  ;;  %v5296_v1 = vunpack.c.l.b16 %v292_v50  ;;  %v1437_v18 = vadd.f32 %v1436_v4, %v1382_v14 }
 0x63f   : > { %v5268_v21 = vsel %vm756_vm5, %v5266_v33, %v5209_v25  ;;  %v1995_v49 = vpop.f32.mrf.mxu0  ;;  %v2014_v16 = vpop.f32.mrf.mxu1 }
 0x640   : > { %v5299_v52 = vpack.c.b16 %v5297_v19, %v5296_v1  ;;  %v9852_v25 = vadd.f32 %v1995_v49, %v1418_v61  ;;  %v9854_v40 = vadd.f32 %v2014_v16, %v1437_v18 }
 0x643   : > { %v1419_v0 = vpop.f32.mrf.mxu2 }
 0x644   : > { %v5214_v57 = vpop.permute.xlu0 %5213  ;;  %v1420_v32 = vadd.f32 %v1419_v0, %v1365_v30 }
 0x645   : > { %v5270_v56 = vsel %vm759_vm6, %v5268_v21, %v5214_v57  ;;  %v1438_v39 = vpop.f32.mrf.mxu3 }
 0x646   : > { %v5272_v23 = vsel %vm762_vm7, %v5270_v56, %v5219_v53  ;;  %v5252_v41 = vpop.permute.xlu1 %5251  ;;  %v1439_v17 = vadd.f32 %v1438_v39, %v1384_v55 }
 0x647   : > { %5313 = vmatpush.bf16.msra.mxu2 %v5272_v23  ;;  %v5286_v62 = vsel %vm759_vm6, %v5284_v47, %v5252_v41  ;;  %v1997_v58 = vpop.f32.mrf.mxu0  ;;  %v2016_v9 = vpop.f32.mrf.mxu1 }
 0x648   : > { %v9857_v45 = vadd.f32 %v1997_v58, %v1420_v32  ;;  %v9859_v54 = vadd.f32 %v2016_v9, %v1439_v17 }
 0x64a   : > { %6062 = vmatmul.msk.bf16.vlgmr.msra.gmra.mxu2 %vm743_vm1, %v5298_v11 }
 0x64c   : > { %v5257_v2 = vpop.permute.xlu0 %5256 }
 0x64d   : > { %v5288_v3 = vsel %vm762_vm7, %v5286_v62, %v5257_v2  ;;  %v5674_v62 = vpack.i.b16 %v9512_v34, %v9559_v59  ;;  %v218_v2 = vld [vmem:[%s9950_s2 + $0x100] sm:$0xff] }
 0x64e   : > { %5332 = vmatpush.bf16.msra.mxu3 %v5288_v3  ;;  %6059 = vmatmul.msk.bf16.gmra.mxu0 %vm743_vm1, %v4713_v44  ;;  %v258_v13 = vmul.f32 %v9555_v43, %v218_v2 }
 0x64f   : > { %6061 = vmatmul.msk.bf16.gmra.mxu1 %vm743_vm1, %v4713_v44  ;;  %v5769_v44 = vunpack.c.l.b16 %v5722_v51  ;;  %v5768_v26 = vunpack.c.l.b16 %v5674_v62 }
 0x650   : > { %v294_v61 = vpack.c.bf16 %v258_v13, %v258_v13 }
 0x651   : > { %6064 = vmatmul.msk.bf16.vlgmr.msra.gmra.mxu3 %vm743_vm1, %v5298_v11  ;;  %v5770_v59 = vpack.c.b16 %v5769_v44, %v5768_v26 }
 0x652   : > { %v5880_v18 = vunpack.c.l.b16 %v294_v61 }
 0x657   : > { %v1422_v48 = vpop.f32.mrf.mxu2 }
 0x658   : > { %v1441_v35 = vpop.f32.mrf.mxu3  ;;  %v1423_v33 = vadd.f32 %v1422_v48, %v9805_v22  ;;  %v220_v48 = vld [vmem:[%s9950_s2 + $0x110] sm:$0xff] }
 0x659   : > { %v1442_v21 = vadd.f32 %v1441_v35, %v9823_v20  ;;  %v221_v35 = vld [vmem:[%s9950_s2 + $0x118] sm:$0xff] }
 0x65a   : > { %6063 = vmatmul.msk.bf16.gmra.mxu2 %vm743_vm1, %v5299_v52 }
 0x65f   : > { %v1424_v57 = vpop.f32.mrf.mxu2 }
 0x660   : > { %v1443_v60 = vpop.f32.mrf.mxu3  ;;  %v1425_v5 = vadd.f32 %v1424_v57, %v9825_v27  ;;  %v5746_v27 = vpack.i.b16 %v9666_v46, %v9542_v8  ;;  %v219_v8 = vld [vmem:[%s9950_s2 + $0x108] sm:$0xff]  ;;  %v5806_v46 = vunpack.c.l.b16 %v5698_v10  ;;  %v261_v57 = vmul.f32 %v9555_v43, %v221_v35 }
 0x661   : > { %6065 = vmatmul.msk.bf16.gmra.mxu3 %vm743_vm1, %v5299_v52  ;;  %v1444_v53 = vadd.f32 %v1443_v60, %v1389_v36  ;;  %v259_v24 = vmul.f32 %v9555_v43, %v219_v8 }
 0x662   : > { %v5807_v6 = vunpack.c.l.b16 %v5746_v27 }
 0x663   : > { %v295_v4 = vpack.c.bf16 %v259_v24, %v259_v24 }
 0x664   : > { %v5808_v3 = vpack.c.b16 %v5807_v6, %v5806_v46 }
 0x665   : > { %v5881_v0 = vunpack.c.l.b16 %v295_v4 }
 0x667   : > { %v5884_v9 = vpack.c.b16 %v5881_v0, %v5880_v18 }
 0x66d   : > { %v5813_v56 = vpop.permute.xlu2 %5812 }
 0x66e   : > { %v5862_v34 = vsel %vm743_vm1, %v5808_v3, %v5813_v56 }
 0x675   : > { %v5785_v63 = vpop.permute.xlu2 %5784 }
 0x677   : > { %v2000_v29 = vpop.f32.mrf.mxu0  ;;  %v2019_v23 = vpop.f32.mrf.mxu1 }
 0x678   : > { %v9864_v11 = vadd.f32 %v2000_v29, %v1423_v33  ;;  %v9866_v28 = vadd.f32 %v2019_v23, %v1442_v21  ;;  %v260_v21 = vmul.f32 %v9555_v43, %v220_v48  ;;  %v297_v29 = vpack.c.bf16 %v261_v57, %v261_v57 }
 0x67a   : > { %v296_v56 = vpack.c.bf16 %v260_v21, %v260_v21 }
 0x67c   : > { %v5882_v23 = vunpack.c.l.b16 %v296_v56 }
 0x67d   : > { %v5828_v41 = vpop.permute.xlu2 %5827 }
 0x67f   : > { %v2002_v37 = vpop.f32.mrf.mxu0  ;;  %v2021_v38 = vpop.f32.mrf.mxu1 }
 0x680   : > { %v9868_v22 = vadd.f32 %v2002_v37, %v1425_v5  ;;  %v9870_v20 = vadd.f32 %v2021_v38, %v1444_v53  ;;  %v2904_v37 = vpop.f32.mrf.mxu2 }
 0x684   : > { %v5775_v7 = vpop.permute.xlu1 %5774 }
 0x685   : > { %v5780_v31 = vpop.permute.xlu0 %5779  ;;  %v5800_v15 = vpop.permute.xlu2 %5799  ;;  %v5846_v14 = vsel %vm743_vm1, %v5770_v59, %v5775_v7 }
 0x686   : > { %v5848_v19 = vsel %vm747_vm2, %v5846_v14, %v5780_v31  ;;  %v2923_v31 = vpop.f32.mrf.mxu3 }
 0x687   : > { %v5850_v55 = vsel %vm750_vm3, %v5848_v19, %v5785_v63  ;;  %v5883_v63 = vunpack.c.l.b16 %v297_v29  ;;  %v2934_v4 = vadd.f32 %v2923_v31, %v9854_v40 }
 0x689   : > { %v5885_v7 = vpack.c.b16 %v5883_v63, %v5882_v23 }
 0x68c   : > { %v5818_v36 = vpop.permute.xlu1 %5817 }
 0x68d   : > { %v5823_v47 = vpop.permute.xlu0 %5822  ;;  %v5864_v12 = vsel %vm747_vm2, %v5862_v34, %v5818_v36  ;;  %v5843_v17 = vpop.permute.xlu2 %5842 }
 0x68e   : > { %v5866_v1 = vsel %vm750_vm3, %v5864_v12, %v5823_v47  ;;  %v2925_v43 = vpop.f32.mrf.mxu3 }
 0x68f   : > { %v5868_v30 = vsel %vm753_vm4, %v5866_v1, %v5828_v41  ;;  %v2906_v41 = vpop.f32.mrf.mxu2 }
 0x694   : > { %v5790_v50 = vpop.permute.xlu1 %5789 }
 0x695   : > { %v5795_v42 = vpop.permute.xlu0 %5794  ;;  %v5852_v49 = vsel %vm753_vm4, %v5850_v55, %v5790_v50  ;;  %v2936_v55 = vadd.f32 %v2925_v43, %v9859_v54 }
 0x696   : > { %v5854_v33 = vsel %vm756_vm5, %v5852_v49, %v5795_v42  ;;  %v2928_v36 = vpop.f32.mrf.mxu3 }
 0x697   : > { %v5856_v5 = vsel %vm759_vm6, %v5854_v33, %v5800_v15  ;;  %v2909_v51 = vpop.f32.mrf.mxu2  ;;  %v2938_v54 = vadd.f32 %v2928_v36, %v9866_v28 }
 0x698   : > { %v2937_v23 = vadd.f32 %v2909_v51, %v9864_v11 }
 0x699   : > { %v3509_v38 = vpop.f32.mrf.mxu1  ;;  %v3490_v27 = vpop.f32.mrf.mxu0 }
 0x69a   : > { %v3520_v18 = vadd.f32 %v3509_v38, %v2934_v4 }
 0x69c   : > { %v5833_v52 = vpop.permute.xlu1 %5832 }
 0x69d   : > { %v5870_v32 = vsel %vm756_vm5, %v5868_v30, %v5833_v52  ;;  %v5838_v39 = vpop.permute.xlu0 %5837  ;;  %v2933_v52 = vadd.f32 %v2904_v37, %v9852_v25 }
 0x69e   : > { %v5872_v16 = vsel %vm759_vm6, %v5870_v32, %v5838_v39  ;;  %v2930_v6 = vpop.f32.mrf.mxu3 }
 0x69f   : > { %v5874_v58 = vsel %vm762_vm7, %v5872_v16, %v5843_v17  ;;  %v9914_v2 = vpop.f32.mrf.mxu2  ;;  %v3519_v39 = vadd.f32 %v3490_v27, %v2933_v52  ;;  %v2940_v28 = vadd.f32 %v2930_v6, %v9870_v20 }
 0x6a0   : > { %5918 = vmatpush.bf16.msra.mxu1 %v5874_v58  ;;  %v2939_v11 = vadd.f32 %v9914_v2, %v9868_v22 }
 0x6a1   : > { %v3511_v10 = vpop.f32.mrf.mxu1  ;;  %v3492_v47 = vpop.f32.mrf.mxu0 }
 0x6a2   : > { %v3522_v49 = vadd.f32 %v3511_v10, %v2936_v55 }
 0x6a3   : > { %6068 = vmatmul.msk.bf16.vlgmr.msra.gmra.mxu1 %vm743_vm1, %v5884_v9 }
 0x6a4   : > { %v5805_v60 = vpop.permute.xlu1 %5804 }
 0x6a5   : > { %v5858_v53 = vsel %vm762_vm7, %v5856_v5, %v5805_v60 }
 0x6a6   : > { %5899 = vmatpush.bf16.msra.mxu0 %v5858_v53  ;;  %v4095_v46 = vpop.f32.mrf.mxu3 }
 0x6a7   : > { %v4076_v3 = vpop.f32.mrf.mxu2  ;;  %v4106_v32 = vadd.f32 %v4095_v46, %v3520_v18 }
 0x6a8   : > { %v4105_v40 = vadd.f32 %v4076_v3, %v3519_v39 }
 0x6a9   : > { %6066 = vmatmul.msk.bf16.vlgmr.msra.gmra.mxu0 %vm743_vm1, %v5884_v9  ;;  %v2935_v9 = vadd.f32 %v2906_v41, %v9857_v45 }
 0x6ab   : > { %v3514_v62 = vpop.f32.mrf.mxu1  ;;  %v3495_v8 = vpop.f32.mrf.mxu0  ;;  %v3521_v57 = vadd.f32 %v3492_v47, %v2935_v9 }
 0x6ac   : > { %v3524_v5 = vadd.f32 %v3514_v62, %v2938_v54  ;;  %v3523_v27 = vadd.f32 %v3495_v8, %v2937_v23 }
 0x6ae   : > { %v4097_v13 = vpop.f32.mrf.mxu3 }
 0x6af   : > { %v4078_v15 = vpop.f32.mrf.mxu2  ;;  %v4108_v33 = vadd.f32 %v4097_v13, %v3522_v49 }
 0x6b0   : > { %v4107_v63 = vadd.f32 %v4078_v15, %v3521_v57 }
 0x6b3   : > { %6069 = vmatmul.msk.bf16.gmra.mxu1 %vm743_vm1, %v5885_v7  ;;  %v3516_v44 = vpop.f32.mrf.mxu1  ;;  %v9916_v26 = vpop.f32.mrf.mxu0 }
 0x6b4   : > { %v3526_v10 = vadd.f32 %v3516_v44, %v2940_v28  ;;  %v3525_v8 = vadd.f32 %v9916_v26, %v2939_v11 }
 0x6b6   : > { %v4100_v34 = vpop.f32.mrf.mxu3 }
 0x6b7   : > { %v4081_v42 = vpop.f32.mrf.mxu2  ;;  %v4110_v43 = vadd.f32 %v4100_v34, %v3524_v5 }
 0x6b8   : > { %v4109_v51 = vadd.f32 %v4081_v42, %v3523_v27 }
 0x6b9   : > { %6067 = vmatmul.msk.bf16.gmra.mxu0 %vm743_vm1, %v5885_v7 }
 0x6bb   : > { %v4748_v24 = vpop.f32.mrf.mxu1  ;;  %v4729_v50 = vpop.f32.mrf.mxu0 }
 0x6bc   : > { %v4759_v16 = vadd.f32 %v4748_v24, %v4106_v32  ;;  %v4758_v60 = vadd.f32 %v4729_v50, %v4105_v40 }
 0x6be   : > { %v4102_v14 = vpop.f32.mrf.mxu3 }
 0x6bf   : > { %v9919_v1 = vpop.f32.mrf.mxu2  ;;  %v4112_v24 = vadd.f32 %v4102_v14, %v3526_v10 }
 0x6c0   : > { %v4111_v22 = vadd.f32 %v9919_v1, %v3525_v8 }
 0x6c3   : > { %v4750_v59 = vpop.f32.mrf.mxu1  ;;  %v4731_v12 = vpop.f32.mrf.mxu0 }
 0x6c4   : > { %v4761_v45 = vadd.f32 %v4750_v59, %v4108_v33  ;;  %v4760_v36 = vadd.f32 %v4731_v12, %v4107_v63 }
 0x6cb   : > { %v4734_v19 = vpop.f32.mrf.mxu0 }
 0x6cc   : > { %v4753_v61 = vpop.f32.mrf.mxu1  ;;  %v4762_v50 = vadd.f32 %v4734_v19, %v4109_v51 }
 0x6cd   : > { %v5315_v17 = vpop.f32.mrf.mxu2  ;;  %v4763_v47 = vadd.f32 %v4753_v61, %v4110_v43 }
 0x6ce   : > { %v5344_v53 = vadd.f32 %v5315_v17, %v4758_v60 }
 0x6d3   : > { %v4736_v58 = vpop.f32.mrf.mxu0 }
 0x6d4   : > { %v5334_v0 = vpop.f32.mrf.mxu3  ;;  %v4755_v30 = vpop.f32.mrf.mxu1  ;;  %v4764_v18 = vadd.f32 %v4736_v58, %v4111_v22 }
 0x6d5   : > { %v5345_v48 = vadd.f32 %v5334_v0, %v4759_v16  ;;  %v5317_v56 = vpop.f32.mrf.mxu2  ;;  %v4765_v34 = vadd.f32 %v4755_v30, %v4112_v24 }
 0x6d6   : > { %v5346_v62 = vadd.f32 %v5317_v56, %v4760_v36 }
 0x6dc   : > { %v5336_v35 = vpop.f32.mrf.mxu3 }
 0x6dd   : > { %v5347_v7 = vadd.f32 %v5336_v35, %v4761_v45  ;;  %v5320_v20 = vpop.f32.mrf.mxu2 }
 0x6de   : > { %v5348_v59 = vadd.f32 %v5320_v20, %v4762_v50 }
 0x6e4   : > { %v5339_v41 = vpop.f32.mrf.mxu3 }
 0x6e5   : > { %v5349_v3 = vadd.f32 %v5339_v41, %v4763_v47  ;;  %v5322_v14 = vpop.f32.mrf.mxu2 }
 0x6e6   : > { %v5350_v0 = vadd.f32 %v5322_v14, %v4764_v18 }
 0x6ec   : > { %v5341_v44 = vpop.f32.mrf.mxu3 }
 0x6ed   : > { %v5351_v2 = vadd.f32 %v5341_v44, %v4765_v34 }
 0x720   : > { %v5920_v25 = vpop.f32.mrf.mxu1 }
 0x721   : > { %v5931_v21 = vadd.f32 %v5920_v25, %v5345_v48 }
 0x723   : > { %5939 = vst [vmem:[%s9928_s17 + $0x8] sm:$0xff] %v5931_v21 }
 0x726   : > { %v5901_v29 = vpop.f32.mrf.mxu0 }
 0x727   : > { %v5930_v31 = vadd.f32 %v5901_v29, %v5344_v53 }
 0x728   : > { %v5922_v37 = vpop.f32.mrf.mxu1 }
 0x729   : > { %5938 = vst [vmem:[%s9928_s17] sm:$0xff] %v5930_v31  ;;  %v5933_v38 = vadd.f32 %v5922_v37, %v5347_v7 }
 0x72b   : > { %5941 = vst [vmem:[%s9928_s17 + $0x18] sm:$0xff] %v5933_v38 }
 0x72e   : > { %v5903_v46 = vpop.f32.mrf.mxu0 }
 0x72f   : > { %v5932_v13 = vadd.f32 %v5903_v46, %v5346_v62 }
 0x730   : > { %v5925_v6 = vpop.f32.mrf.mxu1 }
 0x731   : > { %5940 = vst [vmem:[%s9928_s17 + $0x10] sm:$0xff] %v5932_v13  ;;  %v5935_v15 = vadd.f32 %v5925_v6, %v5349_v3 }
 0x733   : > { %5943 = vst [vmem:[%s9928_s17 + $0x28] sm:$0xff] %v5935_v15 }
 0x736   : > { %v5906_v12 = vpop.f32.mrf.mxu0 }
 0x737   : > { %v5934_v42 = vadd.f32 %v5906_v12, %v5348_v59 }
 0x738   : > { %v5927_v61 = vpop.f32.mrf.mxu1 }
 0x739   : > { %5942 = vst [vmem:[%s9928_s17 + $0x20] sm:$0xff] %v5934_v42  ;;  %v5937_v4 = vadd.f32 %v5927_v61, %v5351_v2 }
 0x73b   : > { %5945 = vst [vmem:[%s9928_s17 + $0x38] sm:$0xff] %v5937_v4 }
 0x73e   : > { %v5908_v52 = vpop.f32.mrf.mxu0 }
 0x73f   : > { %v5936_v26 = vadd.f32 %v5908_v52, %v5350_v0 }
 0x741   : > { %5944 = vst [vmem:[%s9928_s17 + $0x30] sm:$0xff] %v5936_v26 }
 0x742 PF: > { %s13_s12 = sadd.s32 1, %s6200_s12  }
 0x743   : > { %p10_p4 = scmp.ge.s32.totalorder %s13_s12, 4  }
 0x745   :  { %12 = sbr.rel (!%p10_p4) target bundleno = 1 (0x1), region = 65 }

</bundles_post_ra>
